<compile_context>
chip_gen: v6e
topology: v6e:2x2x1
jax: 0.10.0
libtpu: 0.0.40
codegen_flags: <defaults>
</compile_context>

<pallas_src>
import math
import numpy as np
import jax
import jax.numpy as jnp
from jax.experimental import pallas as pl
from jax.experimental.pallas import tpu as pltpu


# ----------------------------- module "constants" ---------------------------

def create_positional_encoding(max_len, d_model):
    """Standard sinusoidal PE, shape (max_len, d_model)."""
    position = np.arange(max_len, dtype=np.float32)[:, None]
    div_term = np.exp(np.arange(0, d_model, 2, dtype=np.float32) *
                      (-np.log(10000.0) / d_model))
    pe = np.zeros((max_len, d_model), dtype=np.float32)
    pe[:, 0::2] = np.sin(position * div_term)
    pe[:, 1::2] = np.cos(position * div_term)
    return jnp.asarray(pe)


def build_slope_tensor(n_heads):
    """ALiBi-style slopes used by lightning_attn_func; shape (H, 1, 1) float32."""
    def power_of_2(n):
        start = 2.0 ** (-(2.0 ** -(math.log2(n) - 3)))
        return [start * (start ** i) for i in range(n)]

    def get_slopes(n):
        if math.log2(n).is_integer():
            return power_of_2(n)
        closest = 2 ** math.floor(math.log2(n))
        return power_of_2(closest) + get_slopes(2 * closest)[0::2][: n - closest]

    return jnp.asarray(get_slopes(n_heads), dtype=jnp.float32).reshape(n_heads, 1, 1)


# --------------------------------- kernel -----------------------------------

def _make_kernel(bk, num_heads, seq_len, head_dim, hidden_pad):
    H, L, hd, Hp = num_heads, seq_len, head_dim, hidden_pad
    G = bk * H          # (batch-fold, head) groups handled by one kernel body

    def kernel(x_ref,        # (G, L, hd)     f32
               decay_ref,    # (G, L, L)      f32  precomputed causal decay
               gamma_ref,    # (1, hd)        f32  shared LayerNorm weight
               beta_ref,     # (1, hd)        f32  shared LayerNorm bias
               w1_ref,       # (hd, Hp)       bf16
               b1_ref,       # (1, Hp)        f32
               w2_ref,       # (Hp, hd)       bf16
               b2_ref,       # (1, hd)        f32
               out_ref):     # (bk, L, hd)    f32  mean over heads
        # ---- hoisted invariants: LayerNorm runs 5x; JAX does not CSE broadcasts.
        gamma = jnp.broadcast_to(gamma_ref[...], (G, L, hd))
        beta = jnp.broadcast_to(beta_ref[...], (G, L, hd))
        decay = decay_ref[...]                     # (G, L, L)
        w1 = w1_ref[...]                           # bf16
        w2 = w2_ref[...]                           # bf16
        b1 = b1_ref[0, :]
        b2 = b2_ref[0, :]

        def layernorm(t):                          # (G, L, hd), normalize last axis
            mu = jnp.mean(t, axis=-1, keepdims=True)
            var = jnp.mean((t - mu) ** 2, axis=-1, keepdims=True)
            return (t - mu) * jax.lax.rsqrt(var + 1e-5) * gamma + beta

        # Lightning (linear) attention in its exact quadratic form,
        #   o_t = sum_{i<=t} exp(-s*(t-i)) * (q_t . k_i) * v_i   (per head)
        # issued as one batched dot_general over all G groups so the tiny MXU
        # passes queue back-to-back (fill/drain overlaps) instead of serializing.
        def attention(q, k, v):                    # (G, L, hd)
            s = jnp.einsum("gld,gmd->glm", q, k,
                           preferred_element_type=jnp.float32)
            return jnp.einsum("glm,gmd->gld", s * decay, v,
                              preferred_element_type=jnp.float32)

        # nn.Linear -> LeakyReLU(0.01) -> Dropout(0.4) [identity in eval] -> nn.Linear
        # Batched over every row: (G*L, hd) rows feed the MXU in one shot
        # (M=128 when the batch is folded).  bf16 operands, f32 accumulation.
        # Note: the (G*L, Hp) f32 intermediate streams through VMEM; the bf16
        # cast before the second matmul keeps vreg pressure low.
        def feed_forward(t):                       # (G, L, hd)
            flat = t.reshape(G * L, hd).astype(jnp.bfloat16)
            h1 = jnp.dot(flat, w1, preferred_element_type=jnp.float32) + b1
            h1 = jnp.where(h1 >= 0.0, h1, 0.01 * h1)
            h2 = jnp.dot(h1.astype(jnp.bfloat16), w2,
                         preferred_element_type=jnp.float32) + b2
            return h2.reshape(G, L, hd)

        x = layernorm(x_ref[...])
        residual = x                               # frozen after the initial norm
        for _ in range(2):
            x = layernorm(attention(x, x, x) + residual)   # frozen residual
            x = layernorm(feed_forward(x) + x)             # + x, per the spec

        # torch.mean(x, dim=1): reduce over heads; one store per batch element.
        for b in range(bk):
            out_ref[b, :, :] = jnp.sum(x[b * H:(b + 1) * H], axis=0) * (1.0 / H)

    return kernel


# -------------------------------- wrapper -----------------------------------

def _kernel_batch_block(batch):
    """Batch elements handled per grid step.

    v7x has two TensorCores per chip -> keep a (B,) 'parallel' grid so each TC
    takes one batch element.  v5e / v6e are single-TC, so a (B,) grid is just a
    serial loop: fold the whole batch into one kernel body (removes per-step
    pipeline overhead and fills the MXU rows in the FF matmuls).
    """
    try:
        kind = jax.devices()[0].device_kind.lower()
    except Exception:
        kind = ""
    if "v7" in kind and batch > 1:
        return 1
    return batch


def lightning_transformer_forward(x, params, num_heads):
    B, L, D = x.shape
    hd = D // num_heads
    hidden = params["w1"].shape[1]

    # x = x.unsqueeze(1); x = x + pe[:x.size(1)].unsqueeze(0)   (x.size(1) == 1)
    xr = x[:, None, :, :] + params["pe"][:1][None, :, :]
    # x = x.view(B, num_heads, -1, head_dim)   (row-major reshape, same as .view)
    xr = xr.reshape(B, num_heads, -1, hd)
    Lh = xr.shape[2]
    # TODO(synk): the PE add / .view layout above is shared by kernel and
    # reference; verify once against the PyTorch module's exact semantics.

    # Precompute the per-head causal decay once (tiny: H*Lh*Lh f32).
    diff = (jnp.arange(Lh)[:, None] - jnp.arange(Lh)[None, :]).astype(jnp.float32)
    decay_h = (jnp.exp(-params["slopes"] * jnp.maximum(diff, 0.0))
               * (diff >= 0.0).astype(jnp.float32))               # (H, Lh, Lh)

    # FF weights: zero-pad hidden 320 -> 384 (3*128, lane-dense intermediate)
    # and store the weight matrices in bf16 (halves the dominant weight DMA,
    # feeds the bf16-native MXU path).  Padding is numerically exact.
    Hp = ((hidden + 127) // 128) * 128
    w1 = jnp.zeros((hd, Hp), jnp.bfloat16).at[:, :hidden].set(
        params["w1"].astype(jnp.bfloat16))
    b1 = jnp.zeros((1, Hp), jnp.float32).at[:, :hidden].set(params["b1"])
    w2 = jnp.zeros((Hp, hd), jnp.bfloat16).at[:hidden, :].set(
        params["w2"].astype(jnp.bfloat16))
    b2 = params["b2"]

    Bk = _kernel_batch_block(B)
    assert B % Bk == 0
    G = Bk * num_heads

    # Flattened (batch*head, Lh, hd) view for the kernel, decay tiled to match.
    xg = xr.reshape(B * num_heads, Lh, hd)
    decay_g = jnp.tile(decay_h, (Bk, 1, 1))                        # (G, Lh, Lh)

    kernel = _make_kernel(Bk, num_heads, Lh, hd, Hp)

    grid_spec = pltpu.PrefetchScalarGridSpec(
        num_scalar_prefetch=0,
        grid=(B // Bk,),
        in_specs=[
            pl.BlockSpec((G, Lh, hd), lambda b: (b, 0, 0)),        # x (all groups)
            pl.BlockSpec((G, Lh, Lh), lambda b: (0, 0, 0)),        # decay
            pl.BlockSpec((1, hd), lambda b: (0, 0)),               # gamma
            pl.BlockSpec((1, hd), lambda b: (0, 0)),               # beta
            pl.BlockSpec((hd, Hp), lambda b: (0, 0)),              # W1 (bf16)
            pl.BlockSpec((1, Hp), lambda b: (0, 0)),               # b1
            pl.BlockSpec((Hp, hd), lambda b: (0, 0)),              # W2 (bf16)
            pl.BlockSpec((1, hd), lambda b: (0, 0)),               # b2
        ],
        out_specs=pl.BlockSpec((Bk, Lh, hd), lambda b: (b, 0, 0)),
    )

    return pl.pallas_call(
        kernel,
        grid_spec=grid_spec,
        out_shape=jax.ShapeDtypeStruct((B, Lh, hd), jnp.float32),
        compiler_params=pltpu.CompilerParams(
            dimension_semantics=("parallel",)),
    )(xg, decay_g, params["gamma"], params["beta"], w1, b1, w2, b2)


# ---------------------------- pure-JAX reference ----------------------------

def reference_forward(x, params, num_heads):
    """Module semantics in plain f32 JAX (eval mode)."""
    B, L, D = x.shape
    hd = D // num_heads
    xr = x[:, None, :, :] + params["pe"][:1][None, :, :]
    xr = xr.reshape(B, num_heads, -1, hd)
    Lh = xr.shape[2]

    def ln(t):
        mu = t.mean(-1, keepdims=True)
        var = ((t - mu) ** 2).mean(-1, keepdims=True)
        return (t - mu) / jnp.sqrt(var + 1e-5) * params["gamma"][0] + params["beta"][0]

    slopes = params["slopes"]                                      # (H, 1, 1)
    diff = (jnp.arange(Lh)[:, None] - jnp.arange(Lh)[None, :]).astype(jnp.float32)
    decay = jnp.where(diff >= 0, jnp.exp(-slopes * jnp.maximum(diff, 0.0)), 0.0)

    def attn(q, k, v):
        scores = jnp.einsum("bhld,bhmd->bhlm", q, k)
        return jnp.einsum("bhlm,bhmd->bhld", scores * decay[None], v)

    def ff(t):
        h1 = t @ params["w1"] + params["b1"][0]
        h1 = jnp.where(h1 >= 0, h1, 0.01 * h1)
        return h1 @ params["w2"] + params["b2"][0]

    xc = ln(xr)
    res = xc
    for _ in range(2):
        xc = ln(attn(xc, xc, xc) + res)
        xc = ln(ff(xc) + xc)
    return xc.mean(axis=1)


# ---------------------------------- main ------------------------------------

if __name__ == "__main__":
    num_heads = 8
    embedding_dim = 640
    seq_len = 8
    batch = 2
    head_dim = embedding_dim // num_heads          # 80
    hidden = head_dim * 4                          # FeedForward(mult=4) -> 320

    key = jax.random.PRNGKey(0)
    kx, k1, k2, k3, k4 = jax.random.split(key, 5)

    lim1 = 1.0 / math.sqrt(head_dim)
    lim2 = 1.0 / math.sqrt(hidden)
    params = {
        "pe": create_positional_encoding(seq_len, embedding_dim),
        "slopes": build_slope_tensor(num_heads),
        "gamma": jnp.ones((1, head_dim), jnp.float32),     # LayerNorm default init
        "beta": jnp.zeros((1, head_dim), jnp.float32),
        "w1": jax.random.uniform(k1, (head_dim, hidden), jnp.float32, -lim1, lim1),
        "b1": jax.random.uniform(k2, (1, hidden), jnp.float32, -lim1, lim1),
        "w2": jax.random.uniform(k3, (hidden, head_dim), jnp.float32, -lim2, lim2),
        "b2": jax.random.uniform(k4, (1, head_dim), jnp.float32, -lim2, lim2),
    }
    # TODO(synk): Dropout(0.4) layers are train-time only; forward implemented in eval mode.

    x = jax.random.normal(kx, (batch, seq_len, embedding_dim), jnp.float32)

    out = jax.block_until_ready(lightning_transformer_forward(x, params, num_heads))
    ref = jax.block_until_ready(reference_forward(x, params, num_heads))

    assert out.shape == ref.shape, (out.shape, ref.shape)
    # Tolerance is scaled for the bf16 FF-matmul operands in the kernel (f32
    # accumulation); an all-f32 variant of this kernel matches to ~1e-5.
    if not bool(jnp.allclose(out, ref, rtol=2e-2, atol=2e-2)):
        raise AssertionError("Pallas output mismatch vs pure-JAX reference")

    print("KERNEL_OK")
</pallas_src>

<mosaic_0001>
module attributes {stable_mosaic.version = 11 : i64} {
  func.func @kernel(%arg0: i32, %arg1: memref<16x8x80xf32, #tpu.memory_space<vmem>>, %arg2: memref<16x8x8xf32, #tpu.memory_space<vmem>>, %arg3: memref<1x80xf32, #tpu.memory_space<vmem>>, %arg4: memref<1x80xf32, #tpu.memory_space<vmem>>, %arg5: memref<80x384xbf16, #tpu.memory_space<vmem>>, %arg6: memref<1x384xf32, #tpu.memory_space<vmem>>, %arg7: memref<384x80xbf16, #tpu.memory_space<vmem>>, %arg8: memref<1x80xf32, #tpu.memory_space<vmem>>, %arg9: memref<2x8x80xf32, #tpu.memory_space<vmem>>) attributes {dimension_semantics = [#tpu.dimension_semantics<parallel>], iteration_bounds = array<i64: 1>, scalar_prefetch = 0 : i64, scratch_operands = 0 : i64, tpu.core_type = #tpu.core_type<tc>, window_params = [{transform_indices = @transform_0, window_bounds = array<i64: 16, 8, 80>}, {pipeline_mode = #tpu.pipeline_mode<synchronous>, transform_indices = @transform_1, window_bounds = array<i64: 16, 8, 8>}, {pipeline_mode = #tpu.pipeline_mode<synchronous>, transform_indices = @transform_2, window_bounds = array<i64: 1, 80>}, {pipeline_mode = #tpu.pipeline_mode<synchronous>, transform_indices = @transform_3, window_bounds = array<i64: 1, 80>}, {pipeline_mode = #tpu.pipeline_mode<synchronous>, transform_indices = @transform_4, window_bounds = array<i64: 80, 384>}, {pipeline_mode = #tpu.pipeline_mode<synchronous>, transform_indices = @transform_5, window_bounds = array<i64: 1, 384>}, {pipeline_mode = #tpu.pipeline_mode<synchronous>, transform_indices = @transform_6, window_bounds = array<i64: 384, 80>}, {pipeline_mode = #tpu.pipeline_mode<synchronous>, transform_indices = @transform_7, window_bounds = array<i64: 1, 80>}, {transform_indices = @transform_8, window_bounds = array<i64: 2, 8, 80>}]} {
    %c0 = arith.constant 0 : index
    %c0_0 = arith.constant 0 : index
    %0 = vector.load %arg3[%c0, %c0_0] : memref<1x80xf32, #tpu.memory_space<vmem>>, vector<1x80xf32>
    %1 = vector.shape_cast %0 : vector<1x80xf32> to vector<1x1x80xf32>
    %2 = vector.broadcast %1 : vector<1x1x80xf32> to vector<16x8x80xf32>
    %c0_1 = arith.constant 0 : index
    %c0_2 = arith.constant 0 : index
    %3 = vector.load %arg4[%c0_1, %c0_2] : memref<1x80xf32, #tpu.memory_space<vmem>>, vector<1x80xf32>
    %4 = vector.shape_cast %3 : vector<1x80xf32> to vector<1x1x80xf32>
    %5 = vector.broadcast %4 : vector<1x1x80xf32> to vector<16x8x80xf32>
    %c0_3 = arith.constant 0 : index
    %c0_4 = arith.constant 0 : index
    %c0_5 = arith.constant 0 : index
    %6 = vector.load %arg2[%c0_3, %c0_4, %c0_5] : memref<16x8x8xf32, #tpu.memory_space<vmem>>, vector<16x8x8xf32>
    %c0_6 = arith.constant 0 : index
    %c0_7 = arith.constant 0 : index
    %7 = vector.load %arg5[%c0_6, %c0_7] : memref<80x384xbf16, #tpu.memory_space<vmem>>, vector<80x384xbf16>
    %c0_8 = arith.constant 0 : index
    %c0_9 = arith.constant 0 : index
    %8 = vector.load %arg7[%c0_8, %c0_9] : memref<384x80xbf16, #tpu.memory_space<vmem>>, vector<384x80xbf16>
    %c0_10 = arith.constant 0 : index
    %c0_11 = arith.constant 0 : index
    %9 = vector.load %arg6[%c0_10, %c0_11] : memref<1x384xf32, #tpu.memory_space<vmem>>, vector<1x384xf32>
    %10 = vector.shape_cast %9 : vector<1x384xf32> to vector<384xf32>
    %c0_12 = arith.constant 0 : index
    %c0_13 = arith.constant 0 : index
    %11 = vector.load %arg8[%c0_12, %c0_13] : memref<1x80xf32, #tpu.memory_space<vmem>>, vector<1x80xf32>
    %12 = vector.shape_cast %11 : vector<1x80xf32> to vector<80xf32>
    %c0_14 = arith.constant 0 : index
    %c0_15 = arith.constant 0 : index
    %c0_16 = arith.constant 0 : index
    %13 = vector.load %arg1[%c0_14, %c0_15, %c0_16] : memref<16x8x80xf32, #tpu.memory_space<vmem>>, vector<16x8x80xf32>
    %cst = arith.constant dense<0.000000e+00> : vector<16x8xf32>
    %14 = vector.multi_reduction <add>, %13, %cst [2] : vector<16x8x80xf32> to vector<16x8xf32>
    %15 = vector.shape_cast %14 : vector<16x8xf32> to vector<16x8x1xf32>
    %cst_17 = arith.constant 8.000000e+01 : f32
    %16 = vector.broadcast %cst_17 : f32 to vector<16x8x1xf32>
    %17 = arith.divf %15, %16 : vector<16x8x1xf32>
    %18 = vector.broadcast %17 : vector<16x8x1xf32> to vector<16x8x80xf32>
    %19 = arith.subf %13, %18 : vector<16x8x80xf32>
    %20 = arith.mulf %19, %19 : vector<16x8x80xf32>
    %cst_18 = arith.constant dense<0.000000e+00> : vector<16x8xf32>
    %21 = vector.multi_reduction <add>, %20, %cst_18 [2] : vector<16x8x80xf32> to vector<16x8xf32>
    %22 = vector.shape_cast %21 : vector<16x8xf32> to vector<16x8x1xf32>
    %cst_19 = arith.constant 8.000000e+01 : f32
    %23 = vector.broadcast %cst_19 : f32 to vector<16x8x1xf32>
    %24 = arith.divf %22, %23 : vector<16x8x1xf32>
    %25 = vector.broadcast %17 : vector<16x8x1xf32> to vector<16x8x80xf32>
    %26 = arith.subf %13, %25 : vector<16x8x80xf32>
    %cst_20 = arith.constant 9.99999974E-6 : f32
    %27 = vector.broadcast %cst_20 : f32 to vector<16x8x1xf32>
    %28 = arith.addf %24, %27 : vector<16x8x1xf32>
    %29 = math.rsqrt %28 : vector<16x8x1xf32>
    %30 = vector.broadcast %29 : vector<16x8x1xf32> to vector<16x8x80xf32>
    %31 = arith.mulf %26, %30 : vector<16x8x80xf32>
    %32 = arith.mulf %31, %2 : vector<16x8x80xf32>
    %33 = arith.addf %32, %5 : vector<16x8x80xf32>
    "tpu.trace_start"() <{level = 10 : i32, message = "gld,gmd->glm"}> : () -> ()
    %cst_21 = arith.constant dense<0.000000e+00> : vector<16x8x8xf32>
    %34 = tpu.matmul %33, %33, %cst_21 {dimension_numbers = #tpu.dot_dimension_numbers<[2], [2], [1], [1], [0, 0, 0, 1, 1, 1], [0], [0]>} : vector<16x8x80xf32>, vector<16x8x80xf32>, vector<16x8x8xf32> -> vector<16x8x8xf32>
    "tpu.trace_stop"() : () -> ()
    %35 = arith.mulf %34, %6 : vector<16x8x8xf32>
    "tpu.trace_start"() <{level = 10 : i32, message = "glm,gmd->gld"}> : () -> ()
    %cst_22 = arith.constant dense<0.000000e+00> : vector<16x8x80xf32>
    %36 = tpu.matmul %35, %33, %cst_22 {dimension_numbers = #tpu.dot_dimension_numbers<[2], [1], [1], [2], [0, 0, 0, 1, 1, 2], [0], [0]>} : vector<16x8x8xf32>, vector<16x8x80xf32>, vector<16x8x80xf32> -> vector<16x8x80xf32>
    "tpu.trace_stop"() : () -> ()
    %37 = arith.addf %36, %33 : vector<16x8x80xf32>
    %cst_23 = arith.constant dense<0.000000e+00> : vector<16x8xf32>
    %38 = vector.multi_reduction <add>, %37, %cst_23 [2] : vector<16x8x80xf32> to vector<16x8xf32>
    %39 = vector.shape_cast %38 : vector<16x8xf32> to vector<16x8x1xf32>
    %cst_24 = arith.constant 8.000000e+01 : f32
    %40 = vector.broadcast %cst_24 : f32 to vector<16x8x1xf32>
    %41 = arith.divf %39, %40 : vector<16x8x1xf32>
    %42 = vector.broadcast %41 : vector<16x8x1xf32> to vector<16x8x80xf32>
    %43 = arith.subf %37, %42 : vector<16x8x80xf32>
    %44 = arith.mulf %43, %43 : vector<16x8x80xf32>
    %cst_25 = arith.constant dense<0.000000e+00> : vector<16x8xf32>
    %45 = vector.multi_reduction <add>, %44, %cst_25 [2] : vector<16x8x80xf32> to vector<16x8xf32>
    %46 = vector.shape_cast %45 : vector<16x8xf32> to vector<16x8x1xf32>
    %cst_26 = arith.constant 8.000000e+01 : f32
    %47 = vector.broadcast %cst_26 : f32 to vector<16x8x1xf32>
    %48 = arith.divf %46, %47 : vector<16x8x1xf32>
    %49 = vector.broadcast %41 : vector<16x8x1xf32> to vector<16x8x80xf32>
    %50 = arith.subf %37, %49 : vector<16x8x80xf32>
    %cst_27 = arith.constant 9.99999974E-6 : f32
    %51 = vector.broadcast %cst_27 : f32 to vector<16x8x1xf32>
    %52 = arith.addf %48, %51 : vector<16x8x1xf32>
    %53 = math.rsqrt %52 : vector<16x8x1xf32>
    %54 = vector.broadcast %53 : vector<16x8x1xf32> to vector<16x8x80xf32>
    %55 = arith.mulf %50, %54 : vector<16x8x80xf32>
    %56 = arith.mulf %55, %2 : vector<16x8x80xf32>
    %57 = arith.addf %56, %5 : vector<16x8x80xf32>
    %58 = vector.shape_cast %57 : vector<16x8x80xf32> to vector<128x80xf32>
    %59 = arith.truncf %58 : vector<128x80xf32> to vector<128x80xbf16>
    %cst_28 = arith.constant dense<0.000000e+00> : vector<128x384xf32>
    %60 = tpu.matmul %59, %7, %cst_28 {dimension_numbers = #tpu.dot_dimension_numbers<[1], [0], [0], [1], [0, 0, 1, 1], [], []>} : vector<128x80xbf16>, vector<80x384xbf16>, vector<128x384xf32> -> vector<128x384xf32>
    %61 = vector.shape_cast %10 : vector<384xf32> to vector<1x384xf32>
    %62 = vector.broadcast %61 : vector<1x384xf32> to vector<128x384xf32>
    %63 = arith.addf %60, %62 : vector<128x384xf32>
    %cst_29 = arith.constant 0.000000e+00 : f32
    %64 = vector.broadcast %cst_29 : f32 to vector<128x384xf32>
    %65 = arith.cmpf oge, %63, %64 : vector<128x384xf32>
    %cst_30 = arith.constant 0.00999999977 : f32
    %66 = vector.broadcast %cst_30 : f32 to vector<128x384xf32>
    %67 = arith.mulf %66, %63 : vector<128x384xf32>
    %68 = arith.select %65, %63, %67 : vector<128x384xi1>, vector<128x384xf32>
    %69 = arith.truncf %68 : vector<128x384xf32> to vector<128x384xbf16>
    %cst_31 = arith.constant dense<0.000000e+00> : vector<128x80xf32>
    %70 = tpu.matmul %69, %8, %cst_31 {dimension_numbers = #tpu.dot_dimension_numbers<[1], [0], [0], [1], [0, 0, 1, 1], [], []>} : vector<128x384xbf16>, vector<384x80xbf16>, vector<128x80xf32> -> vector<128x80xf32>
    %71 = vector.shape_cast %12 : vector<80xf32> to vector<1x80xf32>
    %72 = vector.broadcast %71 : vector<1x80xf32> to vector<128x80xf32>
    %73 = arith.addf %70, %72 : vector<128x80xf32>
    %74 = vector.shape_cast %73 : vector<128x80xf32> to vector<16x8x80xf32>
    %75 = arith.addf %74, %57 : vector<16x8x80xf32>
    %cst_32 = arith.constant dense<0.000000e+00> : vector<16x8xf32>
    %76 = vector.multi_reduction <add>, %75, %cst_32 [2] : vector<16x8x80xf32> to vector<16x8xf32>
    %77 = vector.shape_cast %76 : vector<16x8xf32> to vector<16x8x1xf32>
    %cst_33 = arith.constant 8.000000e+01 : f32
    %78 = vector.broadcast %cst_33 : f32 to vector<16x8x1xf32>
    %79 = arith.divf %77, %78 : vector<16x8x1xf32>
    %80 = vector.broadcast %79 : vector<16x8x1xf32> to vector<16x8x80xf32>
    %81 = arith.subf %75, %80 : vector<16x8x80xf32>
    %82 = arith.mulf %81, %81 : vector<16x8x80xf32>
    %cst_34 = arith.constant dense<0.000000e+00> : vector<16x8xf32>
    %83 = vector.multi_reduction <add>, %82, %cst_34 [2] : vector<16x8x80xf32> to vector<16x8xf32>
    %84 = vector.shape_cast %83 : vector<16x8xf32> to vector<16x8x1xf32>
    %cst_35 = arith.constant 8.000000e+01 : f32
    %85 = vector.broadcast %cst_35 : f32 to vector<16x8x1xf32>
    %86 = arith.divf %84, %85 : vector<16x8x1xf32>
    %87 = vector.broadcast %79 : vector<16x8x1xf32> to vector<16x8x80xf32>
    %88 = arith.subf %75, %87 : vector<16x8x80xf32>
    %cst_36 = arith.constant 9.99999974E-6 : f32
    %89 = vector.broadcast %cst_36 : f32 to vector<16x8x1xf32>
    %90 = arith.addf %86, %89 : vector<16x8x1xf32>
    %91 = math.rsqrt %90 : vector<16x8x1xf32>
    %92 = vector.broadcast %91 : vector<16x8x1xf32> to vector<16x8x80xf32>
    %93 = arith.mulf %88, %92 : vector<16x8x80xf32>
    %94 = arith.mulf %93, %2 : vector<16x8x80xf32>
    %95 = arith.addf %94, %5 : vector<16x8x80xf32>
    "tpu.trace_start"() <{level = 10 : i32, message = "gld,gmd->glm"}> : () -> ()
    %cst_37 = arith.constant dense<0.000000e+00> : vector<16x8x8xf32>
    %96 = tpu.matmul %95, %95, %cst_37 {dimension_numbers = #tpu.dot_dimension_numbers<[2], [2], [1], [1], [0, 0, 0, 1, 1, 1], [0], [0]>} : vector<16x8x80xf32>, vector<16x8x80xf32>, vector<16x8x8xf32> -> vector<16x8x8xf32>
    "tpu.trace_stop"() : () -> ()
    %97 = arith.mulf %96, %6 : vector<16x8x8xf32>
    "tpu.trace_start"() <{level = 10 : i32, message = "glm,gmd->gld"}> : () -> ()
    %cst_38 = arith.constant dense<0.000000e+00> : vector<16x8x80xf32>
    %98 = tpu.matmul %97, %95, %cst_38 {dimension_numbers = #tpu.dot_dimension_numbers<[2], [1], [1], [2], [0, 0, 0, 1, 1, 2], [0], [0]>} : vector<16x8x8xf32>, vector<16x8x80xf32>, vector<16x8x80xf32> -> vector<16x8x80xf32>
    "tpu.trace_stop"() : () -> ()
    %99 = arith.addf %98, %33 : vector<16x8x80xf32>
    %cst_39 = arith.constant dense<0.000000e+00> : vector<16x8xf32>
    %100 = vector.multi_reduction <add>, %99, %cst_39 [2] : vector<16x8x80xf32> to vector<16x8xf32>
    %101 = vector.shape_cast %100 : vector<16x8xf32> to vector<16x8x1xf32>
    %cst_40 = arith.constant 8.000000e+01 : f32
    %102 = vector.broadcast %cst_40 : f32 to vector<16x8x1xf32>
    %103 = arith.divf %101, %102 : vector<16x8x1xf32>
    %104 = vector.broadcast %103 : vector<16x8x1xf32> to vector<16x8x80xf32>
    %105 = arith.subf %99, %104 : vector<16x8x80xf32>
    %106 = arith.mulf %105, %105 : vector<16x8x80xf32>
    %cst_41 = arith.constant dense<0.000000e+00> : vector<16x8xf32>
    %107 = vector.multi_reduction <add>, %106, %cst_41 [2] : vector<16x8x80xf32> to vector<16x8xf32>
    %108 = vector.shape_cast %107 : vector<16x8xf32> to vector<16x8x1xf32>
    %cst_42 = arith.constant 8.000000e+01 : f32
    %109 = vector.broadcast %cst_42 : f32 to vector<16x8x1xf32>
    %110 = arith.divf %108, %109 : vector<16x8x1xf32>
    %111 = vector.broadcast %103 : vector<16x8x1xf32> to vector<16x8x80xf32>
    %112 = arith.subf %99, %111 : vector<16x8x80xf32>
    %cst_43 = arith.constant 9.99999974E-6 : f32
    %113 = vector.broadcast %cst_43 : f32 to vector<16x8x1xf32>
    %114 = arith.addf %110, %113 : vector<16x8x1xf32>
    %115 = math.rsqrt %114 : vector<16x8x1xf32>
    %116 = vector.broadcast %115 : vector<16x8x1xf32> to vector<16x8x80xf32>
    %117 = arith.mulf %112, %116 : vector<16x8x80xf32>
    %118 = arith.mulf %117, %2 : vector<16x8x80xf32>
    %119 = arith.addf %118, %5 : vector<16x8x80xf32>
    %120 = vector.shape_cast %119 : vector<16x8x80xf32> to vector<128x80xf32>
    %121 = arith.truncf %120 : vector<128x80xf32> to vector<128x80xbf16>
    %cst_44 = arith.constant dense<0.000000e+00> : vector<128x384xf32>
    %122 = tpu.matmul %121, %7, %cst_44 {dimension_numbers = #tpu.dot_dimension_numbers<[1], [0], [0], [1], [0, 0, 1, 1], [], []>} : vector<128x80xbf16>, vector<80x384xbf16>, vector<128x384xf32> -> vector<128x384xf32>
    %123 = vector.shape_cast %10 : vector<384xf32> to vector<1x384xf32>
    %124 = vector.broadcast %123 : vector<1x384xf32> to vector<128x384xf32>
    %125 = arith.addf %122, %124 : vector<128x384xf32>
    %cst_45 = arith.constant 0.000000e+00 : f32
    %126 = vector.broadcast %cst_45 : f32 to vector<128x384xf32>
    %127 = arith.cmpf oge, %125, %126 : vector<128x384xf32>
    %cst_46 = arith.constant 0.00999999977 : f32
    %128 = vector.broadcast %cst_46 : f32 to vector<128x384xf32>
    %129 = arith.mulf %128, %125 : vector<128x384xf32>
    %130 = arith.select %127, %125, %129 : vector<128x384xi1>, vector<128x384xf32>
    %131 = arith.truncf %130 : vector<128x384xf32> to vector<128x384xbf16>
    %cst_47 = arith.constant dense<0.000000e+00> : vector<128x80xf32>
    %132 = tpu.matmul %131, %8, %cst_47 {dimension_numbers = #tpu.dot_dimension_numbers<[1], [0], [0], [1], [0, 0, 1, 1], [], []>} : vector<128x384xbf16>, vector<384x80xbf16>, vector<128x80xf32> -> vector<128x80xf32>
    %133 = vector.shape_cast %12 : vector<80xf32> to vector<1x80xf32>
    %134 = vector.broadcast %133 : vector<1x80xf32> to vector<128x80xf32>
    %135 = arith.addf %132, %134 : vector<128x80xf32>
    %136 = vector.shape_cast %135 : vector<128x80xf32> to vector<16x8x80xf32>
    %137 = arith.addf %136, %119 : vector<16x8x80xf32>
    %cst_48 = arith.constant dense<0.000000e+00> : vector<16x8xf32>
    %138 = vector.multi_reduction <add>, %137, %cst_48 [2] : vector<16x8x80xf32> to vector<16x8xf32>
    %139 = vector.shape_cast %138 : vector<16x8xf32> to vector<16x8x1xf32>
    %cst_49 = arith.constant 8.000000e+01 : f32
    %140 = vector.broadcast %cst_49 : f32 to vector<16x8x1xf32>
    %141 = arith.divf %139, %140 : vector<16x8x1xf32>
    %142 = vector.broadcast %141 : vector<16x8x1xf32> to vector<16x8x80xf32>
    %143 = arith.subf %137, %142 : vector<16x8x80xf32>
    %144 = arith.mulf %143, %143 : vector<16x8x80xf32>
    %cst_50 = arith.constant dense<0.000000e+00> : vector<16x8xf32>
    %145 = vector.multi_reduction <add>, %144, %cst_50 [2] : vector<16x8x80xf32> to vector<16x8xf32>
    %146 = vector.shape_cast %145 : vector<16x8xf32> to vector<16x8x1xf32>
    %cst_51 = arith.constant 8.000000e+01 : f32
    %147 = vector.broadcast %cst_51 : f32 to vector<16x8x1xf32>
    %148 = arith.divf %146, %147 : vector<16x8x1xf32>
    %149 = vector.broadcast %141 : vector<16x8x1xf32> to vector<16x8x80xf32>
    %150 = arith.subf %137, %149 : vector<16x8x80xf32>
    %cst_52 = arith.constant 9.99999974E-6 : f32
    %151 = vector.broadcast %cst_52 : f32 to vector<16x8x1xf32>
    %152 = arith.addf %148, %151 : vector<16x8x1xf32>
    %153 = math.rsqrt %152 : vector<16x8x1xf32>
    %154 = vector.broadcast %153 : vector<16x8x1xf32> to vector<16x8x80xf32>
    %155 = arith.mulf %150, %154 : vector<16x8x80xf32>
    %156 = arith.mulf %155, %2 : vector<16x8x80xf32>
    %157 = arith.addf %156, %5 : vector<16x8x80xf32>
    %158 = vector.extract_strided_slice %157 {offsets = [0, 0, 0], sizes = [8, 8, 80], strides = [1, 1, 1]} : vector<16x8x80xf32> to vector<8x8x80xf32>
    %cst_53 = arith.constant dense<0.000000e+00> : vector<8x80xf32>
    %159 = vector.multi_reduction <add>, %158, %cst_53 [0] : vector<8x8x80xf32> to vector<8x80xf32>
    %cst_54 = arith.constant 1.250000e-01 : f32
    %160 = vector.broadcast %cst_54 : f32 to vector<8x80xf32>
    %161 = arith.mulf %159, %160 : vector<8x80xf32>
    %c0_55 = arith.constant 0 : index
    %c0_56 = arith.constant 0 : index
    %c0_57 = arith.constant 0 : index
    %162 = vector.load %arg9[%c0_55, %c0_56, %c0_57] : memref<2x8x80xf32, #tpu.memory_space<vmem>>, vector<1x8x80xf32>
    %163 = vector.shape_cast %162 : vector<1x8x80xf32> to vector<8x80xf32>
    %164 = vector.shape_cast %161 : vector<8x80xf32> to vector<1x8x80xf32>
    tpu.vector_store %arg9[%c0_55, %c0_56, %c0_57], %164 {strides = array<i32>} : memref<2x8x80xf32, #tpu.memory_space<vmem>>, vector<1x8x80xf32>,
    %165 = vector.extract_strided_slice %157 {offsets = [8, 0, 0], sizes = [8, 8, 80], strides = [1, 1, 1]} : vector<16x8x80xf32> to vector<8x8x80xf32>
    %cst_58 = arith.constant dense<0.000000e+00> : vector<8x80xf32>
    %166 = vector.multi_reduction <add>, %165, %cst_58 [0] : vector<8x8x80xf32> to vector<8x80xf32>
    %cst_59 = arith.constant 1.250000e-01 : f32
    %167 = vector.broadcast %cst_59 : f32 to vector<8x80xf32>
    %168 = arith.mulf %166, %167 : vector<8x80xf32>
    %c1 = arith.constant 1 : index
    %c0_60 = arith.constant 0 : index
    %c0_61 = arith.constant 0 : index
    %169 = vector.load %arg9[%c1, %c0_60, %c0_61] : memref<2x8x80xf32, #tpu.memory_space<vmem>>, vector<1x8x80xf32>
    %170 = vector.shape_cast %169 : vector<1x8x80xf32> to vector<8x80xf32>
    %171 = vector.shape_cast %168 : vector<8x80xf32> to vector<1x8x80xf32>
    tpu.vector_store %arg9[%c1, %c0_60, %c0_61], %171 {strides = array<i32>} : memref<2x8x80xf32, #tpu.memory_space<vmem>>, vector<1x8x80xf32>,
    return
  }
  func.func @transform_0(%arg0: i32) -> (i32, i32, i32) {
    %c0_i32 = arith.constant 0 : i32
    %c0_i32_0 = arith.constant 0 : i32
    %c0_i32_1 = arith.constant 0 : i32
    return %arg0, %c0_i32, %c0_i32_0 : i32, i32, i32
  }
  func.func @transform_1(%arg0: i32) -> (i32, i32, i32) {
    %c0_i32 = arith.constant 0 : i32
    %c0_i32_0 = arith.constant 0 : i32
    %c0_i32_1 = arith.constant 0 : i32
    %c0_i32_2 = arith.constant 0 : i32
    return %c0_i32, %c0_i32_0, %c0_i32_1 : i32, i32, i32
  }
  func.func @transform_2(%arg0: i32) -> (i32, i32) {
    %c0_i32 = arith.constant 0 : i32
    %c0_i32_0 = arith.constant 0 : i32
    %c0_i32_1 = arith.constant 0 : i32
    return %c0_i32, %c0_i32_0 : i32, i32
  }
  func.func @transform_3(%arg0: i32) -> (i32, i32) {
    %c0_i32 = arith.constant 0 : i32
    %c0_i32_0 = arith.constant 0 : i32
    %c0_i32_1 = arith.constant 0 : i32
    return %c0_i32, %c0_i32_0 : i32, i32
  }
  func.func @transform_4(%arg0: i32) -> (i32, i32) {
    %c0_i32 = arith.constant 0 : i32
    %c0_i32_0 = arith.constant 0 : i32
    %c0_i32_1 = arith.constant 0 : i32
    return %c0_i32, %c0_i32_0 : i32, i32
  }
  func.func @transform_5(%arg0: i32) -> (i32, i32) {
    %c0_i32 = arith.constant 0 : i32
    %c0_i32_0 = arith.constant 0 : i32
    %c0_i32_1 = arith.constant 0 : i32
    return %c0_i32, %c0_i32_0 : i32, i32
  }
  func.func @transform_6(%arg0: i32) -> (i32, i32) {
    %c0_i32 = arith.constant 0 : i32
    %c0_i32_0 = arith.constant 0 : i32
    %c0_i32_1 = arith.constant 0 : i32
    return %c0_i32, %c0_i32_0 : i32, i32
  }
  func.func @transform_7(%arg0: i32) -> (i32, i32) {
    %c0_i32 = arith.constant 0 : i32
    %c0_i32_0 = arith.constant 0 : i32
    %c0_i32_1 = arith.constant 0 : i32
    return %c0_i32, %c0_i32_0 : i32, i32
  }
  func.func @transform_8(%arg0: i32) -> (i32, i32, i32) {
    %c0_i32 = arith.constant 0 : i32
    %c0_i32_0 = arith.constant 0 : i32
    %c0_i32_1 = arith.constant 0 : i32
    return %arg0, %c0_i32, %c0_i32_0 : i32, i32, i32
  }
}

</mosaic_0001>

<bundles_post_ra>
// kernel: tpu_custom_call.1
= control target key start
LH: loop header
LB: loop body
LE: loop exit
PB: predicated region body
PF: predicated region fallthrough
CT: control target
= control target key end

     0   :  { %vm147_vm0 = vcmask 654336   ;;  %s11245_s0 = inlined_call_operand.vmem [shape: f32[16,8,80], index: 0, kind: input, shape index: {}]   ;;  %s11246_s1 = inlined_call_operand.vmem [shape: f32[16,8,8], index: 1, kind: input, shape index: {}]   ;;  %s11247_s2 = inlined_call_operand.vmem [shape: f32[1,80], index: 2, kind: input, shape index: {}]   ;;  %s11248_s3 = inlined_call_operand.vmem [shape: f32[1,80], index: 3, kind: input, shape index: {}]   ;;  %s11249_s4 = inlined_call_operand.vmem [shape: bf16[80,384], index: 4, kind: input, shape index: {}]   ;;  %s11250_s5 = inlined_call_operand.vmem [shape: f32[1,384], index: 5, kind: input, shape index: {}]   ;;  %s11251_s6 = inlined_call_operand.vmem [shape: bf16[384,80], index: 6, kind: input, shape index: {}]   ;;  %s11252_s7 = inlined_call_operand.vmem [shape: f32[1,80], index: 7, kind: input, shape index: {}]   ;;  %s11253_s8 = inlined_call_operand.hbm [shape: f32[2,8,80], index: 8, kind: output, shape index: {}]  }
   0x1   :  { %v131_v0 = vld [vmem:[%s11245_s0] sm:$0xff]  ;;  %v133_v1 = vld [vmem:[%s11245_s0 + $0x10] sm:$0xff]  ;;  %v132_v2 = vld [vmem:[%s11245_s0 + $0x8] sm:$0xff] }
   0x2   :  { %v148_v3 = vsel %vm147_vm0, %v131_v0, 0.0  ;;  %v154_v4 = vsel %vm147_vm0, %v133_v1, 0.0  ;;  %v134_v5 = vld [vmem:[%s11245_s0 + $0x18] sm:$0xff]  ;;  %v8875_v6 = vld [vmem:[%s11245_s0 + $0x20] sm:$0xff]  ;;  %v8880_v7 = vld [vmem:[%s11245_s0 + $0x28] sm:$0xff]  ;;  %v151_v10 = vsel %vm147_vm0, %v132_v2, 0.0 }
   0x3   :  { %149 = vadd.xlane.f32.xlu0 %v148_v3  ;;  %155 = vadd.xlane.f32.xlu1 %v154_v4  ;;  %v8885_v8 = vld [vmem:[%s11245_s0 + $0x30] sm:$0xff]  ;;  %v8890_v9 = vld [vmem:[%s11245_s0 + $0x38] sm:$0xff]  ;;  %v157_v11 = vsel %vm147_vm0, %v134_v5, 0.0  ;;  %v8897_v12 = vld [vmem:[%s11245_s0 + $0x40] sm:$0xff]  ;;  %v160_v15 = vsel %vm147_vm0, %v8875_v6, 0.0  ;;  %v163_v19 = vsel %vm147_vm0, %v8880_v7, 0.0 }
   0x4   :  { %v8902_v13 = vld [vmem:[%s11245_s0 + $0x48] sm:$0xff]  ;;  %v8907_v14 = vld [vmem:[%s11245_s0 + $0x50] sm:$0xff]  ;;  %v8914_v16 = vld [vmem:[%s11245_s0 + $0x58] sm:$0xff]  ;;  %v166_v20 = vsel %vm147_vm0, %v8885_v8, 0.0  ;;  %v169_v21 = vsel %vm147_vm0, %v8890_v9, 0.0  ;;  %v172_v24 = vsel %vm147_vm0, %v8897_v12, 0.0 }
   0x5   :  { %v8919_v17 = vld [vmem:[%s11245_s0 + $0x60] sm:$0xff]  ;;  %v8924_v18 = vld [vmem:[%s11245_s0 + $0x68] sm:$0xff]  ;;  %v8935_v22 = vld [vmem:[%s11245_s0 + $0x70] sm:$0xff]  ;;  %v175_v25 = vsel %vm147_vm0, %v8902_v13, 0.0  ;;  %v178_v26 = vsel %vm147_vm0, %v8907_v14, 0.0  ;;  %v181_v27 = vsel %vm147_vm0, %v8914_v16, 0.0 }
   0x6   :  { %v8940_v23 = vld [vmem:[%s11245_s0 + $0x78] sm:$0xff]  ;;  %v184_v28 = vsel %vm147_vm0, %v8919_v17, 0.0  ;;  %v187_v29 = vsel %vm147_vm0, %v8924_v18, 0.0  ;;  %v190_v30 = vsel %vm147_vm0, %v8935_v22, 0.0 }
   0x7   :  { %152 = vadd.xlane.f32.xlu0 %v151_v10  ;;  %158 = vadd.xlane.f32.xlu1 %v157_v11  ;;  %v193_v31 = vsel %vm147_vm0, %v8940_v23, 0.0 }
   0xb   :  { %161 = vadd.xlane.f32.xlu0 %v160_v15  ;;  %164 = vadd.xlane.f32.xlu1 %v163_v19 }
   0xf   :  { %167 = vadd.xlane.f32.xlu0 %v166_v20  ;;  %170 = vadd.xlane.f32.xlu1 %v169_v21 }
  0x13   :  { %173 = vadd.xlane.f32.xlu0 %v172_v24  ;;  %176 = vadd.xlane.f32.xlu1 %v175_v25 }
  0x17   :  { %179 = vadd.xlane.f32.xlu0 %v178_v26  ;;  %182 = vadd.xlane.f32.xlu1 %v181_v27 }
  0x1b   :  { %185 = vadd.xlane.f32.xlu0 %v184_v28  ;;  %188 = vadd.xlane.f32.xlu1 %v187_v29 }
  0x1c   :  { %13 = vsyncpa [#allocation3], 0  ;;  %vm8808_vm1 = vmmov 0   ;;  %vm1573_vm2 = vcmask 64512  }
  0x1f   :  { %191 = vadd.xlane.f32.xlu0 %v190_v30  ;;  %194 = vadd.xlane.f32.xlu1 %v193_v31 }
  0x8c   :  { %v150_v32 = vpop.xlane.xlu0 %149  ;;  %v156_v33 = vpop.xlane.xlu1 %155 }
  0x8d   :  { %v197_v34 = vmul.f32 0.0125, %v150_v32  ;;  %v199_v35 = vmul.f32 0.0125, %v156_v33 }
  0x8f   :  { %v8958_v36 = vsub.f32 %v131_v0, %v197_v34  ;;  %v8960_v37 = vsub.f32 %v133_v1, %v199_v35 }
  0x90   :  { %v153_v38 = vpop.xlane.xlu0 %152  ;;  %v159_v39 = vpop.xlane.xlu1 %158 }
  0x91   :  { %v198_v40 = vmul.f32 0.0125, %v153_v38  ;;  %v200_v41 = vmul.f32 0.0125, %v159_v39  ;;  %v229_v42 = vmul.f32 %v8958_v36, %v8958_v36  ;;  %v231_v43 = vmul.f32 %v8960_v37, %v8960_v37 }
  0x93   :  { %v8966_v44 = vsub.f32 %v132_v2, %v198_v40  ;;  %v8968_v45 = vsub.f32 %v134_v5, %v200_v41  ;;  %v245_v46 = vsel %vm147_vm0, %v229_v42, 0.0  ;;  %v251_v49 = vsel %vm147_vm0, %v231_v43, 0.0 }
  0x94   :  { %246 = vadd.xlane.f32.xlu0 %v245_v46  ;;  %v162_v47 = vpop.xlane.xlu0 %161  ;;  %v165_v48 = vpop.xlane.xlu1 %164 }
  0x95   :  { %v201_v50 = vmul.f32 0.0125, %v162_v47  ;;  %v202_v51 = vmul.f32 0.0125, %v165_v48  ;;  %v230_v52 = vmul.f32 %v8966_v44, %v8966_v44  ;;  %v232_v53 = vmul.f32 %v8968_v45, %v8968_v45 }
  0x97   :  { %v8977_v54 = vsub.f32 %v8875_v6, %v201_v50  ;;  %v8980_v55 = vsub.f32 %v8880_v7, %v202_v51  ;;  %v248_v56 = vsel %vm147_vm0, %v230_v52, 0.0  ;;  %v254_v59 = vsel %vm147_vm0, %v232_v53, 0.0 }
  0x98   :  { %252 = vadd.xlane.f32.xlu0 %v251_v49  ;;  %249 = vadd.xlane.f32.xlu1 %v248_v56  ;;  %v168_v57 = vpop.xlane.xlu0 %167  ;;  %v171_v58 = vpop.xlane.xlu1 %170 }
  0x99   :  { %v203_v60 = vmul.f32 0.0125, %v168_v57  ;;  %v204_v61 = vmul.f32 0.0125, %v171_v58  ;;  %v233_v62 = vmul.f32 %v8977_v54, %v8977_v54  ;;  %v234_v63 = vmul.f32 %v8980_v55, %v8980_v55 }
  0x9b   :  { %v8989_v0 = vsub.f32 %v8885_v8, %v203_v60  ;;  %v8992_v1 = vsub.f32 %v8890_v9, %v204_v61  ;;  %v257_v2 = vsel %vm147_vm0, %v233_v62, 0.0  ;;  %v260_v5 = vsel %vm147_vm0, %v234_v63, 0.0 }
  0x9c   :  { %255 = vadd.xlane.f32.xlu1 %v254_v59  ;;  %258 = vadd.xlane.f32.xlu0 %v257_v2  ;;  %v174_v3 = vpop.xlane.xlu0 %173  ;;  %v177_v4 = vpop.xlane.xlu1 %176 }
  0x9d   :  { %v205_v6 = vmul.f32 0.0125, %v174_v3  ;;  %v206_v7 = vmul.f32 0.0125, %v177_v4  ;;  %v235_v10 = vmul.f32 %v8989_v0, %v8989_v0  ;;  %v236_v8 = vmul.f32 %v8992_v1, %v8992_v1 }
  0x9f   :  { %v9001_v11 = vsub.f32 %v8897_v12, %v205_v6  ;;  %v9004_v9 = vsub.f32 %v8902_v13, %v206_v7  ;;  %v263_v15 = vsel %vm147_vm0, %v235_v10, 0.0  ;;  %v266_v21 = vsel %vm147_vm0, %v236_v8, 0.0 }
  0xa0   :  { %261 = vadd.xlane.f32.xlu1 %v260_v5  ;;  %264 = vadd.xlane.f32.xlu0 %v263_v15  ;;  %v180_v19 = vpop.xlane.xlu0 %179  ;;  %v183_v20 = vpop.xlane.xlu1 %182 }
  0xa1   :  { %v207_v24 = vmul.f32 0.0125, %v180_v19  ;;  %v208_v25 = vmul.f32 0.0125, %v183_v20  ;;  %v237_v26 = vmul.f32 %v9001_v11, %v9001_v11  ;;  %v238_v12 = vmul.f32 %v9004_v9, %v9004_v9 }
  0xa3   :  { %v9013_v27 = vsub.f32 %v8907_v14, %v207_v24  ;;  %v9016_v13 = vsub.f32 %v8914_v16, %v208_v25  ;;  %v269_v28 = vsel %vm147_vm0, %v237_v26, 0.0  ;;  %v272_v31 = vsel %vm147_vm0, %v238_v12, 0.0 }
  0xa4   :  { %267 = vadd.xlane.f32.xlu1 %v266_v21  ;;  %270 = vadd.xlane.f32.xlu0 %v269_v28  ;;  %v186_v29 = vpop.xlane.xlu0 %185  ;;  %v189_v30 = vpop.xlane.xlu1 %188 }
  0xa5   :  { %v209_v32 = vmul.f32 0.0125, %v186_v29  ;;  %v210_v33 = vmul.f32 0.0125, %v189_v30  ;;  %v239_v34 = vmul.f32 %v9013_v27, %v9013_v27  ;;  %v240_v14 = vmul.f32 %v9016_v13, %v9016_v13  ;;  %v9059_v29 = vld [vmem:[%s11247_s2] ss:$0 sm:$0xff] }
  0xa7   :  { %v9025_v35 = vsub.f32 %v8919_v17, %v209_v32  ;;  %v9028_v16 = vsub.f32 %v8924_v18, %v210_v33  ;;  %v275_v38 = vsel %vm147_vm0, %v239_v34, 0.0  ;;  %v278_v41 = vsel %vm147_vm0, %v240_v14, 0.0  ;;  %v9065_v14 = vld [vmem:[%s11248_s3] ss:$0 sm:$0xff] }
  0xa8   :  { %273 = vadd.xlane.f32.xlu1 %v272_v31  ;;  %276 = vadd.xlane.f32.xlu0 %v275_v38  ;;  %v192_v39 = vpop.xlane.xlu0 %191  ;;  %v195_v40 = vpop.xlane.xlu1 %194 }
  0xa9   :  { %v211_v42 = vmul.f32 0.0125, %v192_v39  ;;  %v212_v43 = vmul.f32 0.0125, %v195_v40  ;;  %v241_v46 = vmul.f32 %v9025_v35, %v9025_v35  ;;  %v242_v17 = vmul.f32 %v9028_v16, %v9028_v16 }
  0xab   :  { %v9037_v47 = vsub.f32 %v8935_v22, %v211_v42  ;;  %v9040_v18 = vsub.f32 %v8940_v23, %v212_v43  ;;  %v281_v48 = vsel %vm147_vm0, %v241_v46, 0.0  ;;  %v284_v49 = vsel %vm147_vm0, %v242_v17, 0.0 }
  0xac   :  { %279 = vadd.xlane.f32.xlu1 %v278_v41  ;;  %282 = vadd.xlane.f32.xlu0 %v281_v48  ;;  %v11256_v23 = vmov 0.0  }
  0xad   :  { %v243_v50 = vmul.f32 %v9037_v47, %v9037_v47  ;;  %v244_v51 = vmul.f32 %v9040_v18, %v9040_v18  ;;  %8075 = vmatprep.subr.mxu0 %v11256_v23  ;;  %8080 = vmatprep.subr.mxu1 %v11256_v23 }
  0xae   :  { %8077 = vmatprep.mubr.msk.f32.mxu0 %vm8808_vm1, %v11256_v23  ;;  %8082 = vmatprep.mubr.msk.f32.mxu1 %vm8808_vm1, %v11256_v23 }
  0xaf   :  { %v287_v52 = vsel %vm147_vm0, %v243_v50, 0.0  ;;  %v290_v22 = vsel %vm147_vm0, %v244_v51, 0.0 }
  0xb0   :  { %285 = vadd.xlane.f32.xlu1 %v284_v49  ;;  %288 = vadd.xlane.f32.xlu0 %v287_v52 }
  0xb4   :  { %291 = vadd.xlane.f32.xlu1 %v290_v22 }
 0x11d   :  { %v247_v53 = vpop.xlane.xlu0 %246 }
 0x11e   :  { %v293_v56 = vmul.f32 0.0125, %v247_v53 }
 0x120   :  { %v309_v57 = vadd.f32 1e-05, %v293_v56 }
 0x121   :  { %v250_v58 = vpop.xlane.xlu1 %249  ;;  %v253_v59 = vpop.xlane.xlu0 %252 }
 0x122   :  { %8561 = vrsqrt.f32 %v309_v57  ;;  %v294_v60 = vmul.f32 0.0125, %v250_v58  ;;  %v295_v61 = vmul.f32 0.0125, %v253_v59 }
 0x124   :  { %v310_v62 = vadd.f32 1e-05, %v294_v60  ;;  %v311_v63 = vadd.f32 1e-05, %v295_v61 }
 0x125   :  { %v256_v2 = vpop.xlane.xlu1 %255  ;;  %v259_v3 = vpop.xlane.xlu0 %258 }
 0x126   :  { %8563 = vrsqrt.f32 %v310_v62  ;;  %v296_v4 = vmul.f32 0.0125, %v256_v2  ;;  %v297_v5 = vmul.f32 0.0125, %v259_v3 }
 0x127   :  { %8565 = vrsqrt.f32 %v311_v63 }
 0x128   :  { %v312_v6 = vadd.f32 1e-05, %v296_v4  ;;  %v313_v7 = vadd.f32 1e-05, %v297_v5 }
 0x129   :  { %v262_v10 = vpop.xlane.xlu1 %261  ;;  %v265_v8 = vpop.xlane.xlu0 %264 }
 0x12a   :  { %8567 = vrsqrt.f32 %v312_v6  ;;  %v298_v15 = vmul.f32 0.0125, %v262_v10  ;;  %v299_v19 = vmul.f32 0.0125, %v265_v8 }
 0x12b   :  { %8569 = vrsqrt.f32 %v313_v7 }
 0x12c   :  { %v314_v20 = vadd.f32 1e-05, %v298_v15  ;;  %v315_v21 = vadd.f32 1e-05, %v299_v19 }
 0x12d   :  { %v268_v24 = vpop.xlane.xlu1 %267  ;;  %v271_v25 = vpop.xlane.xlu0 %270 }
 0x12e   :  { %8571 = vrsqrt.f32 %v314_v20  ;;  %v300_v26 = vmul.f32 0.0125, %v268_v24  ;;  %v301_v12 = vmul.f32 0.0125, %v271_v25 }
 0x12f   :  { %v8562_v28 = vpop.eup %8561  ;;  %8573 = vrsqrt.f32 %v315_v21 }
 0x130   :  { %v316_v30 = vadd.f32 1e-05, %v300_v26  ;;  %v317_v31 = vadd.f32 1e-05, %v301_v12  ;;  %v341_v32 = vmul.f32 %v8562_v28, %v8958_v36 }
 0x131   :  { %v274_v33 = vpop.xlane.xlu1 %273  ;;  %v277_v34 = vpop.xlane.xlu0 %276 }
 0x132   :  { %8575 = vrsqrt.f32 %v316_v30  ;;  %v302_v38 = vmul.f32 0.0125, %v274_v33  ;;  %v303_v39 = vmul.f32 0.0125, %v277_v34  ;;  %v357_v40 = vmul.f32 %v9059_v29, %v341_v32 }
 0x133   :  { %v8564_v41 = vpop.eup %8563  ;;  %8577 = vrsqrt.f32 %v317_v31 }
 0x134   :  { %v8566_v42 = vpop.eup %8565  ;;  %v318_v43 = vadd.f32 1e-05, %v302_v38  ;;  %v319_v46 = vadd.f32 1e-05, %v303_v39  ;;  %v9069_v17 = vadd.f32 %v9065_v14, %v357_v40  ;;  %v342_v36 = vmul.f32 %v8564_v41, %v8966_v44 }
 0x135   :  { %v280_v48 = vpop.xlane.xlu1 %279  ;;  %v283_v49 = vpop.xlane.xlu0 %282  ;;  %v343_v50 = vmul.f32 %v8566_v42, %v8960_v37 }
 0x136   :  { %8579 = vrsqrt.f32 %v318_v43  ;;  %v304_v51 = vmul.f32 0.0125, %v280_v48  ;;  %v305_v52 = vmul.f32 0.0125, %v283_v49  ;;  %8076 = vmatpush3.xpose.msk.msra.mxu0 %vm147_vm0, %v9069_v17  ;;  %v358_v22 = vmul.f32 %v9059_v29, %v342_v36 }
 0x137   :  { %v8568_v53 = vpop.eup %8567  ;;  %8581 = vrsqrt.f32 %v319_v46  ;;  %8085 = vmatprep.subr.mxu0 %v11256_v23  ;;  %v359_v56 = vmul.f32 %v9059_v29, %v343_v50 }
 0x138   :  { %v8570_v57 = vpop.eup %8569  ;;  %v320_v44 = vadd.f32 1e-05, %v304_v51  ;;  %v321_v58 = vadd.f32 1e-05, %v305_v52  ;;  %v9079_v59 = vadd.f32 %v9065_v14, %v358_v22  ;;  %v344_v37 = vmul.f32 %v8568_v53, %v8968_v45 }
 0x139   :  { %v286_v60 = vpop.xlane.xlu1 %285  ;;  %v289_v61 = vpop.xlane.xlu0 %288  ;;  %8078 = vmatmul.mubr.msk.f32.vlgmr.msra.gmra.mxu0 %vm147_vm0, %v9069_v17  ;;  %v9085_v62 = vadd.f32 %v9065_v14, %v359_v56  ;;  %v345_v63 = vmul.f32 %v8570_v57, %v8977_v54 }
 0x13a   :  { %8583 = vrsqrt.f32 %v320_v44  ;;  %v306_v2 = vmul.f32 0.0125, %v286_v60  ;;  %v307_v3 = vmul.f32 0.0125, %v289_v61  ;;  %8081 = vmatpush3.xpose.msk.msra.mxu1 %vm147_vm0, %v9079_v59  ;;  %8087 = vmatprep.mubr.msk.f32.mxu0 %vm8808_vm1, %v11256_v23  ;;  %v360_v45 = vmul.f32 %v9059_v29, %v344_v37 }
 0x13b   :  { %v8572_v4 = vpop.eup %8571  ;;  %8585 = vrsqrt.f32 %v321_v58  ;;  %8086 = vmatpush3.xpose.msk.msra.mxu0 %vm147_vm0, %v9085_v62  ;;  %8090 = vmatprep.subr.mxu1 %v11256_v23  ;;  %v361_v54 = vmul.f32 %v9059_v29, %v345_v63  ;;  %v46_v63 = vld [vmem:[%s11246_s1 + $0x8] sm:$0xff] }
 0x13c   :  { %v8574_v5 = vpop.eup %8573  ;;  %v322_v6 = vadd.f32 1e-05, %v306_v2  ;;  %v323_v7 = vadd.f32 1e-05, %v307_v3  ;;  %8095 = vmatprep.subr.mxu0 %v11256_v23  ;;  %v9099_v10 = vadd.f32 %v9065_v14, %v360_v45  ;;  %v346_v8 = vmul.f32 %v8572_v4, %v8980_v55  ;;  %v47_v2 = vld [vmem:[%s11246_s1 + $0x10] sm:$0xff] }
 0x13d   :  { %v292_v15 = vpop.xlane.xlu1 %291  ;;  %8083 = vmatmul.mubr.msk.f32.vlgmr.msra.gmra.mxu1 %vm147_vm0, %v9079_v59  ;;  %v9105_v19 = vadd.f32 %v9065_v14, %v361_v54  ;;  %v347_v20 = vmul.f32 %v8574_v5, %v8989_v0 }
 0x13e   :  { %8587 = vrsqrt.f32 %v322_v6  ;;  %v308_v21 = vmul.f32 0.0125, %v292_v15  ;;  %8088 = vmatmul.mubr.msk.f32.vlgmr.msra.gmra.mxu0 %vm147_vm0, %v9085_v62  ;;  %8091 = vmatpush3.xpose.msk.msra.mxu1 %vm147_vm0, %v9099_v10  ;;  %v362_v24 = vmul.f32 %v9059_v29, %v346_v8  ;;  %v48_v6 = vld [vmem:[%s11246_s1 + $0x18] sm:$0xff]  ;;  %v49_v8 = vld [vmem:[%s11246_s1 + $0x20] sm:$0xff] }
 0x13f   :  { %v8576_v55 = vpop.eup %8575  ;;  %8589 = vrsqrt.f32 %v323_v7  ;;  %8096 = vmatpush3.xpose.msk.msra.mxu0 %vm147_vm0, %v9105_v19  ;;  %8092 = vmatprep.mubr.msk.f32.mxu1 %vm8808_vm1, %v11256_v23  ;;  %v363_v0 = vmul.f32 %v9059_v29, %v347_v20 }
 0x140   :  { %v8578_v25 = vpop.eup %8577  ;;  %v324_v26 = vadd.f32 1e-05, %v308_v21  ;;  %8097 = vmatprep.mubr.msk.f32.mxu0 %vm8808_vm1, %v11256_v23  ;;  %8100 = vmatprep.subr.mxu1 %v11256_v23  ;;  %v9122_v12 = vadd.f32 %v9065_v14, %v362_v24  ;;  %v348_v28 = vmul.f32 %v8576_v55, %v8992_v1 }
 0x141   :  { %8093 = vmatmul.mubr.msk.f32.vlgmr.msra.gmra.mxu1 %vm147_vm0, %v9099_v10  ;;  %8105 = vmatprep.subr.mxu0 %v11256_v23  ;;  %v9129_v30 = vadd.f32 %v9065_v14, %v363_v0  ;;  %v349_v31 = vmul.f32 %v8578_v25, %v9001_v11  ;;  %v50_v0 = vld [vmem:[%s11246_s1 + $0x28] sm:$0xff] }
 0x142   :  { %8591 = vrsqrt.f32 %v324_v26  ;;  %8098 = vmatmul.mubr.msk.f32.vlgmr.msra.gmra.mxu0 %vm147_vm0, %v9105_v19  ;;  %8101 = vmatpush3.xpose.msk.msra.mxu1 %vm147_vm0, %v9122_v12  ;;  %v364_v32 = vmul.f32 %v9059_v29, %v348_v28  ;;  %v51_v26 = vld [vmem:[%s11246_s1 + $0x30] sm:$0xff] }
 0x143   :  { %v8580_v1 = vpop.eup %8579  ;;  %8106 = vmatpush3.xpose.msk.msra.mxu0 %vm147_vm0, %v9129_v30  ;;  %8102 = vmatprep.mubr.msk.f32.mxu1 %vm8808_vm1, %v11256_v23  ;;  %v365_v33 = vmul.f32 %v9059_v29, %v349_v31 }
 0x144   :  { %v8582_v34 = vpop.eup %8581  ;;  %8107 = vmatprep.mubr.msk.f32.mxu0 %vm8808_vm1, %v11256_v23  ;;  %8110 = vmatprep.subr.mxu1 %v11256_v23  ;;  %v9146_v11 = vadd.f32 %v9065_v14, %v364_v32  ;;  %v350_v38 = vmul.f32 %v8580_v1, %v9004_v9 }
 0x145   :  { %8103 = vmatmul.mubr.msk.f32.vlgmr.msra.gmra.mxu1 %vm147_vm0, %v9122_v12  ;;  %8115 = vmatprep.subr.mxu0 %v11256_v23  ;;  %v9153_v39 = vadd.f32 %v9065_v14, %v365_v33  ;;  %v351_v40 = vmul.f32 %v8582_v34, %v9013_v27  ;;  %v52_v34 = vld [vmem:[%s11246_s1 + $0x38] sm:$0xff] }
 0x146   :  { %8108 = vmatmul.mubr.msk.f32.vlgmr.msra.gmra.mxu0 %vm147_vm0, %v9129_v30  ;;  %8111 = vmatpush3.xpose.msk.msra.mxu1 %vm147_vm0, %v9146_v11  ;;  %v366_v41 = vmul.f32 %v9059_v29, %v350_v38 }
 0x147   :  { %v8584_v42 = vpop.eup %8583  ;;  %8116 = vmatpush3.xpose.msk.msra.mxu0 %vm147_vm0, %v9153_v39  ;;  %8112 = vmatprep.mubr.msk.f32.mxu1 %vm8808_vm1, %v11256_v23  ;;  %v367_v9 = vmul.f32 %v9059_v29, %v351_v40  ;;  %v53_v40 = vld [vmem:[%s11246_s1 + $0x40] sm:$0xff] }
 0x148   :  { %v8586_v43 = vpop.eup %8585  ;;  %8117 = vmatprep.mubr.msk.f32.mxu0 %vm8808_vm1, %v11256_v23  ;;  %8120 = vmatprep.subr.mxu1 %v11256_v23  ;;  %v9170_v27 = vadd.f32 %v9065_v14, %v366_v41  ;;  %v352_v46 = vmul.f32 %v8584_v42, %v9016_v13 }
 0x149   :  { %8113 = vmatmul.mubr.msk.f32.vlgmr.msra.gmra.mxu1 %vm147_vm0, %v9146_v11  ;;  %8125 = vmatprep.subr.mxu0 %v11256_v23  ;;  %v9177_v36 = vadd.f32 %v9065_v14, %v367_v9  ;;  %v353_v48 = vmul.f32 %v8586_v43, %v9025_v35 }
 0x14a   :  { %11265 = vst [vmem:[#allocation5_spill] sm:$0xff] %v9170_v27  ;;  %8118 = vmatmul.mubr.msk.f32.vlgmr.msra.gmra.mxu0 %vm147_vm0, %v9153_v39  ;;  %8121 = vmatpush3.xpose.msk.msra.mxu1 %vm147_vm0, %v9170_v27  ;;  %v368_v49 = vmul.f32 %v9059_v29, %v352_v46 }
 0x14b   :  { %11266 = vst [vmem:[#allocation6_spill] sm:$0xff] %v9177_v36  ;;  %v8588_v50 = vpop.eup %8587  ;;  %8126 = vmatpush3.xpose.msk.msra.mxu0 %vm147_vm0, %v9177_v36  ;;  %8122 = vmatprep.mubr.msk.f32.mxu1 %vm8808_vm1, %v11256_v23  ;;  %v369_v13 = vmul.f32 %v9059_v29, %v353_v48  ;;  %v54_v48 = vld [vmem:[%s11246_s1 + $0x48] sm:$0xff] }
 0x14c   :  { %v8590_v51 = vpop.eup %8589  ;;  %8127 = vmatprep.mubr.msk.f32.mxu0 %vm8808_vm1, %v11256_v23  ;;  %8130 = vmatprep.subr.mxu1 %v11256_v23  ;;  %v9194_v35 = vadd.f32 %v9065_v14, %v368_v49  ;;  %v354_v52 = vmul.f32 %v8588_v50, %v9028_v16  ;;  %v55_v50 = vld [vmem:[%s11246_s1 + $0x50] sm:$0xff] }
 0x14d   :  { %8123 = vmatmul.mubr.msk.f32.vlgmr.msra.gmra.mxu1 %vm147_vm0, %v9170_v27  ;;  %8135 = vmatprep.subr.mxu0 %v11256_v23  ;;  %v9201_v22 = vadd.f32 %v9065_v14, %v369_v13  ;;  %v355_v53 = vmul.f32 %v8590_v51, %v9037_v47 }
 0x14e   :  { %11267 = vst [vmem:[#allocation7_spill] sm:$0xff] %v9194_v35  ;;  %8128 = vmatmul.mubr.msk.f32.vlgmr.msra.gmra.mxu0 %vm147_vm0, %v9177_v36  ;;  %8131 = vmatpush3.xpose.msk.msra.mxu1 %vm147_vm0, %v9194_v35  ;;  %v370_v56 = vmul.f32 %v9059_v29, %v354_v52 }
 0x14f   :  { %11268 = vst [vmem:[#allocation8_spill] sm:$0xff] %v9201_v22  ;;  %v8592_v57 = vpop.eup %8591  ;;  %8136 = vmatpush3.xpose.msk.msra.mxu0 %vm147_vm0, %v9201_v22  ;;  %8132 = vmatprep.mubr.msk.f32.mxu1 %vm8808_vm1, %v11256_v23  ;;  %v371_v16 = vmul.f32 %v9059_v29, %v355_v53 }
 0x150   :  { %8137 = vmatprep.mubr.msk.f32.mxu0 %vm8808_vm1, %v11256_v23  ;;  %8140 = vmatprep.subr.mxu1 %v11256_v23  ;;  %v9218_v47 = vadd.f32 %v9065_v14, %v370_v56  ;;  %v356_v44 = vmul.f32 %v8592_v57, %v9040_v18  ;;  %v56_v57 = vld [vmem:[%s11246_s1 + $0x58] sm:$0xff] }
 0x151   :  { %8133 = vmatmul.mubr.msk.f32.vlgmr.msra.gmra.mxu1 %vm147_vm0, %v9194_v35  ;;  %8145 = vmatprep.subr.mxu0 %v11256_v23  ;;  %v9225_v58 = vadd.f32 %v9065_v14, %v371_v16 }
 0x152   :  { %11269 = vst [vmem:[#allocation9_spill] sm:$0xff] %v9218_v47  ;;  %8138 = vmatmul.mubr.msk.f32.vlgmr.msra.gmra.mxu0 %vm147_vm0, %v9201_v22  ;;  %8141 = vmatpush3.xpose.msk.msra.mxu1 %vm147_vm0, %v9218_v47  ;;  %v372_v37 = vmul.f32 %v9059_v29, %v356_v44  ;;  %v45_v29 = vld [vmem:[%s11246_s1] sm:$0xff] }
 0x153   :  { %11270 = vst [vmem:[#allocation10_spill] sm:$0xff] %v9225_v58  ;;  %8146 = vmatpush3.xpose.msk.msra.mxu0 %vm147_vm0, %v9225_v58  ;;  %8142 = vmatprep.mubr.msk.f32.mxu1 %vm8808_vm1, %v11256_v23  ;;  %v57_v44 = vld [vmem:[%s11246_s1 + $0x60] sm:$0xff] }
 0x154   :  { %8147 = vmatprep.mubr.msk.f32.mxu0 %vm8808_vm1, %v11256_v23  ;;  %8150 = vmatprep.subr.mxu1 %v11256_v23  ;;  %v9240_v18 = vadd.f32 %v9065_v14, %v372_v37 }
 0x155   :  { %8143 = vmatmul.mubr.msk.f32.vlgmr.msra.gmra.mxu1 %vm147_vm0, %v9218_v47  ;;  %8155 = vmatprep.subr.mxu0 %v11256_v23 }
 0x156   :  { %11271 = vst [vmem:[#allocation11_spill] sm:$0xff] %v9240_v18  ;;  %8148 = vmatmul.mubr.msk.f32.vlgmr.msra.gmra.mxu0 %vm147_vm0, %v9225_v58  ;;  %8151 = vmatpush3.xpose.msk.msra.mxu1 %vm147_vm0, %v9240_v18 }
 0x157   :  { %8156 = vmatpush3.msra.mxu0 %v9069_v17  ;;  %8152 = vmatprep.mubr.msk.f32.mxu1 %vm8808_vm1, %v11256_v23 }
 0x158   :  { %8160 = vmatprep.subr.mxu1 %v11256_v23  ;;  %8157 = vmatprep.mubr.msk.f32.mxu0 %vm8808_vm1, %v11256_v23 }
 0x159   :  { %8153 = vmatmul.mubr.msk.f32.vlgmr.msra.gmra.mxu1 %vm147_vm0, %v9240_v18  ;;  %8165 = vmatprep.subr.mxu0 %v11256_v23 }
 0x15a   :  { %8161 = vmatpush3.msra.mxu1 %v9079_v59  ;;  %8162 = vmatprep.mubr.msk.f32.mxu1 %vm8808_vm1, %v11256_v23 }
 0x15b   :  { %8170 = vmatprep.subr.mxu1 %v11256_v23 }
 0x1f9   :  { %v458_v14 = vpop.f32.mrf.mxu0 }
 0x1fa   :  { %v1557_v60 = vmul.f32 %v458_v14, %v45_v29 }
 0x1fb   :  { %v8079_v61 = vpop.f32.mrf.mxu0 }
 0x1fc   :  { %8158 = vmatmul.mubr.msk.f32.vlgmr.msra.gmra.mxu0 %vm1573_vm2, %v1557_v60 }
 0x1fd   :  { %8166 = vmatpush3.msra.mxu0 %v9085_v62  ;;  %v531_v3 = vpop.f32.mrf.mxu1  ;;  %8167 = vmatprep.mubr.msk.f32.mxu0 %vm8808_vm1, %v11256_v23 }
 0x1fe   :  { %v1558_v45 = vmul.f32 %v531_v3, %v46_v63  ;;  %v604_v4 = vpop.f32.mrf.mxu0  ;;  %8175 = vmatprep.subr.mxu0 %v11256_v23  ;;  %v58_v63 = vld [vmem:[%s11246_s1 + $0x68] sm:$0xff]  ;;  %v59_v3 = vld [vmem:[%s11246_s1 + $0x70] sm:$0xff] }
 0x1ff   :  { %v1559_v54 = vmul.f32 %v604_v4, %v47_v2  ;;  %v8084_v5 = vpop.f32.mrf.mxu1 }
 0x200   :  { %v8089_v7 = vpop.f32.mrf.mxu0  ;;  %8163 = vmatmul.mubr.msk.f32.vlgmr.msra.gmra.mxu1 %vm1573_vm2, %v1558_v45 }
 0x201   :  { %8168 = vmatmul.mubr.msk.f32.vlgmr.msra.gmra.mxu0 %vm1573_vm2, %v1559_v54  ;;  %8171 = vmatpush3.msra.mxu1 %v9099_v10  ;;  %v677_v15 = vpop.f32.mrf.mxu1  ;;  %v60_v7 = vld [vmem:[%s11246_s1 + $0x78] sm:$0xff] }
 0x202   :  { %8176 = vmatpush3.msra.mxu0 %v9105_v19  ;;  %v1560_v20 = vmul.f32 %v677_v15, %v48_v6  ;;  %v750_v21 = vpop.f32.mrf.mxu0  ;;  %8172 = vmatprep.mubr.msk.f32.mxu1 %vm8808_vm1, %v11256_v23 }
 0x203   :  { %v1561_v24 = vmul.f32 %v750_v21, %v49_v8  ;;  %v8094_v55 = vpop.f32.mrf.mxu1  ;;  %8177 = vmatprep.mubr.msk.f32.mxu0 %vm8808_vm1, %v11256_v23  ;;  %8180 = vmatprep.subr.mxu1 %v11256_v23 }
 0x204   :  { %v8099_v25 = vpop.f32.mrf.mxu0  ;;  %8185 = vmatprep.subr.mxu0 %v11256_v23  ;;  %8173 = vmatmul.mubr.msk.f32.vlgmr.msra.gmra.mxu1 %vm1573_vm2, %v1560_v20 }
 0x205   :  { %8178 = vmatmul.mubr.msk.f32.vlgmr.msra.gmra.mxu0 %vm1573_vm2, %v1561_v24  ;;  %8181 = vmatpush3.msra.mxu1 %v9122_v12  ;;  %v823_v28 = vpop.f32.mrf.mxu1 }
 0x206   :  { %8186 = vmatpush3.msra.mxu0 %v9129_v30  ;;  %v1562_v31 = vmul.f32 %v823_v28, %v50_v0  ;;  %v896_v32 = vpop.f32.mrf.mxu0  ;;  %8182 = vmatprep.mubr.msk.f32.mxu1 %vm8808_vm1, %v11256_v23 }
 0x207   :  { %v1563_v1 = vmul.f32 %v896_v32, %v51_v26  ;;  %v8104_v33 = vpop.f32.mrf.mxu1  ;;  %8187 = vmatprep.mubr.msk.f32.mxu0 %vm8808_vm1, %v11256_v23  ;;  %8190 = vmatprep.subr.mxu1 %v11256_v23 }
 0x208   :  { %v8109_v38 = vpop.f32.mrf.mxu0  ;;  %8195 = vmatprep.subr.mxu0 %v11256_v23  ;;  %8183 = vmatmul.mubr.msk.f32.vlgmr.msra.gmra.mxu1 %vm1573_vm2, %v1562_v31 }
 0x209   :  { %8188 = vmatmul.mubr.msk.f32.vlgmr.msra.gmra.mxu0 %vm1573_vm2, %v1563_v1  ;;  %8191 = vmatpush3.msra.mxu1 %v9146_v11  ;;  %v969_v41 = vpop.f32.mrf.mxu1 }
 0x20a   :  { %8196 = vmatpush3.msra.mxu0 %v9153_v39  ;;  %v1564_v42 = vmul.f32 %v969_v41, %v52_v34  ;;  %v1042_v9 = vpop.f32.mrf.mxu0  ;;  %8192 = vmatprep.mubr.msk.f32.mxu1 %vm8808_vm1, %v11256_v23 }
 0x20b   :  { %v1565_v43 = vmul.f32 %v1042_v9, %v53_v40  ;;  %v8114_v46 = vpop.f32.mrf.mxu1  ;;  %8197 = vmatprep.mubr.msk.f32.mxu0 %vm8808_vm1, %v11256_v23  ;;  %8200 = vmatprep.subr.mxu1 %v11256_v23 }
 0x20c   :  { %v8119_v49 = vpop.f32.mrf.mxu0  ;;  %8205 = vmatprep.subr.mxu0 %v11256_v23  ;;  %8193 = vmatmul.mubr.msk.f32.vlgmr.msra.gmra.mxu1 %vm1573_vm2, %v1564_v42 }
 0x20d   :  { %8198 = vmatmul.mubr.msk.f32.vlgmr.msra.gmra.mxu0 %vm1573_vm2, %v1565_v43  ;;  %8201 = vmatpush3.msra.mxu1 %v9170_v27  ;;  %v1115_v13 = vpop.f32.mrf.mxu1 }
 0x20e   :  { %8206 = vmatpush3.msra.mxu0 %v9177_v36  ;;  %v1566_v51 = vmul.f32 %v1115_v13, %v54_v48  ;;  %v1188_v52 = vpop.f32.mrf.mxu0  ;;  %8202 = vmatprep.mubr.msk.f32.mxu1 %vm8808_vm1, %v11256_v23 }
 0x20f   :  { %v1567_v53 = vmul.f32 %v1188_v52, %v55_v50  ;;  %v8124_v56 = vpop.f32.mrf.mxu1  ;;  %8207 = vmatprep.mubr.msk.f32.mxu0 %vm8808_vm1, %v11256_v23  ;;  %8210 = vmatprep.subr.mxu1 %v11256_v23 }
 0x210   :  { %v8129_v16 = vpop.f32.mrf.mxu0  ;;  %8215 = vmatprep.subr.mxu0 %v11256_v23  ;;  %8203 = vmatmul.mubr.msk.f32.vlgmr.msra.gmra.mxu1 %vm1573_vm2, %v1566_v51 }
 0x211   :  { %8208 = vmatmul.mubr.msk.f32.vlgmr.msra.gmra.mxu0 %vm1573_vm2, %v1567_v53  ;;  %8211 = vmatpush3.msra.mxu1 %v9194_v35  ;;  %v1261_v37 = vpop.f32.mrf.mxu1 }
 0x212   :  { %8216 = vmatpush3.msra.mxu0 %v9201_v22  ;;  %v1568_v29 = vmul.f32 %v1261_v37, %v56_v57  ;;  %v1334_v14 = vpop.f32.mrf.mxu0  ;;  %8212 = vmatprep.mubr.msk.f32.mxu1 %vm8808_vm1, %v11256_v23 }
 0x213   :  { %v1569_v60 = vmul.f32 %v1334_v14, %v57_v44  ;;  %v8134_v61 = vpop.f32.mrf.mxu1  ;;  %8217 = vmatprep.mubr.msk.f32.mxu0 %vm8808_vm1, %v11256_v23  ;;  %8220 = vmatprep.subr.mxu1 %v11256_v23 }
 0x214   :  { %v8139_v2 = vpop.f32.mrf.mxu0  ;;  %8225 = vmatprep.subr.mxu0 %v11256_v23  ;;  %8213 = vmatmul.mubr.msk.f32.vlgmr.msra.gmra.mxu1 %vm1573_vm2, %v1568_v29 }
 0x215   :  { %8218 = vmatmul.mubr.msk.f32.vlgmr.msra.gmra.mxu0 %vm1573_vm2, %v1569_v60  ;;  %8221 = vmatpush3.msra.mxu1 %v9218_v47  ;;  %v1407_v45 = vpop.f32.mrf.mxu1 }
 0x216   :  { %8226 = vmatpush3.msra.mxu0 %v9225_v58  ;;  %v1570_v4 = vmul.f32 %v1407_v45, %v58_v63  ;;  %v1480_v54 = vpop.f32.mrf.mxu0  ;;  %8222 = vmatprep.mubr.msk.f32.mxu1 %vm8808_vm1, %v11256_v23 }
 0x217   :  { %v1571_v5 = vmul.f32 %v1480_v54, %v59_v3  ;;  %v8144_v6 = vpop.f32.mrf.mxu1  ;;  %8227 = vmatprep.mubr.msk.f32.mxu0 %vm8808_vm1, %v11256_v23  ;;  %8230 = vmatprep.subr.mxu1 %v11256_v23 }
 0x218   :  { %v8149_v8 = vpop.f32.mrf.mxu0  ;;  %8223 = vmatmul.mubr.msk.f32.vlgmr.msra.gmra.mxu1 %vm1573_vm2, %v1570_v4 }
 0x219   :  { %8228 = vmatmul.mubr.msk.f32.vlgmr.msra.gmra.mxu0 %vm1573_vm2, %v1571_v5  ;;  %8231 = vmatpush3.msra.mxu1 %v9240_v18  ;;  %v1553_v15 = vpop.f32.mrf.mxu1 }
 0x21a   :  { %v1572_v20 = vmul.f32 %v1553_v15, %v60_v7  ;;  %8232 = vmatprep.mubr.msk.f32.mxu1 %vm8808_vm1, %v11256_v23 }
 0x21b   :  { %v8154_v21 = vpop.f32.mrf.mxu1 }
 0x21c   :  { %8233 = vmatmul.mubr.msk.f32.vlgmr.msra.gmra.mxu1 %vm1573_vm2, %v1572_v20 }
 0x2bc   :  { %v1643_v24 = vpop.f32.mrf.mxu0 }
 0x2bd   :  { %v9381_v55 = vadd.f32 %v1643_v24, %v9069_v17 }
 0x2be   :  { %v8159_v0 = vpop.f32.mrf.mxu0 }
 0x2bf   :  { %v2742_v25 = vsel %vm147_vm0, %v9381_v55, 0.0 }
 0x2c0   :  { %v1716_v26 = vpop.f32.mrf.mxu1  ;;  %2743 = vadd.xlane.f32.xlu0 %v2742_v25 }
 0x2c1   :  { %v9386_v28 = vadd.f32 %v1716_v26, %v9079_v59  ;;  %v1789_v31 = vpop.f32.mrf.mxu0 }
 0x2c2   :  { %v9389_v32 = vadd.f32 %v1789_v31, %v9085_v62  ;;  %v8164_v1 = vpop.f32.mrf.mxu1 }
 0x2c3   :  { %v8169_v33 = vpop.f32.mrf.mxu0  ;;  %v2745_v34 = vsel %vm147_vm0, %v9386_v28, 0.0 }
 0x2c4   :  { %2746 = vadd.xlane.f32.xlu1 %v2745_v34  ;;  %v1862_v38 = vpop.f32.mrf.mxu1  ;;  %v2748_v40 = vsel %vm147_vm0, %v9389_v32, 0.0 }
 0x2c5   :  { %v9396_v41 = vadd.f32 %v1862_v38, %v9099_v10  ;;  %2749 = vadd.xlane.f32.xlu0 %v2748_v40  ;;  %v1935_v42 = vpop.f32.mrf.mxu0 }
 0x2c6   :  { %v9399_v9 = vadd.f32 %v1935_v42, %v9105_v19  ;;  %v8174_v43 = vpop.f32.mrf.mxu1 }
 0x2c7   :  { %v8179_v46 = vpop.f32.mrf.mxu0  ;;  %v2751_v48 = vsel %vm147_vm0, %v9396_v41, 0.0 }
 0x2c8   :  { %2752 = vadd.xlane.f32.xlu1 %v2751_v48  ;;  %v2008_v49 = vpop.f32.mrf.mxu1  ;;  %v2754_v50 = vsel %vm147_vm0, %v9399_v9, 0.0 }
 0x2c9   :  { %v9406_v13 = vadd.f32 %v2008_v49, %v9122_v12  ;;  %2755 = vadd.xlane.f32.xlu0 %v2754_v50  ;;  %v2081_v51 = vpop.f32.mrf.mxu0 }
 0x2ca   :  { %v9409_v52 = vadd.f32 %v2081_v51, %v9129_v30  ;;  %v8184_v53 = vpop.f32.mrf.mxu1 }
 0x2cb   :  { %v8189_v56 = vpop.f32.mrf.mxu0  ;;  %v2757_v57 = vsel %vm147_vm0, %v9406_v13, 0.0 }
 0x2cc   :  { %2758 = vadd.xlane.f32.xlu1 %v2757_v57  ;;  %v2154_v16 = vpop.f32.mrf.mxu1  ;;  %v2760_v44 = vsel %vm147_vm0, %v9409_v52, 0.0 }
 0x2cd   :  { %v9416_v37 = vadd.f32 %v2154_v16, %v9146_v11  ;;  %2761 = vadd.xlane.f32.xlu0 %v2760_v44  ;;  %v2227_v29 = vpop.f32.mrf.mxu0 }
 0x2ce   :  { %v9419_v14 = vadd.f32 %v2227_v29, %v9153_v39  ;;  %v8194_v60 = vpop.f32.mrf.mxu1 }
 0x2cf   :  { %v8199_v61 = vpop.f32.mrf.mxu0  ;;  %v2763_v63 = vsel %vm147_vm0, %v9416_v37, 0.0 }
 0x2d0   :  { %2764 = vadd.xlane.f32.xlu1 %v2763_v63  ;;  %v2300_v2 = vpop.f32.mrf.mxu1  ;;  %v2766_v3 = vsel %vm147_vm0, %v9419_v14, 0.0 }
 0x2d1   :  { %v9426_v45 = vadd.f32 %v2300_v2, %v9170_v27  ;;  %2767 = vadd.xlane.f32.xlu0 %v2766_v3  ;;  %v2373_v4 = vpop.f32.mrf.mxu0 }
 0x2d2   :  { %v9429_v54 = vadd.f32 %v2373_v4, %v9177_v36  ;;  %v8204_v5 = vpop.f32.mrf.mxu1 }
 0x2d3   :  { %v8209_v6 = vpop.f32.mrf.mxu0  ;;  %v2769_v7 = vsel %vm147_vm0, %v9426_v45, 0.0 }
 0x2d4   :  { %2770 = vadd.xlane.f32.xlu1 %v2769_v7  ;;  %v2446_v8 = vpop.f32.mrf.mxu1  ;;  %v2772_v15 = vsel %vm147_vm0, %v9429_v54, 0.0 }
 0x2d5   :  { %v9436_v20 = vadd.f32 %v2446_v8, %v9194_v35  ;;  %2773 = vadd.xlane.f32.xlu0 %v2772_v15  ;;  %v2519_v21 = vpop.f32.mrf.mxu0 }
 0x2d6   :  { %v9439_v24 = vadd.f32 %v2519_v21, %v9201_v22  ;;  %v8214_v0 = vpop.f32.mrf.mxu1 }
 0x2d7   :  { %v8219_v25 = vpop.f32.mrf.mxu0  ;;  %v2775_v26 = vsel %vm147_vm0, %v9436_v20, 0.0 }
 0x2d8   :  { %2776 = vadd.xlane.f32.xlu1 %v2775_v26  ;;  %v2592_v31 = vpop.f32.mrf.mxu1  ;;  %v2778_v1 = vsel %vm147_vm0, %v9439_v24, 0.0 }
 0x2d9   :  { %v9446_v33 = vadd.f32 %v2592_v31, %v9218_v47  ;;  %2779 = vadd.xlane.f32.xlu0 %v2778_v1  ;;  %v2665_v34 = vpop.f32.mrf.mxu0 }
 0x2da   :  { %v9449_v38 = vadd.f32 %v2665_v34, %v9225_v58  ;;  %v8224_v40 = vpop.f32.mrf.mxu1 }
 0x2db   :  { %v8229_v42 = vpop.f32.mrf.mxu0  ;;  %v2781_v43 = vsel %vm147_vm0, %v9446_v33, 0.0 }
 0x2dc   :  { %2782 = vadd.xlane.f32.xlu1 %v2781_v43  ;;  %v2738_v46 = vpop.f32.mrf.mxu1  ;;  %v2784_v48 = vsel %vm147_vm0, %v9449_v38, 0.0 }
 0x2dd   :  { %v9456_v49 = vadd.f32 %v2738_v46, %v9240_v18  ;;  %2785 = vadd.xlane.f32.xlu0 %v2784_v48 }
 0x2de   :  { %v8234_v50 = vpop.f32.mrf.mxu1 }
 0x2df   :  { %v2787_v51 = vsel %vm147_vm0, %v9456_v49, 0.0 }
 0x2e0   :  { %2788 = vadd.xlane.f32.xlu1 %v2787_v51 }
 0x349   :  { %v2744_v53 = vpop.xlane.xlu0 %2743 }
 0x34a   :  { %v2790_v56 = vmul.f32 0.0125, %v2744_v53 }
 0x34c   :  { %v9461_v57 = vsub.f32 %v9381_v55, %v2790_v56 }
 0x34d   :  { %v2747_v16 = vpop.xlane.xlu1 %2746 }
 0x34e   :  { %v2791_v44 = vmul.f32 0.0125, %v2747_v16  ;;  %v2750_v29 = vpop.xlane.xlu0 %2749  ;;  %v2822_v60 = vmul.f32 %v9461_v57, %v9461_v57 }
 0x34f   :  { %v2792_v61 = vmul.f32 0.0125, %v2750_v29 }
 0x350   :  { %v9466_v63 = vsub.f32 %v9386_v28, %v2791_v44  ;;  %v2838_v2 = vsel %vm147_vm0, %v2822_v60, 0.0 }
 0x351   :  { %v9470_v3 = vsub.f32 %v9389_v32, %v2792_v61  ;;  %v2753_v4 = vpop.xlane.xlu1 %2752  ;;  %2839 = vadd.xlane.f32.xlu0 %v2838_v2 }
 0x352   :  { %v2793_v5 = vmul.f32 0.0125, %v2753_v4  ;;  %v2756_v55 = vpop.xlane.xlu0 %2755  ;;  %v2823_v6 = vmul.f32 %v9466_v63, %v9466_v63 }
 0x353   :  { %v2794_v7 = vmul.f32 0.0125, %v2756_v55  ;;  %v2824_v8 = vmul.f32 %v9470_v3, %v9470_v3 }
 0x354   :  { %v9477_v15 = vsub.f32 %v9396_v41, %v2793_v5  ;;  %v2841_v28 = vsel %vm147_vm0, %v2823_v6, 0.0 }
 0x355   :  { %v9481_v21 = vsub.f32 %v9399_v9, %v2794_v7  ;;  %v2759_v32 = vpop.xlane.xlu1 %2758  ;;  %2842 = vadd.xlane.f32.xlu1 %v2841_v28  ;;  %v2844_v0 = vsel %vm147_vm0, %v2824_v8, 0.0 }
 0x356   :  { %v2795_v25 = vmul.f32 0.0125, %v2759_v32  ;;  %v2762_v26 = vpop.xlane.xlu0 %2761  ;;  %2845 = vadd.xlane.f32.xlu0 %v2844_v0  ;;  %v2825_v31 = vmul.f32 %v9477_v15, %v9477_v15 }
 0x357   :  { %v2796_v1 = vmul.f32 0.0125, %v2762_v26  ;;  %v2826_v41 = vmul.f32 %v9481_v21, %v9481_v21 }
 0x358   :  { %v9489_v34 = vsub.f32 %v9406_v13, %v2795_v25  ;;  %v2847_v9 = vsel %vm147_vm0, %v2825_v31, 0.0 }
 0x359   :  { %v9493_v40 = vsub.f32 %v9409_v52, %v2796_v1  ;;  %v2765_v42 = vpop.xlane.xlu1 %2764  ;;  %2848 = vadd.xlane.f32.xlu1 %v2847_v9  ;;  %v2850_v43 = vsel %vm147_vm0, %v2826_v41, 0.0  ;;  %v8519_v1 = vld [vmem:[%s11249_s4 + $0x64] ss:$12 sps:$4 sm:$0xff]  }
 0x35a   :  { %v2797_v46 = vmul.f32 0.0125, %v2765_v42  ;;  %v2768_v48 = vpop.xlane.xlu0 %2767  ;;  %2851 = vadd.xlane.f32.xlu0 %v2850_v43  ;;  %v2827_v50 = vmul.f32 %v9489_v34, %v9489_v34  ;;  %v8517_v42 = vld [vmem:[%s11249_s4 + $0x60] ss:$12 sps:$4 sm:$0xff]   ;;  %3116 = vmatprep.subr.bf16.mxu0 %v8519_v1  ;;  %v8537_v1 = vld [vmem:[%s11251_s6 + $0x78] sm:$0xff]  }
 0x35b   :  { %v2798_v51 = vmul.f32 0.0125, %v2768_v48  ;;  %v2828_v13 = vmul.f32 %v9493_v40, %v9493_v40  ;;  %3117 = vmatpush1.bf16.msra.mxu0 %v8517_v42 }
 0x35c   :  { %v9501_v53 = vsub.f32 %v9416_v37, %v2797_v46  ;;  %v2853_v52 = vsel %vm147_vm0, %v2827_v50, 0.0 }
 0x35d   :  { %v9505_v56 = vsub.f32 %v9419_v14, %v2798_v51  ;;  %v2771_v16 = vpop.xlane.xlu1 %2770  ;;  %2854 = vadd.xlane.f32.xlu1 %v2853_v52  ;;  %v2856_v44 = vsel %vm147_vm0, %v2828_v13, 0.0  ;;  %v8522_v52 = vld [vmem:[%s11249_s4 + $0x4c] ss:$12 sps:$4 sm:$0xff]  }
 0x35e   :  { %v2799_v29 = vmul.f32 0.0125, %v2771_v16  ;;  %v2774_v60 = vpop.xlane.xlu0 %2773  ;;  %2857 = vadd.xlane.f32.xlu0 %v2856_v44  ;;  %v2829_v61 = vmul.f32 %v9501_v53, %v9501_v53  ;;  %v8523_v16 = vld [vmem:[%s11249_s4 + $0x68] ss:$12 sps:$4 sm:$0xff]   ;;  %3118 = vmatprep.subr.bf16.mxu0 %v8522_v52 }
 0x35f   :  { %v2800_v2 = vmul.f32 0.0125, %v2774_v60  ;;  %v2830_v37 = vmul.f32 %v9505_v56, %v9505_v56  ;;  %8235 = vmatprep.subr.bf16.mxu1 %v8523_v16 }
 0x360   :  { %v9513_v4 = vsub.f32 %v9426_v45, %v2799_v29  ;;  %v2859_v14 = vsel %vm147_vm0, %v2829_v61, 0.0  ;;  %8236 = vmatpush3.bf16.msra.mxu1 %v8523_v16 }
 0x361   :  { %v9517_v5 = vsub.f32 %v9429_v54, %v2800_v2  ;;  %v2777_v55 = vpop.xlane.xlu1 %2776  ;;  %2860 = vadd.xlane.f32.xlu1 %v2859_v14  ;;  %v2862_v6 = vsel %vm147_vm0, %v2830_v37, 0.0  ;;  %v8526_v37 = vld [vmem:[%s11249_s4 + $0x34] ss:$12 sps:$4 sm:$0xff]   ;;  %v8527_v14 = vld [vmem:[%s11249_s4 + $0x50] ss:$12 sps:$4 sm:$0xff]  }
 0x362   :  { %v2801_v7 = vmul.f32 0.0125, %v2777_v55  ;;  %v2780_v8 = vpop.xlane.xlu0 %2779  ;;  %2863 = vadd.xlane.f32.xlu0 %v2862_v6  ;;  %v2831_v28 = vmul.f32 %v9513_v4, %v9513_v4  ;;  %v8524_v55 = vld [vmem:[%s11249_s4 + $0x30] ss:$12 sps:$4 sm:$0xff]   ;;  %8237 = vmatprep.subr.bf16.mxu1 %v8527_v14 }
 0x363   :  { %v2802_v32 = vmul.f32 0.0125, %v2780_v8  ;;  %v2832_v45 = vmul.f32 %v9517_v5, %v9517_v5  ;;  %v8531_v8 = vld [vmem:[%s11249_s4 + $0x38] ss:$12 sps:$4 sm:$0xff]  }
 0x364   :  { %v9525_v0 = vsub.f32 %v9436_v20, %v2801_v7  ;;  %v2865_v54 = vsel %vm147_vm0, %v2831_v28, 0.0  ;;  %8238 = vmatpush3.bf16.msra.mxu1 %v8527_v14  ;;  %v8530_v7 = vld [vmem:[%s11249_s4 + $0x1c] ss:$12 sps:$4 sm:$0xff]   ;;  %v8528_v28 = vld [vmem:[%s11249_s4 + $0x18] ss:$12 sps:$4 sm:$0xff]  }
 0x365   :  { %v9529_v25 = vsub.f32 %v9439_v24, %v2802_v32  ;;  %v2783_v26 = vpop.xlane.xlu1 %2782  ;;  %2866 = vadd.xlane.f32.xlu1 %v2865_v54  ;;  %v2868_v31 = vsel %vm147_vm0, %v2832_v45, 0.0  ;;  %8239 = vmatprep.subr.bf16.mxu1 %v8531_v8  ;;  %v8534_v32 = vld [vmem:[%s11249_s4 + $0x4] ss:$12 sps:$4 sm:$0xff]   ;;  %v8535_v45 = vld [vmem:[%s11249_s4 + $0x20] ss:$12 sps:$4 sm:$0xff]  }
 0x366   :  { %v2803_v41 = vmul.f32 0.0125, %v2783_v26  ;;  %2869 = vadd.xlane.f32.xlu0 %v2868_v31  ;;  %v2786_v9 = vpop.xlane.xlu0 %2785  ;;  %v2833_v20 = vmul.f32 %v9525_v0, %v9525_v0  ;;  %v8532_v54 = vld [vmem:[%s11249_s4] ss:$12 sps:$4 sm:$0xff]   ;;  %v8536_v26 = vld [vmem:[%s11249_s4 + $0x8] ss:$12 sps:$4 sm:$0xff]  }
 0x367   :  { %v2804_v24 = vmul.f32 0.0125, %v2786_v9  ;;  %v2834_v43 = vmul.f32 %v9529_v25, %v9529_v25  ;;  %v11254_v31 = vmov 0  }
 0x368   :  { %v9543_v46 = vsub.f32 %v9446_v33, %v2803_v41  ;;  %v2871_v48 = vsel %vm147_vm0, %v2833_v20, 0.0  ;;  %8240 = vmatpush3.bf16.msra.mxu1 %v8531_v8  ;;  %3142 = vmatprep.mubr.bf16.mxu0 %v11254_v31  ;;  %v9608_v41 = vld [vmem:[%s11251_s6 + $0xb8] sm:$0xff]  }
 0x369   :  { %v9547_v50 = vsub.f32 %v9449_v38, %v2804_v24  ;;  %2872 = vadd.xlane.f32.xlu1 %v2871_v48  ;;  %v2789_v51 = vpop.xlane.xlu1 %2788  ;;  %v2874_v13 = vsel %vm147_vm0, %v2834_v43, 0.0  ;;  %v8520_v38 = vld [vmem:[%s11249_s4 + $0x48] ss:$12 sps:$4 sm:$0xff]   ;;  %8241 = vmatprep.subr.bf16.mxu1 %v8535_v45 }
 0x36a   :  { %v2805_v33 = vmul.f32 0.0125, %v2789_v51  ;;  %2875 = vadd.xlane.f32.xlu0 %v2874_v13  ;;  %v2835_v44 = vmul.f32 %v9543_v46, %v9543_v46  ;;  %3119 = vmatpush1.bf16.msra.mxu0 %v8520_v38 }
 0x36b   :  { %v2836_v29 = vmul.f32 %v9547_v50, %v9547_v50  ;;  %3120 = vmatprep.subr.bf16.mxu0 %v8526_v37 }
 0x36c   :  { %v9564_v60 = vsub.f32 %v9456_v49, %v2805_v33  ;;  %v2877_v61 = vsel %vm147_vm0, %v2835_v44, 0.0  ;;  %8242 = vmatpush3.bf16.msra.mxu1 %v8535_v45 }
 0x36d   :  { %2878 = vadd.xlane.f32.xlu1 %v2877_v61  ;;  %v2880_v2 = vsel %vm147_vm0, %v2836_v29, 0.0  ;;  %8243 = vmatprep.subr.bf16.mxu1 %v8536_v26 }
 0x36e   :  { %2881 = vadd.xlane.f32.xlu0 %v2880_v2  ;;  %v2837_v49 = vmul.f32 %v9564_v60, %v9564_v60  ;;  %3121 = vmatpush1.bf16.msra.mxu0 %v8524_v55 }
 0x36f   :  { %3122 = vmatprep.subr.bf16.mxu0 %v8530_v7 }
 0x370   :  { %v2883_v6 = vsel %vm147_vm0, %v2837_v49, 0.0  ;;  %8244 = vmatpush3.bf16.msra.mxu1 %v8536_v26 }
 0x371   :  { %2884 = vadd.xlane.f32.xlu1 %v2883_v6  ;;  %7838 = vmatprep.subr.bf16.mxu1 %v8537_v1 }
 0x372   :  { %3123 = vmatpush1.bf16.msra.mxu0 %v8528_v28 }
 0x373   :  { %3124 = vmatprep.subr.bf16.mxu0 %v8534_v32 }
 0x376   :  { %3125 = vmatpush1.bf16.msra.mxu0 %v8532_v54 }
 0x377   :  { %8261 = vmatprep.subr.bf16.mxu0 %v9608_v41 }
 0x3da   :  { %v2840_v9 = vpop.xlane.xlu0 %2839 }
 0x3db   :  { %v2886_v20 = vmul.f32 0.0125, %v2840_v9 }
 0x3dd   :  { %v2902_v42 = vadd.f32 1e-05, %v2886_v20 }
 0x3de   :  { %v2843_v24 = vpop.xlane.xlu1 %2842 }
 0x3df   :  { %8593 = vrsqrt.f32 %v2902_v42  ;;  %v2887_v43 = vmul.f32 0.0125, %v2843_v24  ;;  %v2846_v48 = vpop.xlane.xlu0 %2845 }
 0x3e0   :  { %v2888_v51 = vmul.f32 0.0125, %v2846_v48 }
 0x3e1   :  { %v2903_v13 = vadd.f32 1e-05, %v2887_v43 }
 0x3e2   :  { %v2904_v52 = vadd.f32 1e-05, %v2888_v51  ;;  %v2849_v16 = vpop.xlane.xlu1 %2848 }
 0x3e3   :  { %8595 = vrsqrt.f32 %v2903_v13  ;;  %v2889_v33 = vmul.f32 0.0125, %v2849_v16  ;;  %v2852_v44 = vpop.xlane.xlu0 %2851 }
 0x3e4   :  { %8597 = vrsqrt.f32 %v2904_v52  ;;  %v2890_v38 = vmul.f32 0.0125, %v2852_v44  ;;  %v9616_v52 = vld [vmem:[%s11247_s2] ss:$0 sm:$0xff] }
 0x3e5   :  { %v2905_v29 = vadd.f32 1e-05, %v2889_v33 }
 0x3e6   :  { %v2906_v61 = vadd.f32 1e-05, %v2890_v38  ;;  %v2855_v2 = vpop.xlane.xlu1 %2854 }
 0x3e7   :  { %8599 = vrsqrt.f32 %v2905_v29  ;;  %v2891_v37 = vmul.f32 0.0125, %v2855_v2  ;;  %v2858_v14 = vpop.xlane.xlu0 %2857 }
 0x3e8   :  { %8601 = vrsqrt.f32 %v2906_v61  ;;  %v2892_v49 = vmul.f32 0.0125, %v2858_v14 }
 0x3e9   :  { %v2907_v55 = vadd.f32 1e-05, %v2891_v37 }
 0x3ea   :  { %v2908_v6 = vadd.f32 1e-05, %v2892_v49  ;;  %v2861_v7 = vpop.xlane.xlu1 %2860 }
 0x3eb   :  { %8603 = vrsqrt.f32 %v2907_v55  ;;  %v2893_v8 = vmul.f32 0.0125, %v2861_v7  ;;  %v2864_v28 = vpop.xlane.xlu0 %2863 }
 0x3ec   :  { %v8594_v32 = vpop.eup %8593  ;;  %8605 = vrsqrt.f32 %v2908_v6  ;;  %v2894_v45 = vmul.f32 0.0125, %v2864_v28 }
 0x3ed   :  { %v2934_v54 = vmul.f32 %v8594_v32, %v9461_v57  ;;  %v2909_v26 = vadd.f32 1e-05, %v2893_v8 }
 0x3ee   :  { %v2910_v1 = vadd.f32 1e-05, %v2894_v45  ;;  %v2867_v9 = vpop.xlane.xlu1 %2866 }
 0x3ef   :  { %8607 = vrsqrt.f32 %v2909_v26  ;;  %v2895_v20 = vmul.f32 0.0125, %v2867_v9  ;;  %v2870_v42 = vpop.xlane.xlu0 %2869  ;;  %v2950_v57 = vmul.f32 %v9616_v52, %v2934_v54 }
 0x3f0   :  { %v8596_v24 = vpop.eup %8595  ;;  %8609 = vrsqrt.f32 %v2910_v1  ;;  %v2896_v43 = vmul.f32 0.0125, %v2870_v42  ;;  %v8543_v1 = vld [vmem:[%s11251_s6 + $0xb0] sm:$0xff]  }
 0x3f1   :  { %v8598_v48 = vpop.eup %8597  ;;  %v2935_v51 = vmul.f32 %v8596_v24, %v9466_v63  ;;  %v2911_v13 = vadd.f32 1e-05, %v2895_v20 }
 0x3f2   :  { %v2936_v16 = vmul.f32 %v8598_v48, %v9470_v3  ;;  %v2912_v33 = vadd.f32 1e-05, %v2896_v43  ;;  %v2873_v44 = vpop.xlane.xlu1 %2872  ;;  %v9626_v3 = vld [vmem:[%s11248_s3] ss:$0 sm:$0xff] }
 0x3f3   :  { %8611 = vrsqrt.f32 %v2911_v13  ;;  %v2897_v38 = vmul.f32 0.0125, %v2873_v44  ;;  %v2876_v29 = vpop.xlane.xlu0 %2875  ;;  %v2951_v61 = vmul.f32 %v9616_v52, %v2935_v51  ;;  %v9629_v6 = vadd.f32 %v9626_v3, %v2950_v57 }
 0x3f4   :  { %v8600_v2 = vpop.eup %8599  ;;  %8613 = vrsqrt.f32 %v2912_v33  ;;  %v2898_v63 = vmul.f32 0.0125, %v2876_v29  ;;  %v2952_v37 = vmul.f32 %v9616_v52, %v2936_v16  ;;  %v8538_v33 = vld [vmem:[%s11251_s6 + $0x38] sm:$0xff]   ;;  %v8539_v29 = vld [vmem:[%s11251_s6 + $0x70] sm:$0xff]  }
 0x3f5   :  { %v8602_v14 = vpop.eup %8601  ;;  %v2937_v49 = vmul.f32 %v8600_v2, %v9477_v15  ;;  %v2913_v55 = vadd.f32 1e-05, %v2897_v38  ;;  %v9632_v7 = vadd.f32 %v9626_v3, %v2951_v61 }
 0x3f6   :  { %v2914_v8 = vadd.f32 1e-05, %v2898_v63  ;;  %v2879_v28 = vpop.xlane.xlu1 %2878  ;;  %v2938_v32 = vmul.f32 %v8602_v14, %v9481_v21  ;;  %v9642_v42 = vadd.f32 %v9626_v3, %v2952_v37 }
 0x3f7   :  { %8615 = vrsqrt.f32 %v2913_v55  ;;  %v2899_v45 = vmul.f32 0.0125, %v2879_v28  ;;  %v2882_v54 = vpop.xlane.xlu0 %2881  ;;  %v2982_v15 = vpack.c.bf16 %v9632_v7, %v9629_v6  ;;  %v2953_v26 = vmul.f32 %v9616_v52, %v2937_v49 }
 0x3f8   :  { %v8604_v9 = vpop.eup %8603  ;;  %8617 = vrsqrt.f32 %v2914_v8  ;;  %v2900_v20 = vmul.f32 0.0125, %v2882_v54  ;;  %v2954_v51 = vmul.f32 %v9616_v52, %v2938_v32  ;;  %v8541_v8 = vld [vmem:[%s11251_s6 + $0x30] sm:$0xff]   ;;  %v8549_v54 = vld [vmem:[%s11251_s6 + $0xa0] sm:$0xff]  }
 0x3f9   :  { %v8606_v24 = vpop.eup %8605  ;;  %v2915_v21 = vadd.f32 1e-05, %v2899_v45  ;;  %7656 = vmatmul.mubr.msk.bf16.vlgmr.msra.gmra.mxu0 %vm147_vm0, %v2982_v15  ;;  %8245 = vmatprep.mubr.msk.bf16.mxu1 %vm147_vm0, %v2982_v15  ;;  %v9647_v43 = vadd.f32 %v9626_v3, %v2953_v26  ;;  %v2939_v48 = vmul.f32 %v8604_v9, %v9489_v34  ;;  %v8542_v45 = vld [vmem:[%s11251_s6 + $0x68] sm:$0xff]  }
 0x3fa   :  { %v2916_v13 = vadd.f32 1e-05, %v2900_v20  ;;  %v2885_v57 = vpop.xlane.xlu1 %2884  ;;  %3152 = vmatprep.mubr.bf16.mxu0 %v11254_v31  ;;  %v2940_v16 = vmul.f32 %v8606_v24, %v9493_v40  ;;  %8262 = vmatpush3.bf16.msra.mxu0 %v9608_v41  ;;  %v8546_v40 = vld [vmem:[%s11251_s6 + $0xa8] sm:$0xff]   ;;  %v9669_v37 = vadd.f32 %v9626_v3, %v2954_v51 }
 0x3fb   :  { %8619 = vrsqrt.f32 %v2915_v21  ;;  %v2901_v44 = vmul.f32 0.0125, %v2885_v57  ;;  %v2983_v38 = vpack.c.bf16 %v9647_v43, %v9642_v42  ;;  %v2955_v34 = vmul.f32 %v9616_v52, %v2939_v48  ;;  %8263 = vmatprep.subr.bf16.mxu0 %v8543_v1  ;;  %v8544_v24 = vld [vmem:[%s11251_s6 + $0x28] sm:$0xff]  }
 0x3fc   :  { %v8608_v61 = vpop.eup %8607  ;;  %8621 = vrsqrt.f32 %v2916_v13  ;;  %v2956_v41 = vmul.f32 %v9616_v52, %v2940_v16 }
 0x3fd   :  { %v8610_v2 = vpop.eup %8609  ;;  %v2917_v63 = vadd.f32 1e-05, %v2901_v44  ;;  %8246 = vmatmul.mubr.msk.bf16.vlgmr.msra.gmra.mxu1 %vm147_vm0, %v2983_v38  ;;  %v9672_v14 = vadd.f32 %v9626_v3, %v2955_v34  ;;  %v2941_v49 = vmul.f32 %v8608_v61, %v9501_v53 }
 0x3fe   :  { %v2942_v55 = vmul.f32 %v8610_v2, %v9505_v56  ;;  %7839 = vmatpush3.bf16.msra.mxu1 %v8538_v33  ;;  %8264 = vmatpush3.bf16.msra.mxu0 %v8543_v1  ;;  %v9686_v56 = vadd.f32 %v9626_v3, %v2956_v41 }
 0x3ff   :  { %8623 = vrsqrt.f32 %v2917_v63  ;;  %v2984_v28 = vpack.c.bf16 %v9672_v14, %v9669_v37  ;;  %v2957_v32 = vmul.f32 %v9616_v52, %v2941_v49  ;;  %7840 = vmatprep.subr.bf16.mxu1 %v8539_v29  ;;  %8265 = vmatprep.subr.bf16.mxu0 %v8546_v40 }
 0x400   :  { %v8612_v53 = vpop.eup %8611  ;;  %v2958_v9 = vmul.f32 %v9616_v52, %v2942_v55 }
 0x401   :  { %v8614_v15 = vpop.eup %8613  ;;  %7657 = vmatmul.mubr.msk.bf16.gmra.mxu0 %vm147_vm0, %v2983_v38  ;;  %8249 = vmatprep.mubr.msk.bf16.mxu1 %vm147_vm0, %v2984_v28  ;;  %v9694_v26 = vadd.f32 %v9626_v3, %v2957_v32  ;;  %v2943_v1 = vmul.f32 %v8612_v53, %v9513_v4  ;;  %v8545_v4 = vld [vmem:[%s11251_s6 + $0x60] sm:$0xff]  }
 0x402   :  { %3162 = vmatprep.mubr.bf16.mxu0 %v11254_v31  ;;  %v2944_v20 = vmul.f32 %v8614_v15, %v9517_v5  ;;  %7841 = vmatpush3.bf16.msra.mxu1 %v8541_v8  ;;  %v9712_v57 = vadd.f32 %v9626_v3, %v2958_v9  ;;  %v8547_v38 = vld [vmem:[%s11251_s6 + $0x20] sm:$0xff]   ;;  %v8552_v9 = vld [vmem:[%s11251_s6 + $0x98] sm:$0xff]  }
 0x403   :  { %v2985_v21 = vpack.c.bf16 %v9694_v26, %v9686_v56  ;;  %v2959_v48 = vmul.f32 %v9616_v52, %v2943_v1  ;;  %7842 = vmatprep.subr.bf16.mxu1 %v8542_v45  ;;  %8266 = vmatpush3.bf16.msra.mxu0 %v8546_v40  ;;  %v8548_v40 = vld [vmem:[%s11251_s6 + $0x58] sm:$0xff]  }
 0x404   :  { %v8616_v51 = vpop.eup %8615  ;;  %v2960_v13 = vmul.f32 %v9616_v52, %v2944_v20  ;;  %8267 = vmatprep.subr.bf16.mxu0 %v8549_v54  ;;  %v8553_v20 = vld [vmem:[%s11251_s6 + $0x10] sm:$0xff]  }
 0x405   :  { %v8618_v5 = vpop.eup %8617  ;;  %8250 = vmatmul.mubr.msk.bf16.gmra.mxu1 %vm147_vm0, %v2985_v21  ;;  %v9715_v16 = vadd.f32 %v9626_v3, %v2959_v48  ;;  %v2945_v33 = vmul.f32 %v8616_v51, %v9525_v0  ;;  %v8556_v48 = vld [vmem:[%s11251_s6 + $0x8] sm:$0xff]  }
 0x406   :  { %v2946_v44 = vmul.f32 %v8618_v5, %v9529_v25  ;;  %7843 = vmatpush3.bf16.msra.mxu1 %v8544_v24  ;;  %v9729_v0 = vadd.f32 %v9626_v3, %v2960_v13  ;;  %v8554_v24 = vld [vmem:[%s11251_s6 + $0x48] sm:$0xff]   ;;  %v8559_v13 = vld [vmem:[%s11251_s6] sm:$0xff]  }
 0x407   :  { %v2986_v34 = vpack.c.bf16 %v9715_v16, %v9712_v57  ;;  %v2961_v29 = vmul.f32 %v9616_v52, %v2945_v33  ;;  %7844 = vmatprep.subr.bf16.mxu1 %v8545_v4  ;;  %8268 = vmatpush3.bf16.msra.mxu0 %v8549_v54  ;;  %v8557_v4 = vld [vmem:[%s11251_s6 + $0x40] sm:$0xff]   ;;  %v8558_v51 = vld [vmem:[%s11251_s6 + $0x88] sm:$0xff]   ;;  %v2991_v33 = vlaneseq }
 0x408   :  { %v8620_v61 = vpop.eup %8619  ;;  %v2962_v63 = vmul.f32 %v9616_v52, %v2946_v44  ;;  %8269 = vmatprep.subr.bf16.mxu0 %v8552_v9  ;;  %v8560_v5 = vld [vmem:[%s11251_s6 + $0x80] sm:$0xff]  }
 0x409   :  { %v8622_v25 = vpop.eup %8621  ;;  %7658 = vmatmul.mubr.msk.bf16.gmra.mxu0 %vm147_vm0, %v2984_v28  ;;  %8253 = vmatprep.mubr.msk.bf16.mxu1 %vm147_vm0, %v2986_v34  ;;  %v9734_v41 = vadd.f32 %v9626_v3, %v2961_v29  ;;  %v2947_v2 = vmul.f32 %v8620_v61, %v9543_v46  ;;  %v2992_v44 = vshrl.u32 %v2991_v33, 7 }
 0x40a   :  { %3172 = vmatprep.mubr.bf16.mxu0 %v11254_v31  ;;  %v2948_v49 = vmul.f32 %v8622_v25, %v9547_v50  ;;  %7845 = vmatpush3.bf16.msra.mxu1 %v8547_v38  ;;  %v9745_v32 = vadd.f32 %v9626_v3, %v2962_v63 }
 0x40b   :  { %v2987_v55 = vpack.c.bf16 %v9734_v41, %v9729_v0  ;;  %v2963_v8 = vmul.f32 %v9616_v52, %v2947_v2  ;;  %7846 = vmatprep.subr.bf16.mxu1 %v8548_v40  ;;  %8270 = vmatpush3.bf16.msra.mxu0 %v8552_v9  ;;  %v2993_v38 = vsub.s32 0, %v2992_v44  ;;  %v2997_v29 = vsub.s32 1, %v2992_v44 }
 0x40c   :  { %v8624_v28 = vpop.eup %8623  ;;  %v2964_v50 = vmul.f32 %v9616_v52, %v2948_v49  ;;  %v3001_v61 = vsub.s32 2, %v2992_v44 }
 0x40d   :  { %8254 = vmatmul.mubr.msk.bf16.gmra.mxu1 %vm147_vm0, %v2987_v55  ;;  %v9748_v46 = vadd.f32 %v9626_v3, %v2963_v8  ;;  %v2949_v45 = vmul.f32 %v8624_v28, %v9564_v60 }
 0x40e   :  { %v9758_v15 = vadd.f32 %v9626_v3, %v2964_v50 }
 0x40f   :  { %v2988_v53 = vpack.c.bf16 %v9748_v46, %v9745_v32  ;;  %v2965_v54 = vmul.f32 %v9616_v52, %v2949_v45  ;;  %v8550_v52 = vld [vmem:[%s11251_s6 + $0x18] sm:$0xff]  }
 0x410   :  { %7847 = vmatpush3.bf16.msra.mxu1 %v8550_v52 }
 0x411   :  { %7659 = vmatmul.mubr.msk.bf16.gmra.mxu0 %vm147_vm0, %v2985_v21  ;;  %8257 = vmatprep.mubr.msk.bf16.mxu1 %vm147_vm0, %v2988_v53  ;;  %v9761_v1 = vadd.f32 %v9626_v3, %v2965_v54  ;;  %v8551_v3 = vld [vmem:[%s11251_s6 + $0x50] sm:$0xff]  }
 0x412   :  { %3182 = vmatprep.mubr.bf16.mxu0 %v11254_v31  ;;  %7848 = vmatprep.subr.bf16.mxu1 %v8551_v3  ;;  %v8555_v21 = vld [vmem:[%s11251_s6 + $0x90] sm:$0xff]  }
 0x413   :  { %v2989_v60 = vpack.c.bf16 %v9761_v1, %v9758_v15  ;;  %8271 = vmatprep.subr.bf16.mxu0 %v8555_v21 }
 0x414   :  { %7849 = vmatpush3.bf16.msra.mxu1 %v8553_v20  ;;  %8272 = vmatpush3.bf16.msra.mxu0 %v8555_v21 }
 0x415   :  { %8258 = vmatmul.mubr.msk.bf16.gmra.mxu1 %vm147_vm0, %v2989_v60  ;;  %7850 = vmatprep.subr.bf16.mxu1 %v8554_v24 }
 0x416   :  { %8273 = vmatprep.subr.bf16.mxu0 %v8558_v51 }
 0x418   :  { %7851 = vmatpush3.bf16.msra.mxu1 %v8556_v48  ;;  %8274 = vmatpush3.bf16.msra.mxu0 %v8558_v51 }
 0x419   :  { %7660 = vmatmul.mubr.msk.bf16.gmra.mxu0 %vm147_vm0, %v2986_v34  ;;  %7852 = vmatprep.subr.bf16.mxu1 %v8557_v4  ;;  %v129_v34 = vld [vmem:[%s11250_s5] sm:$0x7] }
 0x41a   :  { %3192 = vmatprep.mubr.bf16.mxu0 %v11254_v31  ;;  %8275 = vmatprep.subr.bf16.mxu0 %v8560_v5  ;;  %v9812_v40 = vrot.slane %v129_v34, %v2993_v38  ;;  %v9814_v25 = vrot.slane %v129_v34, %v2997_v29 }
 0x41c   :  { %7853 = vmatpush3.bf16.msra.mxu1 %v8559_v13  ;;  %8276 = vmatpush3.bf16.msra.mxu0 %v8560_v5 }
 0x41d   :  { %8298 = vmatprep.subr.mxu1 %v11256_v23  ;;  %8293 = vmatprep.subr.mxu0 %v11256_v23 }
 0x421   :  { %7661 = vmatmul.mubr.msk.bf16.gmra.mxu0 %vm147_vm0, %v2987_v55  ;;  %v9817_v55 = vrot.slane %v129_v34, %v3001_v61 }
 0x422   :  { %3202 = vmatprep.mubr.bf16.mxu0 %v11254_v31 }
 0x429   :  { %7662 = vmatmul.mubr.msk.bf16.gmra.mxu0 %vm147_vm0, %v2988_v53 }
 0x42a   :  { %3212 = vmatprep.mubr.bf16.mxu0 %v11254_v31 }
 0x431   :  { %7663 = vmatmul.mubr.msk.bf16.gmra.mxu0 %vm147_vm0, %v2989_v60 }
 0x4b9   :  { %v3144_v2 = vpop.f32.mrf.mxu0 }
 0x4ba   :  { %v3145_v63 = vadd.f32 %v3144_v2, %v9812_v40 }
 0x4bb   :  { %v3146_v49 = vpop.f32.mrf.mxu0 }
 0x4bc   :  { %v3147_v8 = vadd.f32 %v3146_v49, %v9814_v25  ;;  %vm3320_vm3 = vcmp.ge.f32.partialorder %v3145_v63, 0.0  ;;  %v3368_v53 = vmul.f32 0.01, %v3145_v63 }
 0x4bd   :  { %v3148_v28 = vpop.f32.mrf.mxu0  ;;  %v8247_v45 = vpop.f32.mrf.mxu1 }
 0x4be   :  { %v3149_v50 = vadd.f32 %v3148_v28, %v9812_v40  ;;  %v3266_v54 = vadd.f32 %v8247_v45, %v9817_v55  ;;  %v3369_v3 = vmul.f32 0.01, %v3147_v8  ;;  %vm3321_vm5 = vcmp.ge.f32.partialorder %v3147_v8, 0.0 }
 0x4bf   :  { %v3150_v60 = vpop.f32.mrf.mxu0  ;;  %v3257_v52 = vpop.f32.mrf.mxu1  ;;  %v3416_v51 = vsel %vm3320_vm3, %v3145_v63, %v3368_v53 }
 0x4c0   :  { %vm3323_vm4 = vcmp.ge.f32.partialorder %v3149_v50, 0.0  ;;  %v3371_v9 = vmul.f32 0.01, %v3149_v50  ;;  %v3151_v20 = vadd.f32 %v3150_v60, %v9814_v25  ;;  %v3258_v24 = vadd.f32 %v3257_v52, %v9817_v55 }
 0x4c1   :  { %v3154_v21 = vpop.f32.mrf.mxu0  ;;  %v8248_v48 = vpop.f32.mrf.mxu1  ;;  %v3376_v5 = vmul.f32 0.01, %v3266_v54  ;;  %v3417_v29 = vsel %vm3321_vm5, %v3147_v8, %v3369_v3  ;;  %vm3328_vm7 = vcmp.ge.f32.partialorder %v3266_v54, 0.0 }
 0x4c2   :  { %vm3324_vm6 = vcmp.ge.f32.partialorder %v3151_v20, 0.0  ;;  %v3372_v4 = vmul.f32 0.01, %v3151_v20  ;;  %v3419_v13 = vsel %vm3323_vm4, %v3149_v50, %v3371_v9  ;;  %v3269_v38 = vadd.f32 %v8248_v48, %v9817_v55 }
 0x4c3   :  { %v3156_v33 = vpop.f32.mrf.mxu0  ;;  %v3260_v44 = vpop.f32.mrf.mxu1  ;;  %v3370_v2 = vmul.f32 0.01, %v3258_v24  ;;  %v9827_v49 = vadd.f32 %v3154_v21, %v9812_v40  ;;  %v3464_v63 = vpack.c.bf16 %v3419_v13, %v3416_v51  ;;  %vm3322_vm8 = vcmp.ge.f32.partialorder %v3258_v24, 0.0 }
 0x4c4   :  { %v3261_v34 = vadd.f32 %v3260_v44, %v9817_v55  ;;  %v3420_v61 = vsel %vm3324_vm6, %v3151_v20, %v3372_v4  ;;  %v3157_v28 = vadd.f32 %v3156_v33, %v9814_v25  ;;  %v3379_v50 = vmul.f32 0.01, %v3269_v38 }
 0x4c5   :  { %v3158_v45 = vpop.f32.mrf.mxu0  ;;  %v8251_v60 = vpop.f32.mrf.mxu1  ;;  %v3465_v52 = vpack.c.bf16 %v3420_v61, %v3417_v29  ;;  %vm3331_vm9 = vcmp.ge.f32.partialorder %v3269_v38, 0.0  ;;  %v3424_v20 = vsel %vm3328_vm7, %v3266_v54, %v3376_v5  ;;  %vm3326_vm11 = vcmp.ge.f32.partialorder %v9827_v49, 0.0 }
 0x4c6   :  { %v3373_v53 = vmul.f32 0.01, %v3261_v34  ;;  %v3159_v9 = vadd.f32 %v3158_v45, %v9812_v40  ;;  %vm3325_vm10 = vcmp.ge.f32.partialorder %v3261_v34, 0.0  ;;  %v3375_v21 = vmul.f32 0.01, %v3157_v28 }
 0x4c7   :  { %v3160_v48 = vpop.f32.mrf.mxu0  ;;  %v3273_v8 = vpop.f32.mrf.mxu1  ;;  %3670 = vmatprep.mubr.bf16.mxu1 %v3465_v52  ;;  %v3418_v13 = vsel %vm3322_vm8, %v3258_v24, %v3370_v2  ;;  %v3427_v33 = vsel %vm3331_vm9, %v3269_v38, %v3379_v50  ;;  %v9835_v44 = vadd.f32 %v8251_v60, %v9817_v55  ;;  %vm3327_vm13 = vcmp.ge.f32.partialorder %v3157_v28, 0.0 }
 0x4c8   :  { %v3161_v3 = vadd.f32 %v3160_v48, %v9814_v25  ;;  %3671 = vmatmul.mubr.bf16.vlgmr.msra.gmra.mxu1 %v3464_v63  ;;  %v3377_v61 = vmul.f32 0.01, %v3159_v9  ;;  %v3274_v45 = vadd.f32 %v3273_v8, %v9817_v55  ;;  %v3421_v54 = vsel %vm3325_vm10, %v3261_v34, %v3373_v53 }
 0x4c9   :  { %v3164_v4 = vpop.f32.mrf.mxu0  ;;  %v8252_v51 = vpop.f32.mrf.mxu1  ;;  %v3466_v24 = vpack.c.bf16 %v3421_v54, %v3418_v13  ;;  %v3469_v2 = vpack.c.bf16 %v3427_v33, %v3424_v20  ;;  %vm3329_vm14 = vcmp.ge.f32.partialorder %v3159_v9, 0.0  ;;  %v3374_v23 = vmul.f32 0.01, %v9827_v49 }
 0x4ca   :  { %vm3330_vm12 = vcmp.ge.f32.partialorder %v3161_v3, 0.0  ;;  %v3378_v29 = vmul.f32 0.01, %v3161_v3  ;;  %v9840_v5 = vadd.f32 %v3164_v4, %v9812_v40  ;;  %v3285_v60 = vadd.f32 %v8252_v51, %v9817_v55 }
 0x4cb   :  { %v3166_v52 = vpop.f32.mrf.mxu0  ;;  %v3276_v63 = vpop.f32.mrf.mxu1  ;;  %vm3340_vm15 = vcmp.ge.f32.partialorder %v9835_v44, 0.0  ;;  %v3388_v34 = vmul.f32 0.01, %v9835_v44  ;;  %8277 = vmatprep.mubr.bf16.mxu0 %v3466_v24  ;;  %v3423_v53 = vsel %vm3327_vm13, %v3157_v28, %v3375_v21  ;;  %vm3334_vm3 = vcmp.ge.f32.partialorder %v3274_v45, 0.0 }
 0x4cc   :  { %v3277_v48 = vadd.f32 %v3276_v63, %v9817_v55  ;;  %v3426_v38 = vsel %vm3330_vm12, %v3161_v3, %v3378_v29  ;;  %v9845_v50 = vadd.f32 %v3166_v52, %v9814_v25  ;;  %v3382_v3 = vmul.f32 0.01, %v3274_v45  ;;  %8278 = vmatmul.mubr.bf16.vlgmr.msra.gmra.mxu0 %v3469_v2 }
 0x4cd   :  { %v3168_v31 = vpop.f32.mrf.mxu0  ;;  %v8255_v8 = vpop.f32.mrf.mxu1  ;;  %v3468_v13 = vpack.c.bf16 %v3426_v38, %v3423_v53  ;;  %vm3332_vm4 = vcmp.ge.f32.partialorder %v9840_v5, 0.0  ;;  %v3425_v52 = vsel %vm3329_vm14, %v3159_v9, %v3377_v61  ;;  %v3380_v63 = vmul.f32 0.01, %v9840_v5 }
 0x4ce   :  { %v3385_v20 = vmul.f32 0.01, %v3277_v48  ;;  %vm3337_vm5 = vcmp.ge.f32.partialorder %v3277_v48, 0.0  ;;  %v3169_v33 = vadd.f32 %v3168_v31, %v9812_v40  ;;  %vm3343_vm6 = vcmp.ge.f32.partialorder %v3285_v60, 0.0 }
 0x4cf   :  { %v3170_v4 = vpop.f32.mrf.mxu0  ;;  %v3289_v51 = vpop.f32.mrf.mxu1  ;;  %v3391_v28 = vmul.f32 0.01, %v3285_v60  ;;  %vm3333_vm7 = vcmp.ge.f32.partialorder %v9845_v50, 0.0  ;;  %3678 = vmatprep.mubr.bf16.mxu1 %v3468_v13  ;;  %v3381_v24 = vmul.f32 0.01, %v9845_v50  ;;  %v9859_v38 = vadd.f32 %v8255_v8, %v9817_v55 }
 0x4d0   :  { %v3171_v29 = vadd.f32 %v3170_v4, %v9814_v25  ;;  %v9862_v31 = vadd.f32 %v3289_v51, %v9817_v55  ;;  %v3422_v9 = vsel %vm3326_vm11, %v9827_v49, %v3374_v23  ;;  %v3430_v13 = vsel %vm3334_vm3, %v3274_v45, %v3382_v3 }
 0x4d1   :  { %v3174_v21 = vpop.f32.mrf.mxu0  ;;  %v8256_v54 = vpop.f32.mrf.mxu1  ;;  %v3467_v61 = vpack.c.bf16 %v3425_v52, %v3422_v9  ;;  %v3433_v18 = vsel %vm3337_vm5, %v3277_v48, %v3385_v20  ;;  %vm3335_vm8 = vcmp.ge.f32.partialorder %v3169_v33, 0.0  ;;  %v3383_v47 = vmul.f32 0.01, %v3169_v33 }
 0x4d2   :  { %v9868_v2 = vadd.f32 %v3174_v21, %v9812_v40  ;;  %v3384_v8 = vmul.f32 0.01, %v3171_v29  ;;  %v9873_v58 = vadd.f32 %v8256_v54, %v9817_v55  ;;  %v3472_v51 = vpack.c.bf16 %v3433_v18, %v3430_v13 }
 0x4d3   :  { %v3176_v53 = vpop.f32.mrf.mxu0  ;;  %v3292_v4 = vpop.f32.mrf.mxu1  ;;  %vm3336_vm9 = vcmp.ge.f32.partialorder %v3171_v29, 0.0  ;;  %3679 = vmatmul.mubr.bf16.gmra.mxu1 %v3467_v61  ;;  %vm3352_vm10 = vcmp.ge.f32.partialorder %v9859_v38, 0.0  ;;  %v3400_v45 = vmul.f32 0.01, %v9859_v38  ;;  %vm3346_vm11 = vcmp.ge.f32.partialorder %v9862_v31, 0.0 }
 0x4d4   :  { %v9876_v23 = vadd.f32 %v3176_v53, %v9814_v25  ;;  %v3293_v49 = vadd.f32 %v3292_v4, %v9817_v55  ;;  %v3394_v48 = vmul.f32 0.01, %v9862_v31  ;;  %8281 = vmatprep.mubr.bf16.mxu0 %v3472_v51  ;;  %v9884_v18 = vmul.f32 0.01, %v9868_v2 }
 0x4d5   :  { %v3178_v52 = vpop.f32.mrf.mxu0  ;;  %v8259_v21 = vpop.f32.mrf.mxu1  ;;  %v3436_v3 = vsel %vm3340_vm15, %v9835_v44, %v3388_v34  ;;  %v3439_v20 = vsel %vm3343_vm6, %v3285_v60, %v3391_v28  ;;  %vm3338_vm12 = vcmp.ge.f32.partialorder %v9868_v2, 0.0  ;;  %vm3355_vm13 = vcmp.ge.f32.partialorder %v9873_v58, 0.0 }
 0x4d6   :  { %v3179_v54 = vadd.f32 %v3178_v52, %v9812_v40  ;;  %v3403_v53 = vmul.f32 0.01, %v9873_v58  ;;  %v3475_v4 = vpack.c.bf16 %v3439_v20, %v3436_v3  ;;  %v3432_v13 = vsel %vm3336_vm9, %v3171_v29, %v3384_v8 }
 0x4d7   :  { %v3180_v9 = vpop.f32.mrf.mxu0  ;;  %v3305_v61 = vpop.f32.mrf.mxu1  ;;  %vm3339_vm14 = vcmp.ge.f32.partialorder %v9876_v23, 0.0  ;;  %v3397_v51 = vmul.f32 0.01, %v3293_v49  ;;  %v9897_v44 = vadd.f32 %v8259_v21, %v9817_v55  ;;  %v3387_v52 = vmul.f32 0.01, %v9876_v23 }
 0x4d8   :  { %v3181_v60 = vadd.f32 %v3180_v9, %v9814_v25  ;;  %vm3349_vm15 = vcmp.ge.f32.partialorder %v3293_v49, 0.0  ;;  %8282 = vmatmul.mubr.bf16.gmra.mxu0 %v3475_v4  ;;  %v3306_v22 = vadd.f32 %v3305_v61, %v9817_v55  ;;  %v3429_v29 = vsel %vm3333_vm7, %v9845_v50, %v3381_v24 }
 0x4d9   :  { %v3184_v34 = vpop.f32.mrf.mxu0  ;;  %v8260_v28 = vpop.f32.mrf.mxu1  ;;  %vm3341_vm3 = vcmp.ge.f32.partialorder %v3179_v54, 0.0  ;;  %v3471_v8 = vpack.c.bf16 %v3432_v13, %v3429_v29  ;;  %v3428_v21 = vsel %vm3332_vm4, %v9840_v5, %v3380_v63  ;;  %v3431_v3 = vsel %vm3335_vm8, %v3169_v33, %v3383_v47 }
 0x4da   :  { %v3389_v35 = vmul.f32 0.01, %v3179_v54  ;;  %v3470_v36 = vpack.c.bf16 %v3431_v3, %v3428_v21  ;;  %v3317_v4 = vadd.f32 %v8260_v28, %v9817_v55  ;;  %v3412_v27 = vmul.f32 0.01, %v9897_v44 }
 0x4db   :  { %v3186_v20 = vpop.f32.mrf.mxu0  ;;  %v3308_v9 = vpop.f32.mrf.mxu1  ;;  %vm3342_vm5 = vcmp.ge.f32.partialorder %v3181_v60, 0.0  ;;  %v3390_v50 = vmul.f32 0.01, %v3181_v60  ;;  %3686 = vmatprep.mubr.bf16.mxu1 %v3471_v8  ;;  %v3445_v24 = vsel %vm3349_vm15, %v3293_v49, %v3397_v51  ;;  %vm3358_vm6 = vcmp.ge.f32.partialorder %v3306_v22, 0.0 }
 0x4dc   :  { %v3309_v61 = vadd.f32 %v3308_v9, %v9817_v55  ;;  %v3406_v5 = vmul.f32 0.01, %v3306_v22  ;;  %3687 = vmatmul.mubr.bf16.gmra.mxu1 %v3470_v36  ;;  %v3187_v47 = vadd.f32 %v3186_v20, %v9814_v25  ;;  %v3442_v33 = vsel %vm3346_vm11, %v9862_v31, %v3394_v48 }
 0x4dd   :  { %v3188_v13 = vpop.f32.mrf.mxu0  ;;  %v3185_v63 = vadd.f32 %v3184_v34, %v9812_v40  ;;  %vm3367_vm4 = vcmp.ge.f32.partialorder %v3317_v4, 0.0  ;;  %v3478_v28 = vpack.c.bf16 %v3445_v24, %v3442_v33  ;;  %v3448_v49 = vsel %vm3352_vm10, %v9859_v38, %v3400_v45 }
 0x4de   :  { %vm3361_vm7 = vcmp.ge.f32.partialorder %v3309_v61, 0.0  ;;  %v3409_v21 = vmul.f32 0.01, %v3309_v61  ;;  %v3451_v36 = vsel %vm3355_vm13, %v9873_v58, %v3403_v53  ;;  %v3189_v31 = vadd.f32 %v3188_v13, %v9812_v40 }
 0x4df   :  { %v3190_v29 = vpop.f32.mrf.mxu0  ;;  %8285 = vmatprep.mubr.bf16.mxu0 %v3478_v28  ;;  %v3481_v8 = vpack.c.bf16 %v3451_v36, %v3448_v49  ;;  %v3438_v48 = vsel %vm3342_vm5, %v3181_v60, %v3390_v50  ;;  %v3437_v34 = vsel %vm3341_vm3, %v3179_v54, %v3389_v35  ;;  %v3415_v20 = vmul.f32 0.01, %v3317_v4 }
 0x4e0   :  { %v3191_v51 = vadd.f32 %v3190_v29, %v9814_v25  ;;  %vm3345_vm8 = vcmp.ge.f32.partialorder %v3187_v47, 0.0  ;;  %v3393_v9 = vmul.f32 0.01, %v3187_v47  ;;  %v3435_v38 = vsel %vm3339_vm14, %v9876_v23, %v3387_v52 }
 0x4e1   :  { %v3194_v3 = vpop.f32.mrf.mxu0  ;;  %8286 = vmatmul.mubr.bf16.gmra.mxu0 %v3481_v8  ;;  %v3474_v45 = vpack.c.bf16 %v3438_v48, %v3435_v38  ;;  %v3434_v53 = vsel %vm3338_vm12, %v9868_v2, %v9884_v18  ;;  %v3454_v54 = vsel %vm3358_vm6, %v3306_v22, %v3406_v5  ;;  %v3457_v24 = vsel %vm3361_vm7, %v3309_v61, %v3409_v21 }
 0x4e2   :  { %vm3348_vm9 = vcmp.ge.f32.partialorder %v3191_v51, 0.0  ;;  %v3396_v58 = vmul.f32 0.01, %v3191_v51  ;;  %v3473_v50 = vpack.c.bf16 %v3437_v34, %v3434_v53  ;;  %vm3364_vm10 = vcmp.ge.f32.partialorder %v9897_v44, 0.0 }
 0x4e3   :  { %v3196_v60 = vpop.f32.mrf.mxu0  ;;  %v3395_v23 = vmul.f32 0.01, %v3189_v31  ;;  %3694 = vmatprep.mubr.bf16.mxu1 %v3474_v45  ;;  %v3484_v52 = vpack.c.bf16 %v3457_v24, %v3454_v54  ;;  %vm3347_vm11 = vcmp.ge.f32.partialorder %v3189_v31, 0.0  ;;  %v3463_v33 = vsel %vm3367_vm4, %v3317_v4, %v3415_v20 }
 0x4e4   :  { %v3197_v35 = vadd.f32 %v3196_v60, %v9814_v25  ;;  %3695 = vmatmul.mubr.bf16.gmra.mxu1 %v3473_v50  ;;  %vm3344_vm13 = vcmp.ge.f32.partialorder %v3185_v63, 0.0  ;;  %v3392_v2 = vmul.f32 0.01, %v3185_v63  ;;  %v3441_v28 = vsel %vm3345_vm8, %v3187_v47, %v3393_v9 }
 0x4e5   :  { %v3198_v13 = vpop.f32.mrf.mxu0  ;;  %8289 = vmatprep.mubr.bf16.mxu0 %v3484_v52  ;;  %v3444_v22 = vsel %vm3348_vm9, %v3191_v51, %v3396_v58  ;;  %v3460_v61 = vsel %vm3364_vm10, %v9897_v44, %v3412_v27  ;;  %v3443_v4 = vsel %vm3347_vm11, %v3189_v31, %v3395_v23  ;;  %v3195_v47 = vadd.f32 %v3194_v3, %v9812_v40 }
 0x4e6   :  { %v3399_v5 = vmul.f32 0.01, %v3197_v35  ;;  %v3477_v21 = vpack.c.bf16 %v3444_v22, %v3441_v28  ;;  %vm3351_vm12 = vcmp.ge.f32.partialorder %v3197_v35, 0.0  ;;  %v3487_v49 = vpack.c.bf16 %v3463_v33, %v3460_v61 }
 0x4e7   :  { %v3200_v18 = vpop.f32.mrf.mxu0  ;;  %v3199_v36 = vadd.f32 %v3198_v13, %v9812_v40  ;;  %v3440_v51 = vsel %vm3344_vm13, %v3185_v63, %v3392_v2  ;;  %v11272_v38 = vmov 0.0   ;;  %v3398_v53 = vmul.f32 0.01, %v3195_v47 }
 0x4e8   :  { %v3201_v29 = vadd.f32 %v3200_v18, %v9814_v25  ;;  %3702 = vmatprep.mubr.bf16.mxu1 %v3477_v21  ;;  %v3476_v27 = vpack.c.bf16 %v3443_v4, %v3440_v51  ;;  %v3447_v20 = vsel %vm3351_vm12, %v3197_v35, %v3399_v5  ;;  %vm3350_vm3 = vcmp.ge.f32.partialorder %v3195_v47, 0.0 }
 0x4e9   :  { %v3204_v8 = vpop.f32.mrf.mxu0  ;;  %8290 = vmatmul.mubr.bf16.gmra.mxu0 %v3487_v49  ;;  %v3401_v58 = vmul.f32 0.01, %v3199_v36  ;;  %vm3353_vm15 = vcmp.ge.f32.partialorder %v3199_v36, 0.0  ;;  %v3446_v52 = vsel %vm3350_vm3, %v3195_v47, %v3398_v53 }
 0x4ea   :  { %vm3354_vm14 = vcmp.ge.f32.partialorder %v3201_v29, 0.0  ;;  %v3402_v48 = vmul.f32 0.01, %v3201_v29  ;;  %8295 = vmatprep.mubr.msk.f32.mxu0 %vm8808_vm1, %v11272_v38  ;;  %v3205_v23 = vadd.f32 %v3204_v8, %v9812_v40 }
 0x4eb   :  { %v3206_v34 = vpop.f32.mrf.mxu0  ;;  %v3449_v35 = vsel %vm3353_vm15, %v3199_v36, %v3401_v58 }
 0x4ec   :  { %v3207_v44 = vadd.f32 %v3206_v34, %v9814_v25  ;;  %v3450_v9 = vsel %vm3354_vm14, %v3201_v29, %v3402_v48  ;;  %3703 = vmatmul.mubr.bf16.gmra.mxu1 %v3476_v27  ;;  %v3479_v33 = vpack.c.bf16 %v3449_v35, %v3446_v52  ;;  %v3404_v29 = vmul.f32 0.01, %v3205_v23 }
 0x4ed   :  { %v3208_v31 = vpop.f32.mrf.mxu0  ;;  %v3480_v45 = vpack.c.bf16 %v3450_v9, %v3447_v20  ;;  %vm3356_vm7 = vcmp.ge.f32.partialorder %v3205_v23, 0.0 }
 0x4ee   :  { %v3405_v3 = vmul.f32 0.01, %v3207_v44  ;;  %vm3357_vm5 = vcmp.ge.f32.partialorder %v3207_v44, 0.0  ;;  %v3209_v50 = vadd.f32 %v3208_v31, %v9812_v40  ;;  %v3452_v51 = vsel %vm3356_vm7, %v3205_v23, %v3404_v29 }
 0x4ef   :  { %v3210_v60 = vpop.f32.mrf.mxu0  ;;  %3710 = vmatprep.mubr.bf16.mxu1 %v3480_v45 }
 0x4f0   :  { %v3211_v63 = vadd.f32 %v3210_v60, %v9814_v25  ;;  %v3453_v18 = vsel %vm3357_vm5, %v3207_v44, %v3405_v3  ;;  %v3407_v22 = vmul.f32 0.01, %v3209_v50  ;;  %vm3359_vm4 = vcmp.ge.f32.partialorder %v3209_v50, 0.0 }
 0x4f1   :  { %v3214_v54 = vpop.f32.mrf.mxu0 }
 0x4f2   :  { %vm3360_vm6 = vcmp.ge.f32.partialorder %v3211_v63, 0.0  ;;  %v3408_v24 = vmul.f32 0.01, %v3211_v63  ;;  %v3455_v8 = vsel %vm3359_vm4, %v3209_v50, %v3407_v22  ;;  %v3215_v47 = vadd.f32 %v3214_v54, %v9812_v40  ;;  %v9963_v50 = vld [vmem:[%s11252_s7] ss:$0 sm:$0xff] }
 0x4f3   :  { %v3216_v13 = vpop.f32.mrf.mxu0  ;;  %v3482_v34 = vpack.c.bf16 %v3455_v8, %v3452_v51 }
 0x4f4   :  { %v3217_v2 = vadd.f32 %v3216_v13, %v9814_v25  ;;  %v3456_v28 = vsel %vm3360_vm6, %v3211_v63, %v3408_v24  ;;  %3711 = vmatmul.mubr.bf16.gmra.mxu1 %v3479_v33  ;;  %v3410_v58 = vmul.f32 0.01, %v3215_v47  ;;  %vm3362_vm11 = vcmp.ge.f32.partialorder %v3215_v47, 0.0 }
 0x4f5   :  { %v3218_v5 = vpop.f32.mrf.mxu0  ;;  %v3483_v61 = vpack.c.bf16 %v3456_v28, %v3453_v18 }
 0x4f6   :  { %v3411_v49 = vmul.f32 0.01, %v3217_v2  ;;  %vm3363_vm8 = vcmp.ge.f32.partialorder %v3217_v2, 0.0  ;;  %v3219_v4 = vadd.f32 %v3218_v5, %v9812_v40  ;;  %v3458_v45 = vsel %vm3362_vm11, %v3215_v47, %v3410_v58 }
 0x4f7   :  { %v3220_v21 = vpop.f32.mrf.mxu0  ;;  %3718 = vmatprep.mubr.bf16.mxu1 %v3483_v61 }
 0x4f8   :  { %v3221_v36 = vadd.f32 %v3220_v21, %v9814_v25  ;;  %v3459_v27 = vsel %vm3363_vm8, %v3217_v2, %v3411_v49  ;;  %v3413_v20 = vmul.f32 0.01, %v3219_v4  ;;  %vm3365_vm10 = vcmp.ge.f32.partialorder %v3219_v4, 0.0 }
 0x4fa   :  { %vm3366_vm9 = vcmp.ge.f32.partialorder %v3221_v36, 0.0  ;;  %v3414_v48 = vmul.f32 0.01, %v3221_v36  ;;  %v3461_v31 = vsel %vm3365_vm10, %v3219_v4, %v3413_v20 }
 0x4fb   :  { %v3485_v53 = vpack.c.bf16 %v3461_v31, %v3458_v45 }
 0x4fc   :  { %v3462_v44 = vsel %vm3366_vm9, %v3221_v36, %v3414_v48  ;;  %3719 = vmatmul.mubr.bf16.gmra.mxu1 %v3482_v34 }
 0x4fd   :  { %v3486_v9 = vpack.c.bf16 %v3462_v44, %v3459_v27 }
 0x4ff   :  { %3726 = vmatprep.mubr.bf16.mxu1 %v3486_v9 }
 0x504   :  { %3727 = vmatmul.mubr.bf16.gmra.mxu1 %v3485_v53 }
 0x505   :  { %8300 = vmatprep.mubr.msk.f32.mxu1 %vm8808_vm1, %v11272_v38 }
 0x588   :  { %v7854_v60 = vpop.f32.mrf.mxu1 }
 0x58a   :  { %v7855_v3 = vpop.f32.mrf.mxu1 }
 0x58b   :  { %v7856_v63 = vadd.f32 %v7855_v3, %v7854_v60 }
 0x58c   :  { %v7857_v35 = vpop.f32.mrf.mxu1  ;;  %v8279_v23 = vpop.f32.mrf.mxu0 }
 0x58d   :  { %v3673_v24 = vadd.f32 %v7856_v63, %v9963_v50 }
 0x58e   :  { %v7858_v54 = vpop.f32.mrf.mxu1  ;;  %v3769_v13 = vpop.f32.mrf.mxu0 }
 0x58f   :  { %v7859_v52 = vadd.f32 %v7858_v54, %v7857_v35  ;;  %v3770_v33 = vadd.f32 %v3769_v13, %v3673_v24 }
 0x590   :  { %v8280_v18 = vpop.f32.mrf.mxu0 }
 0x591   :  { %v3676_v2 = vadd.f32 %v7859_v52, %v9963_v50  ;;  %v9968_v28 = vadd.f32 %v3770_v33, %v9629_v6 }
 0x592   :  { %v3772_v5 = vpop.f32.mrf.mxu0 }
 0x593   :  { %v7860_v22 = vpop.f32.mrf.mxu1  ;;  %v3773_v61 = vadd.f32 %v3772_v5, %v3676_v2  ;;  %v3848_v29 = vsel %vm147_vm0, %v9968_v28, 0.0 }
 0x594   :  { %3849 = vadd.xlane.f32.xlu0 %v3848_v29 }
 0x595   :  { %v7861_v21 = vpop.f32.mrf.mxu1  ;;  %v9973_v36 = vadd.f32 %v3773_v61, %v9632_v7 }
 0x596   :  { %v7862_v49 = vadd.f32 %v7861_v21, %v7860_v22 }
 0x597   :  { %v7863_v4 = vpop.f32.mrf.mxu1  ;;  %v3851_v48 = vsel %vm147_vm0, %v9973_v36, 0.0 }
 0x598   :  { %v3681_v8 = vadd.f32 %v7862_v49, %v9963_v50  ;;  %3852 = vadd.xlane.f32.xlu1 %v3851_v48  ;;  %v8283_v47 = vpop.f32.mrf.mxu0 }
 0x599   :  { %v7864_v6 = vpop.f32.mrf.mxu1 }
 0x59a   :  { %v7865_v51 = vadd.f32 %v7864_v6, %v7863_v4  ;;  %v3778_v34 = vadd.f32 %v8279_v23, %v3681_v8  ;;  %v3785_v9 = vpop.f32.mrf.mxu0 }
 0x59c   :  { %v3684_v27 = vadd.f32 %v7865_v51, %v9963_v50  ;;  %v7866_v44 = vpop.f32.mrf.mxu1  ;;  %v9980_v20 = vadd.f32 %v3778_v34, %v9642_v42  ;;  %v8284_v63 = vpop.f32.mrf.mxu0 }
 0x59e   :  { %v7867_v7 = vpop.f32.mrf.mxu1  ;;  %v3854_v58 = vsel %vm147_vm0, %v9980_v20, 0.0  ;;  %v3781_v31 = vadd.f32 %v8280_v18, %v3684_v27  ;;  %v3788_v33 = vpop.f32.mrf.mxu0 }
 0x59f   :  { %v7868_v45 = vadd.f32 %v7867_v7, %v7866_v44  ;;  %3855 = vadd.xlane.f32.xlu0 %v3854_v58 }
 0x5a0   :  { %v7869_v53 = vpop.f32.mrf.mxu1  ;;  %v9985_v60 = vadd.f32 %v3781_v31, %v9647_v43 }
 0x5a1   :  { %v3689_v3 = vadd.f32 %v7868_v45, %v9963_v50  ;;  %v8287_v21 = vpop.f32.mrf.mxu0 }
 0x5a2   :  { %v7870_v35 = vpop.f32.mrf.mxu1  ;;  %v3857_v42 = vsel %vm147_vm0, %v9985_v60, 0.0 }
 0x5a3   :  { %v7871_v54 = vadd.f32 %v7870_v35, %v7869_v53  ;;  %3858 = vadd.xlane.f32.xlu1 %v3857_v42  ;;  %v3786_v24 = vadd.f32 %v3785_v9, %v3689_v3  ;;  %v3801_v34 = vpop.f32.mrf.mxu0 }
 0x5a4   :  { %v7872_v23 = vpop.f32.mrf.mxu1 }
 0x5a5   :  { %v3692_v52 = vadd.f32 %v7871_v54, %v9963_v50  ;;  %v9992_v13 = vadd.f32 %v3786_v24, %v9669_v37  ;;  %v8288_v31 = vpop.f32.mrf.mxu0 }
 0x5a6   :  { %v7873_v2 = vpop.f32.mrf.mxu1 }
 0x5a7   :  { %v7874_v43 = vadd.f32 %v7873_v2, %v7872_v23  ;;  %v3860_v18 = vsel %vm147_vm0, %v9992_v13, 0.0  ;;  %v3789_v22 = vadd.f32 %v3788_v33, %v3692_v52  ;;  %v3804_v54 = vpop.f32.mrf.mxu0 }
 0x5a8   :  { %v7875_v5 = vpop.f32.mrf.mxu1  ;;  %3861 = vadd.xlane.f32.xlu0 %v3860_v18 }
 0x5a9   :  { %v3697_v61 = vadd.f32 %v7874_v43, %v9963_v50  ;;  %v9998_v29 = vadd.f32 %v3789_v22, %v9672_v14  ;;  %v8291_v18 = vpop.f32.mrf.mxu0 }
 0x5aa   :  { %v7876_v49 = vpop.f32.mrf.mxu1 }
 0x5ab   :  { %v7877_v4 = vadd.f32 %v7876_v49, %v7875_v5  ;;  %v3863_v37 = vsel %vm147_vm0, %v9998_v29, 0.0  ;;  %v3794_v8 = vadd.f32 %v8283_v47, %v3697_v61 }
 0x5ac   :  { %v7878_v48 = vpop.f32.mrf.mxu1  ;;  %3864 = vadd.xlane.f32.xlu1 %v3863_v37 }
 0x5ad   :  { %v3700_v6 = vadd.f32 %v7877_v4, %v9963_v50  ;;  %v10004_v51 = vadd.f32 %v3794_v8, %v9686_v56  ;;  %v3817_v8 = vpop.f32.mrf.mxu0 }
 0x5ae   :  { %v7879_v27 = vpop.f32.mrf.mxu1 }
 0x5af   :  { %v7880_v44 = vadd.f32 %v7879_v27, %v7878_v48  ;;  %v3866_v14 = vsel %vm147_vm0, %v10004_v51, 0.0  ;;  %v3797_v9 = vadd.f32 %v8284_v63, %v3700_v6 }
 0x5b0   :  { %v7881_v7 = vpop.f32.mrf.mxu1  ;;  %3867 = vadd.xlane.f32.xlu0 %v3866_v14  ;;  %v8292_v14 = vpop.f32.mrf.mxu0 }
 0x5b1   :  { %v3705_v58 = vadd.f32 %v7880_v44, %v9963_v50  ;;  %v10010_v47 = vadd.f32 %v3797_v9, %v9694_v26 }
 0x5b2   :  { %v7882_v45 = vpop.f32.mrf.mxu1 }
 0x5b3   :  { %v7883_v53 = vadd.f32 %v7882_v45, %v7881_v7  ;;  %v3869_v56 = vsel %vm147_vm0, %v10010_v47, 0.0  ;;  %v3802_v3 = vadd.f32 %v3801_v34, %v3705_v58 }
 0x5b4   :  { %v7884_v35 = vpop.f32.mrf.mxu1  ;;  %3870 = vadd.xlane.f32.xlu1 %v3869_v56  ;;  %v3820_v56 = vpop.f32.mrf.mxu0 }
 0x5b5   :  { %v3708_v42 = vadd.f32 %v7883_v53, %v9963_v50  ;;  %v10016_v63 = vadd.f32 %v3802_v3, %v9712_v57 }
 0x5b6   :  { %v7885_v24 = vpop.f32.mrf.mxu1 }
 0x5b7   :  { %v7886_v23 = vadd.f32 %v7885_v24, %v7884_v35  ;;  %v3872_v26 = vsel %vm147_vm0, %v10016_v63, 0.0  ;;  %v3805_v52 = vadd.f32 %v3804_v54, %v3708_v42 }
 0x5b8   :  { %v7887_v33 = vpop.f32.mrf.mxu1  ;;  %3873 = vadd.xlane.f32.xlu0 %v3872_v26 }
 0x5b9   :  { %v3713_v2 = vadd.f32 %v7886_v23, %v9963_v50  ;;  %v10022_v43 = vadd.f32 %v3805_v52, %v9715_v16 }
 0x5ba   :  { %v7888_v22 = vpop.f32.mrf.mxu1 }
 0x5bb   :  { %v7889_v5 = vadd.f32 %v7888_v22, %v7887_v33  ;;  %v3875_v57 = vsel %vm147_vm0, %v10022_v43, 0.0  ;;  %v3810_v61 = vadd.f32 %v8287_v21, %v3713_v2 }
 0x5bc   :  { %v7890_v49 = vpop.f32.mrf.mxu1  ;;  %3876 = vadd.xlane.f32.xlu1 %v3875_v57 }
 0x5bd   :  { %v3716_v4 = vadd.f32 %v7889_v5, %v9963_v50  ;;  %v10028_v37 = vadd.f32 %v3810_v61, %v9729_v0 }
 0x5be   :  { %v7891_v48 = vpop.f32.mrf.mxu1 }
 0x5bf   :  { %v7892_v6 = vadd.f32 %v7891_v48, %v7890_v49  ;;  %v3878_v16 = vsel %vm147_vm0, %v10028_v37, 0.0  ;;  %v3813_v34 = vadd.f32 %v8288_v31, %v3716_v4 }
 0x5c0   :  { %v7893_v27 = vpop.f32.mrf.mxu1  ;;  %3879 = vadd.xlane.f32.xlu0 %v3878_v16 }
 0x5c1   :  { %v3721_v44 = vadd.f32 %v7892_v6, %v9963_v50  ;;  %v10034_v21 = vadd.f32 %v3813_v34, %v9734_v41 }
 0x5c2   :  { %v7894_v9 = vpop.f32.mrf.mxu1 }
 0x5c3   :  { %v7895_v7 = vadd.f32 %v7894_v9, %v7893_v27  ;;  %v3881_v0 = vsel %vm147_vm0, %v10034_v21, 0.0  ;;  %v3818_v58 = vadd.f32 %v3817_v8, %v3721_v44 }
 0x5c4   :  { %v7896_v45 = vpop.f32.mrf.mxu1  ;;  %3882 = vadd.xlane.f32.xlu1 %v3881_v0 }
 0x5c5   :  { %v3724_v53 = vadd.f32 %v7895_v7, %v9963_v50  ;;  %v10040_v31 = vadd.f32 %v3818_v58, %v9745_v32 }
 0x5c6   :  { %v7897_v3 = vpop.f32.mrf.mxu1 }
 0x5c7   :  { %v7898_v35 = vadd.f32 %v7897_v3, %v7896_v45  ;;  %v3884_v41 = vsel %vm147_vm0, %v10040_v31, 0.0  ;;  %v3821_v42 = vadd.f32 %v3820_v56, %v3724_v53 }
 0x5c8   :  { %v7899_v54 = vpop.f32.mrf.mxu1  ;;  %3885 = vadd.xlane.f32.xlu0 %v3884_v41 }
 0x5c9   :  { %v3729_v24 = vadd.f32 %v7898_v35, %v9963_v50  ;;  %v10046_v23 = vadd.f32 %v3821_v42, %v9748_v46 }
 0x5ca   :  { %v7900_v26 = vpop.f32.mrf.mxu1 }
 0x5cb   :  { %v7901_v52 = vadd.f32 %v7900_v26, %v7899_v54  ;;  %v3887_v32 = vsel %vm147_vm0, %v10046_v23, 0.0  ;;  %v3826_v33 = vadd.f32 %v8291_v18, %v3729_v24 }
 0x5cc   :  { %3888 = vadd.xlane.f32.xlu1 %v3887_v32 }
 0x5cd   :  { %v3732_v2 = vadd.f32 %v7901_v52, %v9963_v50  ;;  %v10052_v22 = vadd.f32 %v3826_v33, %v9758_v15 }
 0x5cf   :  { %v3890_v5 = vsel %vm147_vm0, %v10052_v22, 0.0  ;;  %v3829_v57 = vadd.f32 %v8292_v14, %v3732_v2 }
 0x5d0   :  { %3891 = vadd.xlane.f32.xlu0 %v3890_v5 }
 0x5d1   :  { %v10057_v46 = vadd.f32 %v3829_v57, %v9761_v1 }
 0x5d3   :  { %v3893_v61 = vsel %vm147_vm0, %v10057_v46, 0.0 }
 0x5d4   :  { %3894 = vadd.xlane.f32.xlu1 %v3893_v61 }
 0x61d   :  { %v3850_v49 = vpop.xlane.xlu0 %3849 }
 0x61e   :  { %v3896_v18 = vmul.f32 0.0125, %v3850_v49 }
 0x620   :  { %v10062_v4 = vsub.f32 %v9968_v28, %v3896_v18 }
 0x621   :  { %v3853_v50 = vpop.xlane.xlu1 %3852 }
 0x622   :  { %v3897_v15 = vmul.f32 0.0125, %v3853_v50  ;;  %v3928_v8 = vmul.f32 %v10062_v4, %v10062_v4 }
 0x624   :  { %v10067_v48 = vsub.f32 %v9973_v36, %v3897_v15  ;;  %v3944_v1 = vsel %vm147_vm0, %v3928_v8, 0.0 }
 0x625   :  { %3945 = vadd.xlane.f32.xlu0 %v3944_v1 }
 0x626   :  { %v3929_v6 = vmul.f32 %v10067_v48, %v10067_v48 }
 0x628   :  { %v3856_v16 = vpop.xlane.xlu0 %3855  ;;  %v3947_v27 = vsel %vm147_vm0, %v3929_v6, 0.0 }
 0x629   :  { %v3898_v34 = vmul.f32 0.0125, %v3856_v16  ;;  %3948 = vadd.xlane.f32.xlu1 %v3947_v27 }
 0x62b   :  { %v10074_v28 = vsub.f32 %v9980_v20, %v3898_v34 }
 0x62c   :  { %v3859_v44 = vpop.xlane.xlu1 %3858 }
 0x62d   :  { %v3899_v14 = vmul.f32 0.0125, %v3859_v44  ;;  %v3930_v36 = vmul.f32 %v10074_v28, %v10074_v28 }
 0x62f   :  { %v10079_v9 = vsub.f32 %v9985_v60, %v3899_v14  ;;  %v3950_v7 = vsel %vm147_vm0, %v3930_v36, 0.0 }
 0x630   :  { %3951 = vadd.xlane.f32.xlu0 %v3950_v7 }
 0x631   :  { %v3862_v0 = vpop.xlane.xlu0 %3861  ;;  %v3931_v58 = vmul.f32 %v10079_v9, %v10079_v9 }
 0x632   :  { %v3900_v45 = vmul.f32 0.0125, %v3862_v0 }
 0x633   :  { %v3953_v53 = vsel %vm147_vm0, %v3931_v58, 0.0 }
 0x634   :  { %v10086_v20 = vsub.f32 %v9992_v13, %v3900_v45  ;;  %3954 = vadd.xlane.f32.xlu1 %v3953_v53 }
 0x635   :  { %v3865_v56 = vpop.xlane.xlu1 %3864 }
 0x636   :  { %v3901_v3 = vmul.f32 0.0125, %v3865_v56  ;;  %v3932_v60 = vmul.f32 %v10086_v20, %v10086_v20 }
 0x638   :  { %v10091_v35 = vsub.f32 %v9998_v29, %v3901_v3  ;;  %v3956_v41 = vsel %vm147_vm0, %v3932_v60, 0.0 }
 0x639   :  { %3957 = vadd.xlane.f32.xlu0 %v3956_v41  ;;  %v3868_v42 = vpop.xlane.xlu0 %3867 }
 0x63a   :  { %v3902_v54 = vmul.f32 0.0125, %v3868_v42  ;;  %v3933_v24 = vmul.f32 %v10091_v35, %v10091_v35 }
 0x63c   :  { %v10097_v13 = vsub.f32 %v10004_v51, %v3902_v54  ;;  %v3959_v26 = vsel %vm147_vm0, %v3933_v24, 0.0 }
 0x63d   :  { %3960 = vadd.xlane.f32.xlu1 %v3959_v26  ;;  %v3871_v52 = vpop.xlane.xlu1 %3870 }
 0x63e   :  { %v3903_v32 = vmul.f32 0.0125, %v3871_v52  ;;  %v3934_v29 = vmul.f32 %v10097_v13, %v10097_v13 }
 0x640   :  { %v10103_v33 = vsub.f32 %v10010_v47, %v3903_v32  ;;  %v3962_v2 = vsel %vm147_vm0, %v3934_v29, 0.0 }
 0x641   :  { %3963 = vadd.xlane.f32.xlu0 %v3962_v2  ;;  %v3874_v5 = vpop.xlane.xlu0 %3873 }
 0x642   :  { %v3904_v57 = vmul.f32 0.0125, %v3874_v5  ;;  %v3935_v51 = vmul.f32 %v10103_v33, %v10103_v33 }
 0x644   :  { %v10109_v61 = vsub.f32 %v10016_v63, %v3904_v57  ;;  %v3965_v49 = vsel %vm147_vm0, %v3935_v51, 0.0 }
 0x645   :  { %3966 = vadd.xlane.f32.xlu1 %v3965_v49  ;;  %v3877_v18 = vpop.xlane.xlu1 %3876 }
 0x646   :  { %v3905_v50 = vmul.f32 0.0125, %v3877_v18  ;;  %v3936_v47 = vmul.f32 %v10109_v61, %v10109_v61 }
 0x648   :  { %v10115_v15 = vsub.f32 %v10022_v43, %v3905_v50  ;;  %v3968_v8 = vsel %vm147_vm0, %v3936_v47, 0.0 }
 0x649   :  { %3969 = vadd.xlane.f32.xlu0 %v3968_v8  ;;  %v3880_v1 = vpop.xlane.xlu0 %3879 }
 0x64a   :  { %v3906_v6 = vmul.f32 0.0125, %v3880_v1  ;;  %v3937_v63 = vmul.f32 %v10115_v15, %v10115_v15 }
 0x64c   :  { %v10121_v16 = vsub.f32 %v10028_v37, %v3906_v6  ;;  %v3971_v34 = vsel %vm147_vm0, %v3937_v63, 0.0 }
 0x64d   :  { %3972 = vadd.xlane.f32.xlu1 %v3971_v34  ;;  %v3883_v27 = vpop.xlane.xlu1 %3882 }
 0x64e   :  { %v3907_v44 = vmul.f32 0.0125, %v3883_v27  ;;  %v3938_v43 = vmul.f32 %v10121_v16, %v10121_v16 }
 0x650   :  { %v10127_v14 = vsub.f32 %v10034_v21, %v3907_v44  ;;  %v3974_v36 = vsel %vm147_vm0, %v3938_v43, 0.0 }
 0x651   :  { %3975 = vadd.xlane.f32.xlu0 %v3974_v36  ;;  %v3886_v7 = vpop.xlane.xlu0 %3885  ;;  %v10161_v36 = vld [vmem:[%s11247_s2] ss:$0 sm:$0xff] }
 0x652   :  { %v3908_v0 = vmul.f32 0.0125, %v3886_v7  ;;  %v3939_v37 = vmul.f32 %v10127_v14, %v10127_v14 }
 0x654   :  { %v10133_v58 = vsub.f32 %v10040_v31, %v3908_v0  ;;  %v3977_v45 = vsel %vm147_vm0, %v3939_v37, 0.0 }
 0x655   :  { %3978 = vadd.xlane.f32.xlu1 %v3977_v45  ;;  %v3889_v53 = vpop.xlane.xlu1 %3888 }
 0x656   :  { %v3909_v56 = vmul.f32 0.0125, %v3889_v53  ;;  %v3940_v21 = vmul.f32 %v10133_v58, %v10133_v58 }
 0x658   :  { %v10139_v3 = vsub.f32 %v10046_v23, %v3909_v56  ;;  %v3980_v60 = vsel %vm147_vm0, %v3940_v21, 0.0  ;;  %v10168_v56 = vld [vmem:[%s11248_s3] ss:$0 sm:$0xff] }
 0x659   :  { %3981 = vadd.xlane.f32.xlu0 %v3980_v60  ;;  %v3892_v41 = vpop.xlane.xlu0 %3891 }
 0x65a   :  { %v3910_v42 = vmul.f32 0.0125, %v3892_v41  ;;  %v3941_v31 = vmul.f32 %v10139_v3, %v10139_v3 }
 0x65c   :  { %v10145_v54 = vsub.f32 %v10052_v22, %v3910_v42  ;;  %v3983_v24 = vsel %vm147_vm0, %v3941_v31, 0.0 }
 0x65d   :  { %3984 = vadd.xlane.f32.xlu1 %v3983_v24  ;;  %v3895_v26 = vpop.xlane.xlu1 %3894 }
 0x65e   :  { %v3911_v52 = vmul.f32 0.0125, %v3895_v26  ;;  %v3942_v23 = vmul.f32 %v10145_v54, %v10145_v54 }
 0x660   :  { %v10151_v32 = vsub.f32 %v10057_v46, %v3911_v52  ;;  %v3986_v29 = vsel %vm147_vm0, %v3942_v23, 0.0 }
 0x661   :  { %3987 = vadd.xlane.f32.xlu0 %v3986_v29 }
 0x662   :  { %v3943_v2 = vmul.f32 %v10151_v32, %v10151_v32 }
 0x664   :  { %v3989_v22 = vsel %vm147_vm0, %v3943_v2, 0.0 }
 0x665   :  { %3990 = vadd.xlane.f32.xlu1 %v3989_v22 }
 0x6ae   :  { %v3946_v5 = vpop.xlane.xlu0 %3945 }
 0x6af   :  { %v3992_v57 = vmul.f32 0.0125, %v3946_v5 }
 0x6b1   :  { %v4008_v51 = vadd.f32 1e-05, %v3992_v57 }
 0x6b2   :  { %v3949_v49 = vpop.xlane.xlu1 %3948 }
 0x6b3   :  { %8625 = vrsqrt.f32 %v4008_v51  ;;  %v3993_v18 = vmul.f32 0.0125, %v3949_v49 }
 0x6b5   :  { %v4009_v50 = vadd.f32 1e-05, %v3993_v18 }
 0x6b7   :  { %8627 = vrsqrt.f32 %v4009_v50 }
 0x6b9   :  { %v3952_v47 = vpop.xlane.xlu0 %3951 }
 0x6ba   :  { %v3994_v46 = vmul.f32 0.0125, %v3952_v47 }
 0x6bc   :  { %v4010_v8 = vadd.f32 1e-05, %v3994_v46 }
 0x6bd   :  { %v3955_v1 = vpop.xlane.xlu1 %3954 }
 0x6be   :  { %8629 = vrsqrt.f32 %v4010_v8  ;;  %v3995_v6 = vmul.f32 0.0125, %v3955_v1 }
 0x6c0   :  { %v4011_v63 = vadd.f32 1e-05, %v3995_v6  ;;  %v8626_v34 = vpop.eup %8625 }
 0x6c1   :  { %v4040_v27 = vmul.f32 %v8626_v34, %v10062_v4 }
 0x6c2   :  { %8631 = vrsqrt.f32 %v4011_v63  ;;  %v3958_v44 = vpop.xlane.xlu0 %3957 }
 0x6c3   :  { %v3996_v43 = vmul.f32 0.0125, %v3958_v44  ;;  %v4056_v7 = vmul.f32 %v10161_v36, %v4040_v27 }
 0x6c4   :  { %v8628_v0 = vpop.eup %8627 }
 0x6c5   :  { %v4012_v37 = vadd.f32 1e-05, %v3996_v43  ;;  %v4041_v45 = vmul.f32 %v8628_v0, %v10067_v48  ;;  %v10171_v4 = vadd.f32 %v10168_v56, %v4056_v7 }
 0x6c6   :  { %v3961_v53 = vpop.xlane.xlu1 %3960 }
 0x6c7   :  { %8633 = vrsqrt.f32 %v4012_v37  ;;  %v3997_v21 = vmul.f32 0.0125, %v3961_v53  ;;  %8294 = vmatpush3.xpose.msk.msra.mxu0 %vm147_vm0, %v10171_v4  ;;  %v4057_v60 = vmul.f32 %v10161_v36, %v4041_v45 }
 0x6c8   :  { %8303 = vmatprep.subr.mxu0 %v11272_v38 }
 0x6c9   :  { %v4013_v41 = vadd.f32 1e-05, %v3997_v21  ;;  %v10178_v42 = vadd.f32 %v10168_v56, %v4057_v60 }
 0x6ca   :  { %v3964_v48 = vpop.xlane.xlu0 %3963  ;;  %8296 = vmatmul.mubr.msk.f32.vlgmr.msra.gmra.mxu0 %vm147_vm0, %v10171_v4 }
 0x6cb   :  { %v8630_v31 = vpop.eup %8629  ;;  %8635 = vrsqrt.f32 %v4013_v41  ;;  %v3998_v24 = vmul.f32 0.0125, %v3964_v48  ;;  %8299 = vmatpush3.xpose.msk.msra.mxu1 %vm147_vm0, %v10178_v42  ;;  %8305 = vmatprep.mubr.msk.f32.mxu0 %vm8808_vm1, %v11272_v38 }
 0x6cc   :  { %v4042_v26 = vmul.f32 %v8630_v31, %v10074_v28  ;;  %8308 = vmatprep.subr.mxu1 %v11272_v38 }
 0x6cd   :  { %v4014_v52 = vadd.f32 1e-05, %v3998_v24 }
 0x6ce   :  { %v3967_v23 = vpop.xlane.xlu1 %3966  ;;  %v4058_v29 = vmul.f32 %v10161_v36, %v4042_v26  ;;  %8301 = vmatmul.mubr.msk.f32.vlgmr.msra.gmra.mxu1 %vm147_vm0, %v10178_v42 }
 0x6cf   :  { %v8632_v2 = vpop.eup %8631  ;;  %8637 = vrsqrt.f32 %v4014_v52  ;;  %v3999_v22 = vmul.f32 0.0125, %v3967_v23  ;;  %8310 = vmatprep.mubr.msk.f32.mxu1 %vm8808_vm1, %v11272_v38 }
 0x6d0   :  { %v4043_v28 = vmul.f32 %v8632_v2, %v10079_v9  ;;  %v10193_v5 = vadd.f32 %v10168_v56, %v4058_v29 }
 0x6d1   :  { %v4015_v57 = vadd.f32 1e-05, %v3999_v22 }
 0x6d2   :  { %v3970_v51 = vpop.xlane.xlu0 %3969  ;;  %8304 = vmatpush3.xpose.msk.msra.mxu0 %vm147_vm0, %v10193_v5  ;;  %v4059_v49 = vmul.f32 %v10161_v36, %v4043_v28 }
 0x6d3   :  { %8639 = vrsqrt.f32 %v4015_v57  ;;  %v4000_v18 = vmul.f32 0.0125, %v3970_v51  ;;  %8313 = vmatprep.subr.mxu0 %v11272_v38 }
 0x6d4   :  { %v8634_v50 = vpop.eup %8633  ;;  %v10202_v9 = vadd.f32 %v10168_v56, %v4059_v49 }
 0x6d5   :  { %v4044_v47 = vmul.f32 %v8634_v50, %v10086_v20  ;;  %v4016_v46 = vadd.f32 1e-05, %v4000_v18  ;;  %8306 = vmatmul.mubr.msk.f32.vlgmr.msra.gmra.mxu0 %vm147_vm0, %v10193_v5 }
 0x6d6   :  { %v3973_v8 = vpop.xlane.xlu1 %3972  ;;  %8309 = vmatpush3.xpose.msk.msra.mxu1 %vm147_vm0, %v10202_v9  ;;  %8315 = vmatprep.mubr.msk.f32.mxu0 %vm8808_vm1, %v11272_v38 }
 0x6d7   :  { %8641 = vrsqrt.f32 %v4016_v46  ;;  %v4001_v1 = vmul.f32 0.0125, %v3973_v8  ;;  %v4060_v6 = vmul.f32 %v10161_v36, %v4044_v47  ;;  %8318 = vmatprep.subr.mxu1 %v11272_v38 }
 0x6d8   :  { %v8636_v63 = vpop.eup %8635 }
 0x6d9   :  { %v4045_v20 = vmul.f32 %v8636_v63, %v10091_v35  ;;  %v4017_v34 = vadd.f32 1e-05, %v4001_v1  ;;  %8311 = vmatmul.mubr.msk.f32.vlgmr.msra.gmra.mxu1 %vm147_vm0, %v10202_v9  ;;  %v10217_v27 = vadd.f32 %v10168_v56, %v4060_v6 }
 0x6da   :  { %v3976_v44 = vpop.xlane.xlu0 %3975  ;;  %8320 = vmatprep.mubr.msk.f32.mxu1 %vm8808_vm1, %v11272_v38 }
 0x6db   :  { %8643 = vrsqrt.f32 %v4017_v34  ;;  %v4002_v43 = vmul.f32 0.0125, %v3976_v44  ;;  %8314 = vmatpush3.xpose.msk.msra.mxu0 %vm147_vm0, %v10217_v27  ;;  %v4061_v7 = vmul.f32 %v10161_v36, %v4045_v20 }
 0x6dc   :  { %v8638_v0 = vpop.eup %8637  ;;  %8323 = vmatprep.subr.mxu0 %v11272_v38 }
 0x6dd   :  { %v4046_v35 = vmul.f32 %v8638_v0, %v10097_v13  ;;  %v4018_v37 = vadd.f32 1e-05, %v4002_v43  ;;  %v10227_v45 = vadd.f32 %v10168_v56, %v4061_v7 }
 0x6de   :  { %v3979_v53 = vpop.xlane.xlu1 %3978  ;;  %8316 = vmatmul.mubr.msk.f32.vlgmr.msra.gmra.mxu0 %vm147_vm0, %v10217_v27 }
 0x6df   :  { %8645 = vrsqrt.f32 %v4018_v37  ;;  %v4003_v21 = vmul.f32 0.0125, %v3979_v53  ;;  %8319 = vmatpush3.xpose.msk.msra.mxu1 %vm147_vm0, %v10227_v45  ;;  %v4062_v60 = vmul.f32 %v10161_v36, %v4046_v35  ;;  %8325 = vmatprep.mubr.msk.f32.mxu0 %vm8808_vm1, %v11272_v38 }
 0x6e0   :  { %v8640_v41 = vpop.eup %8639  ;;  %8328 = vmatprep.subr.mxu1 %v11272_v38 }
 0x6e1   :  { %v4047_v13 = vmul.f32 %v8640_v41, %v10103_v33  ;;  %v4019_v48 = vadd.f32 1e-05, %v4003_v21  ;;  %v10239_v31 = vadd.f32 %v10168_v56, %v4062_v60 }
 0x6e2   :  { %8321 = vmatmul.mubr.msk.f32.vlgmr.msra.gmra.mxu1 %vm147_vm0, %v10227_v45  ;;  %v3982_v24 = vpop.xlane.xlu0 %3981 }
 0x6e3   :  { %8647 = vrsqrt.f32 %v4019_v48  ;;  %v4004_v26 = vmul.f32 0.0125, %v3982_v24  ;;  %8324 = vmatpush3.xpose.msk.msra.mxu0 %vm147_vm0, %v10239_v31  ;;  %v4063_v52 = vmul.f32 %v10161_v36, %v4047_v13  ;;  %8330 = vmatprep.mubr.msk.f32.mxu1 %vm8808_vm1, %v11272_v38 }
 0x6e4   :  { %v8642_v23 = vpop.eup %8641  ;;  %8333 = vmatprep.subr.mxu0 %v11272_v38 }
 0x6e5   :  { %v4048_v33 = vmul.f32 %v8642_v23, %v10109_v61  ;;  %v4020_v29 = vadd.f32 1e-05, %v4004_v26  ;;  %v10251_v2 = vadd.f32 %v10168_v56, %v4063_v52 }
 0x6e6   :  { %v3985_v22 = vpop.xlane.xlu1 %3984  ;;  %8326 = vmatmul.mubr.msk.f32.vlgmr.msra.gmra.mxu0 %vm147_vm0, %v10239_v31 }
 0x6e7   :  { %8649 = vrsqrt.f32 %v4020_v29  ;;  %v4005_v28 = vmul.f32 0.0125, %v3985_v22  ;;  %8329 = vmatpush3.xpose.msk.msra.mxu1 %vm147_vm0, %v10251_v2  ;;  %v4064_v57 = vmul.f32 %v10161_v36, %v4048_v33  ;;  %8335 = vmatprep.mubr.msk.f32.mxu0 %vm8808_vm1, %v11272_v38 }
 0x6e8   :  { %v8644_v51 = vpop.eup %8643  ;;  %8338 = vmatprep.subr.mxu1 %v11272_v38 }
 0x6e9   :  { %v4049_v61 = vmul.f32 %v8644_v51, %v10115_v15  ;;  %v4021_v49 = vadd.f32 1e-05, %v4005_v28  ;;  %v10263_v18 = vadd.f32 %v10168_v56, %v4064_v57 }
 0x6ea   :  { %8331 = vmatmul.mubr.msk.f32.vlgmr.msra.gmra.mxu1 %vm147_vm0, %v10251_v2  ;;  %v3988_v50 = vpop.xlane.xlu0 %3987 }
 0x6eb   :  { %8651 = vrsqrt.f32 %v4021_v49  ;;  %v4006_v47 = vmul.f32 0.0125, %v3988_v50  ;;  %8334 = vmatpush3.xpose.msk.msra.mxu0 %vm147_vm0, %v10263_v18  ;;  %v4065_v46 = vmul.f32 %v10161_v36, %v4049_v61  ;;  %8340 = vmatprep.mubr.msk.f32.mxu1 %vm8808_vm1, %v11272_v38  ;;  %v8727_v61 = vld [vmem:[%s11246_s1 + $0x10] sm:$0xff] }
 0x6ec   :  { %v8646_v8 = vpop.eup %8645  ;;  %8343 = vmatprep.subr.mxu0 %v11272_v38 }
 0x6ed   :  { %v4050_v15 = vmul.f32 %v8646_v8, %v10121_v16  ;;  %v4022_v1 = vadd.f32 1e-05, %v4006_v47  ;;  %v10275_v6 = vadd.f32 %v10168_v56, %v4065_v46 }
 0x6ee   :  { %v3991_v63 = vpop.xlane.xlu1 %3990  ;;  %8336 = vmatmul.mubr.msk.f32.vlgmr.msra.gmra.mxu0 %vm147_vm0, %v10263_v18 }
 0x6ef   :  { %8653 = vrsqrt.f32 %v4022_v1  ;;  %v4007_v20 = vmul.f32 0.0125, %v3991_v63  ;;  %8339 = vmatpush3.xpose.msk.msra.mxu1 %vm147_vm0, %v10275_v6  ;;  %v4066_v34 = vmul.f32 %v10161_v36, %v4050_v15  ;;  %8345 = vmatprep.mubr.msk.f32.mxu0 %vm8808_vm1, %v11272_v38  ;;  %v8729_v15 = vld [vmem:[%s11246_s1 + $0x20] sm:$0xff] }
 0x6f0   :  { %v8648_v44 = vpop.eup %8647  ;;  %8348 = vmatprep.subr.mxu1 %v11272_v38 }
 0x6f1   :  { %v4051_v16 = vmul.f32 %v8648_v44, %v10127_v14  ;;  %v4023_v43 = vadd.f32 1e-05, %v4007_v20  ;;  %v10287_v7 = vadd.f32 %v10168_v56, %v4066_v34 }
 0x6f2   :  { %8341 = vmatmul.mubr.msk.f32.vlgmr.msra.gmra.mxu1 %vm147_vm0, %v10275_v6 }
 0x6f3   :  { %8655 = vrsqrt.f32 %v4023_v43  ;;  %8344 = vmatpush3.xpose.msk.msra.mxu0 %vm147_vm0, %v10287_v7  ;;  %v4067_v0 = vmul.f32 %v10161_v36, %v4051_v16  ;;  %8350 = vmatprep.mubr.msk.f32.mxu1 %vm8808_vm1, %v11272_v38 }
 0x6f4   :  { %v8650_v35 = vpop.eup %8649  ;;  %8353 = vmatprep.subr.mxu0 %v11272_v38 }
 0x6f5   :  { %v4052_v14 = vmul.f32 %v8650_v35, %v10133_v58  ;;  %v10299_v37 = vadd.f32 %v10168_v56, %v4067_v0 }
 0x6f6   :  { %8346 = vmatmul.mubr.msk.f32.vlgmr.msra.gmra.mxu0 %vm147_vm0, %v10287_v7 }
 0x6f7   :  { %8349 = vmatpush3.xpose.msk.msra.mxu1 %vm147_vm0, %v10299_v37  ;;  %v4068_v53 = vmul.f32 %v10161_v36, %v4052_v14  ;;  %8355 = vmatprep.mubr.msk.f32.mxu0 %vm8808_vm1, %v11272_v38 }
 0x6f8   :  { %v8652_v21 = vpop.eup %8651  ;;  %8358 = vmatprep.subr.mxu1 %v11272_v38 }
 0x6f9   :  { %v4053_v60 = vmul.f32 %v8652_v21, %v10139_v3  ;;  %v10311_v58 = vadd.f32 %v10168_v56, %v4068_v53 }
 0x6fa   :  { %8351 = vmatmul.mubr.msk.f32.vlgmr.msra.gmra.mxu1 %vm147_vm0, %v10299_v37 }
 0x6fb   :  { %8354 = vmatpush3.xpose.msk.msra.mxu0 %vm147_vm0, %v10311_v58  ;;  %v4069_v41 = vmul.f32 %v10161_v36, %v4053_v60  ;;  %8360 = vmatprep.mubr.msk.f32.mxu1 %vm8808_vm1, %v11272_v38 }
 0x6fc   :  { %v8654_v13 = vpop.eup %8653  ;;  %8363 = vmatprep.subr.mxu0 %v11272_v38 }
 0x6fd   :  { %v4054_v48 = vmul.f32 %v8654_v13, %v10145_v54  ;;  %v10323_v3 = vadd.f32 %v10168_v56, %v4069_v41 }
 0x6fe   :  { %8356 = vmatmul.mubr.msk.f32.vlgmr.msra.gmra.mxu0 %vm147_vm0, %v10311_v58 }
 0x6ff   :  { %8359 = vmatpush3.xpose.msk.msra.mxu1 %vm147_vm0, %v10323_v3  ;;  %v4070_v24 = vmul.f32 %v10161_v36, %v4054_v48  ;;  %8365 = vmatprep.mubr.msk.f32.mxu0 %vm8808_vm1, %v11272_v38 }
 0x700   :  { %v8656_v26 = vpop.eup %8655  ;;  %8368 = vmatprep.subr.mxu1 %v11272_v38 }
 0x701   :  { %v4055_v52 = vmul.f32 %v8656_v26, %v10151_v32  ;;  %v10335_v54 = vadd.f32 %v10168_v56, %v4070_v24 }
 0x702   :  { %8361 = vmatmul.mubr.msk.f32.vlgmr.msra.gmra.mxu1 %vm147_vm0, %v10323_v3 }
 0x703   :  { %8364 = vmatpush3.xpose.msk.msra.mxu0 %vm147_vm0, %v10335_v54  ;;  %v4071_v23 = vmul.f32 %v10161_v36, %v4055_v52  ;;  %8370 = vmatprep.mubr.msk.f32.mxu1 %vm8808_vm1, %v11272_v38 }
 0x704   :  { %8373 = vmatprep.subr.mxu0 %v11272_v38 }
 0x705   :  { %v10346_v33 = vadd.f32 %v10168_v56, %v4071_v23 }
 0x706   :  { %8366 = vmatmul.mubr.msk.f32.vlgmr.msra.gmra.mxu0 %vm147_vm0, %v10335_v54 }
 0x707   :  { %8369 = vmatpush3.xpose.msk.msra.mxu1 %vm147_vm0, %v10346_v33  ;;  %8374 = vmatpush3.msra.mxu0 %v10171_v4  ;;  %v8725_v4 = vld [vmem:[%s11246_s1] sm:$0xff] }
 0x708   :  { %8378 = vmatprep.subr.mxu1 %v11272_v38  ;;  %8375 = vmatprep.mubr.msk.f32.mxu0 %vm8808_vm1, %v11272_v38 }
 0x709   :  { %8383 = vmatprep.subr.mxu0 %v11272_v38 }
 0x70a   :  { %8371 = vmatmul.mubr.msk.f32.vlgmr.msra.gmra.mxu1 %vm147_vm0, %v10346_v33 }
 0x70b   :  { %8379 = vmatpush3.msra.mxu1 %v10178_v42  ;;  %8380 = vmatprep.mubr.msk.f32.mxu1 %vm8808_vm1, %v11272_v38  ;;  %v8726_v42 = vld [vmem:[%s11246_s1 + $0x8] sm:$0xff] }
 0x70c   :  { %8388 = vmatprep.subr.mxu1 %v11272_v38 }
 0x78a   :  { %v4157_v32 = vpop.f32.mrf.mxu0 }
 0x78b   :  { %v5256_v29 = vmul.f32 %v8725_v4, %v4157_v32 }
 0x78c   :  { %v8297_v22 = vpop.f32.mrf.mxu0 }
 0x78d   :  { %8376 = vmatmul.mubr.msk.f32.vlgmr.msra.gmra.mxu0 %vm1573_vm2, %v5256_v29 }
 0x78e   :  { %8384 = vmatpush3.msra.mxu0 %v10193_v5  ;;  %v4230_v28 = vpop.f32.mrf.mxu1  ;;  %8385 = vmatprep.mubr.msk.f32.mxu0 %vm8808_vm1, %v11272_v38 }
 0x78f   :  { %v5257_v57 = vmul.f32 %v8726_v42, %v4230_v28  ;;  %8393 = vmatprep.subr.mxu0 %v11272_v38 }
 0x790   :  { %v8302_v51 = vpop.f32.mrf.mxu1 }
 0x791   :  { %8381 = vmatmul.mubr.msk.f32.vlgmr.msra.gmra.mxu1 %vm1573_vm2, %v5257_v57 }
 0x792   :  { %8389 = vmatpush3.msra.mxu1 %v10202_v9  ;;  %8390 = vmatprep.mubr.msk.f32.mxu1 %vm8808_vm1, %v11272_v38  ;;  %v8728_v9 = vld [vmem:[%s11246_s1 + $0x18] sm:$0xff] }
 0x793   :  { %8398 = vmatprep.subr.mxu1 %v11272_v38 }
 0x795   :  { %v4303_v5 = vpop.f32.mrf.mxu0 }
 0x796   :  { %v5258_v49 = vmul.f32 %v8727_v61, %v4303_v5  ;;  %v8739_v5 = vld [vmem:[%s11249_s4 + $0x64] ss:$12 sps:$4 sm:$0xff]  }
 0x797   :  { %v8307_v50 = vpop.f32.mrf.mxu0 }
 0x798   :  { %8386 = vmatmul.mubr.msk.f32.vlgmr.msra.gmra.mxu0 %vm1573_vm2, %v5258_v49  ;;  %v8740_v49 = vld [vmem:[%s11246_s1 + $0x70] sm:$0xff] }
 0x799   :  { %8394 = vmatpush3.msra.mxu0 %v10217_v27  ;;  %v4376_v47 = vpop.f32.mrf.mxu1  ;;  %8395 = vmatprep.mubr.msk.f32.mxu0 %vm8808_vm1, %v11272_v38 }
 0x79a   :  { %v5259_v46 = vmul.f32 %v8728_v9, %v4376_v47  ;;  %8403 = vmatprep.subr.mxu0 %v11272_v38  ;;  %v8741_v47 = vld [vmem:[%s11249_s4 + $0x68] ss:$12 sps:$4 sm:$0xff]  }
 0x79b   :  { %v8312_v8 = vpop.f32.mrf.mxu1 }
 0x79c   :  { %8391 = vmatmul.mubr.msk.f32.vlgmr.msra.gmra.mxu1 %vm1573_vm2, %v5259_v46  ;;  %v8743_v8 = vld [vmem:[%s11246_s1 + $0x78] sm:$0xff] }
 0x79d   :  { %8399 = vmatpush3.msra.mxu1 %v10227_v45  ;;  %8400 = vmatprep.mubr.msk.f32.mxu1 %vm8808_vm1, %v11272_v38  ;;  %v8730_v45 = vld [vmem:[%s11246_s1 + $0x28] sm:$0xff] }
 0x79e   :  { %v4449_v27 = vpop.f32.mrf.mxu0  ;;  %8408 = vmatprep.subr.mxu1 %v11272_v38 }
 0x79f   :  { %v5260_v1 = vmul.f32 %v8729_v15, %v4449_v27  ;;  %v8744_v15 = vld [vmem:[%s11249_s4 + $0x4c] ss:$12 sps:$4 sm:$0xff]  }
 0x7a0   :  { %v8317_v63 = vpop.f32.mrf.mxu0 }
 0x7a1   :  { %8396 = vmatmul.mubr.msk.f32.vlgmr.msra.gmra.mxu0 %vm1573_vm2, %v5260_v1  ;;  %v8745_v63 = vld [vmem:[%s11249_s4 + $0x48] ss:$12 sps:$4 sm:$0xff]  }
 0x7a2   :  { %8404 = vmatpush3.msra.mxu0 %v10239_v31  ;;  %v4522_v20 = vpop.f32.mrf.mxu1  ;;  %8405 = vmatprep.mubr.msk.f32.mxu0 %vm8808_vm1, %v11272_v38  ;;  %v8731_v31 = vld [vmem:[%s11246_s1 + $0x30] sm:$0xff] }
 0x7a3   :  { %v5261_v34 = vmul.f32 %v8730_v45, %v4522_v20  ;;  %8413 = vmatprep.subr.mxu0 %v11272_v38  ;;  %v8746_v20 = vld [vmem:[%s11249_s4 + $0x34] ss:$12 sps:$4 sm:$0xff]   ;;  %v8747_v45 = vld [vmem:[%s11249_s4 + $0x50] ss:$12 sps:$4 sm:$0xff]  }
 0x7a4   :  { %v8322_v44 = vpop.f32.mrf.mxu1 }
 0x7a5   :  { %8401 = vmatmul.mubr.msk.f32.vlgmr.msra.gmra.mxu1 %vm1573_vm2, %v5261_v34  ;;  %v8748_v34 = vld [vmem:[%s11249_s4 + $0x30] ss:$12 sps:$4 sm:$0xff]  }
 0x7a6   :  { %8409 = vmatpush3.msra.mxu1 %v10251_v2  ;;  %v4595_v16 = vpop.f32.mrf.mxu0  ;;  %8410 = vmatprep.mubr.msk.f32.mxu1 %vm8808_vm1, %v11272_v38  ;;  %v8732_v2 = vld [vmem:[%s11246_s1 + $0x38] sm:$0xff] }
 0x7a7   :  { %v5262_v43 = vmul.f32 %v8731_v31, %v4595_v16  ;;  %8418 = vmatprep.subr.mxu1 %v11272_v38  ;;  %v8749_v44 = vld [vmem:[%s11249_s4 + $0x1c] ss:$12 sps:$4 sm:$0xff]   ;;  %v8750_v16 = vld [vmem:[%s11249_s4 + $0x38] ss:$12 sps:$4 sm:$0xff]  }
 0x7a8   :  { %v8327_v0 = vpop.f32.mrf.mxu0  ;;  %v8751_v31 = vld [vmem:[%s11249_s4 + $0x18] ss:$12 sps:$4 sm:$0xff]  }
 0x7a9   :  { %8406 = vmatmul.mubr.msk.f32.vlgmr.msra.gmra.mxu0 %vm1573_vm2, %v5262_v43  ;;  %v8752_v43 = vld [vmem:[%s11249_s4 + $0x4] ss:$12 sps:$4 sm:$0xff]   ;;  %v8753_v0 = vld [vmem:[%s11249_s4 + $0x20] ss:$12 sps:$4 sm:$0xff]  }
 0x7aa   :  { %8414 = vmatpush3.msra.mxu0 %v10263_v18  ;;  %v4668_v35 = vpop.f32.mrf.mxu1  ;;  %8415 = vmatprep.mubr.msk.f32.mxu0 %vm8808_vm1, %v11272_v38  ;;  %v8733_v18 = vld [vmem:[%s11246_s1 + $0x40] sm:$0xff] }
 0x7ab   :  { %v5263_v14 = vmul.f32 %v8732_v2, %v4668_v35  ;;  %8423 = vmatprep.subr.mxu0 %v11272_v38  ;;  %v8754_v35 = vld [vmem:[%s11249_s4] ss:$12 sps:$4 sm:$0xff]   ;;  %v8755_v2 = vld [vmem:[%s11249_s4 + $0x8] ss:$12 sps:$4 sm:$0xff]  }
 0x7ac   :  { %v8332_v53 = vpop.f32.mrf.mxu1 }
 0x7ad   :  { %8411 = vmatmul.mubr.msk.f32.vlgmr.msra.gmra.mxu1 %vm1573_vm2, %v5263_v14  ;;  %v10530_v14 = vld [vmem:[%s11251_s6 + $0xb8] sm:$0xff]  }
 0x7ae   :  { %8419 = vmatpush3.msra.mxu1 %v10275_v6  ;;  %v4741_v21 = vpop.f32.mrf.mxu0  ;;  %8420 = vmatprep.mubr.msk.f32.mxu1 %vm8808_vm1, %v11272_v38  ;;  %v8734_v6 = vld [vmem:[%s11246_s1 + $0x48] sm:$0xff]  ;;  %v8757_v53 = vld [vmem:[%s11251_s6 + $0x78] sm:$0xff]  }
 0x7af   :  { %v5264_v60 = vmul.f32 %v8733_v18, %v4741_v21  ;;  %8428 = vmatprep.subr.mxu1 %v11272_v38 }
 0x7b0   :  { %v8337_v41 = vpop.f32.mrf.mxu0 }
 0x7b1   :  { %8416 = vmatmul.mubr.msk.f32.vlgmr.msra.gmra.mxu0 %vm1573_vm2, %v5264_v60 }
 0x7b2   :  { %8424 = vmatpush3.msra.mxu0 %v10287_v7  ;;  %v4814_v13 = vpop.f32.mrf.mxu1  ;;  %8425 = vmatprep.mubr.msk.f32.mxu0 %vm8808_vm1, %v11272_v38  ;;  %v8735_v7 = vld [vmem:[%s11246_s1 + $0x50] sm:$0xff] }
 0x7b3   :  { %v5265_v48 = vmul.f32 %v8734_v6, %v4814_v13  ;;  %8433 = vmatprep.subr.mxu0 %v11272_v38 }
 0x7b4   :  { %v8342_v24 = vpop.f32.mrf.mxu1 }
 0x7b5   :  { %8421 = vmatmul.mubr.msk.f32.vlgmr.msra.gmra.mxu1 %vm1573_vm2, %v5265_v48 }
 0x7b6   :  { %8429 = vmatpush3.msra.mxu1 %v10299_v37  ;;  %v4887_v26 = vpop.f32.mrf.mxu0  ;;  %8430 = vmatprep.mubr.msk.f32.mxu1 %vm8808_vm1, %v11272_v38  ;;  %v8736_v37 = vld [vmem:[%s11246_s1 + $0x58] sm:$0xff] }
 0x7b7   :  { %v5266_v52 = vmul.f32 %v8735_v7, %v4887_v26  ;;  %8438 = vmatprep.subr.mxu1 %v11272_v38 }
 0x7b8   :  { %v8347_v23 = vpop.f32.mrf.mxu0 }
 0x7b9   :  { %8426 = vmatmul.mubr.msk.f32.vlgmr.msra.gmra.mxu0 %vm1573_vm2, %v5266_v52 }
 0x7ba   :  { %8434 = vmatpush3.msra.mxu0 %v10311_v58  ;;  %v4960_v32 = vpop.f32.mrf.mxu1  ;;  %8435 = vmatprep.mubr.msk.f32.mxu0 %vm8808_vm1, %v11272_v38  ;;  %v8737_v58 = vld [vmem:[%s11246_s1 + $0x60] sm:$0xff] }
 0x7bb   :  { %v5267_v4 = vmul.f32 %v8736_v37, %v4960_v32  ;;  %8443 = vmatprep.subr.mxu0 %v11272_v38 }
 0x7bc   :  { %v8352_v29 = vpop.f32.mrf.mxu1 }
 0x7bd   :  { %8431 = vmatmul.mubr.msk.f32.vlgmr.msra.gmra.mxu1 %vm1573_vm2, %v5267_v4 }
 0x7be   :  { %8439 = vmatpush3.msra.mxu1 %v10323_v3  ;;  %v5033_v22 = vpop.f32.mrf.mxu0  ;;  %8440 = vmatprep.mubr.msk.f32.mxu1 %vm8808_vm1, %v11272_v38  ;;  %v8738_v3 = vld [vmem:[%s11246_s1 + $0x68] sm:$0xff] }
 0x7bf   :  { %v5268_v28 = vmul.f32 %v8737_v58, %v5033_v22  ;;  %8448 = vmatprep.subr.mxu1 %v11272_v38 }
 0x7c0   :  { %v8357_v42 = vpop.f32.mrf.mxu0 }
 0x7c1   :  { %8436 = vmatmul.mubr.msk.f32.vlgmr.msra.gmra.mxu0 %vm1573_vm2, %v5268_v28 }
 0x7c2   :  { %8444 = vmatpush3.msra.mxu0 %v10335_v54  ;;  %v5106_v57 = vpop.f32.mrf.mxu1  ;;  %8445 = vmatprep.mubr.msk.f32.mxu0 %vm8808_vm1, %v11272_v38 }
 0x7c3   :  { %v5269_v51 = vmul.f32 %v8738_v3, %v5106_v57  ;;  %6718 = vmatprep.subr.bf16.mxu0 %v8739_v5 }
 0x7c4   :  { %v8362_v61 = vpop.f32.mrf.mxu1 }
 0x7c5   :  { %8441 = vmatmul.mubr.msk.f32.vlgmr.msra.gmra.mxu1 %vm1573_vm2, %v5269_v51 }
 0x7c6   :  { %8449 = vmatpush3.msra.mxu1 %v10346_v33  ;;  %v5179_v54 = vpop.f32.mrf.mxu0  ;;  %8450 = vmatprep.mubr.msk.f32.mxu1 %vm8808_vm1, %v11272_v38  ;;  %v8742_v33 = vld [vmem:[%s11249_s4 + $0x60] ss:$12 sps:$4 sm:$0xff]   ;;  %v11273_v38 = vmov 0  }
 0x7c7   :  { %v5270_v50 = vmul.f32 %v8740_v49, %v5179_v54  ;;  %8453 = vmatprep.subr.bf16.mxu1 %v8741_v47 }
 0x7c8   :  { %v8367_v9 = vpop.f32.mrf.mxu0 }
 0x7c9   :  { %8446 = vmatmul.mubr.msk.f32.vlgmr.msra.gmra.mxu0 %vm1573_vm2, %v5270_v50 }
 0x7ca   :  { %v5252_v46 = vpop.f32.mrf.mxu1  ;;  %6719 = vmatpush1.bf16.msra.mxu0 %v8742_v33  ;;  %6744 = vmatprep.mubr.bf16.mxu0 %v11273_v38 }
 0x7cb   :  { %v5271_v27 = vmul.f32 %v8743_v8, %v5252_v46  ;;  %6720 = vmatprep.subr.bf16.mxu0 %v8744_v15  ;;  %v11274_v46 = vld [vmem:[#allocation5_spill] sm:$0xff]  ;;  %v11275_v15 = vld [vmem:[#allocation6_spill] sm:$0xff] }
 0x7cc   :  { %v8372_v1 = vpop.f32.mrf.mxu1 }
 0x7cd   :  { %8451 = vmatmul.mubr.msk.f32.vlgmr.msra.gmra.mxu1 %vm1573_vm2, %v5271_v27 }
 0x7ce   :  { %6721 = vmatpush1.bf16.msra.mxu0 %v8745_v63  ;;  %8454 = vmatpush3.bf16.msra.mxu1 %v8741_v47 }
 0x7cf   :  { %6722 = vmatprep.subr.bf16.mxu0 %v8746_v20  ;;  %8455 = vmatprep.subr.bf16.mxu1 %v8747_v45 }
 0x7d2   :  { %6723 = vmatpush1.bf16.msra.mxu0 %v8748_v34  ;;  %8456 = vmatpush3.bf16.msra.mxu1 %v8747_v45  ;;  %v11276_v45 = vld [vmem:[#allocation7_spill] sm:$0xff] }
 0x7d3   :  { %6724 = vmatprep.subr.bf16.mxu0 %v8749_v44  ;;  %8457 = vmatprep.subr.bf16.mxu1 %v8750_v16 }
 0x7d6   :  { %6725 = vmatpush1.bf16.msra.mxu0 %v8751_v31  ;;  %8458 = vmatpush3.bf16.msra.mxu1 %v8750_v16 }
 0x7d7   :  { %6726 = vmatprep.subr.bf16.mxu0 %v8752_v43  ;;  %8459 = vmatprep.subr.bf16.mxu1 %v8753_v0  ;;  %v11277_v43 = vld [vmem:[#allocation8_spill] sm:$0xff] }
 0x7da   :  { %6727 = vmatpush1.bf16.msra.mxu0 %v8754_v35  ;;  %8460 = vmatpush3.bf16.msra.mxu1 %v8753_v0 }
 0x7db   :  { %8461 = vmatprep.subr.bf16.mxu1 %v8755_v2  ;;  %8479 = vmatprep.subr.bf16.mxu0 %v10530_v14 }
 0x7de   :  { %8462 = vmatpush3.bf16.msra.mxu1 %v8755_v2 }
 0x7df   :  { %7995 = vmatprep.subr.bf16.mxu1 %v8757_v53 }
 0x84d   :  { %v5341_v21 = vpop.f32.mrf.mxu0 }
 0x84e   :  { %v10537_v18 = vadd.f32 %v5341_v21, %v9069_v17  ;;  %v11278_v21 = vld [vmem:[#allocation9_spill] sm:$0xff] }
 0x84f   :  { %v8377_v60 = vpop.f32.mrf.mxu0 }
 0x850   :  { %v6440_v41 = vsel %vm147_vm0, %v10537_v18, 0.0 }
 0x851   :  { %v5414_v13 = vpop.f32.mrf.mxu1  ;;  %6441 = vadd.xlane.f32.xlu0 %v6440_v41 }
 0x852   :  { %v10542_v6 = vadd.f32 %v5414_v13, %v9079_v59 }
 0x853   :  { %v8382_v48 = vpop.f32.mrf.mxu1 }
 0x854   :  { %v6443_v24 = vsel %vm147_vm0, %v10542_v6, 0.0 }
 0x855   :  { %6444 = vadd.xlane.f32.xlu1 %v6443_v24  ;;  %v11279_v24 = vld [vmem:[#allocation10_spill] sm:$0xff] }
 0x858   :  { %v5487_v26 = vpop.f32.mrf.mxu0 }
 0x859   :  { %v10547_v7 = vadd.f32 %v5487_v26, %v9085_v62 }
 0x85a   :  { %v8387_v17 = vpop.f32.mrf.mxu0 }
 0x85b   :  { %v6446_v52 = vsel %vm147_vm0, %v10547_v7, 0.0 }
 0x85c   :  { %v5560_v23 = vpop.f32.mrf.mxu1  ;;  %6447 = vadd.xlane.f32.xlu0 %v6446_v52 }
 0x85d   :  { %v10552_v32 = vadd.f32 %v5560_v23, %v9099_v10 }
 0x85e   :  { %v8392_v59 = vpop.f32.mrf.mxu1 }
 0x85f   :  { %v6449_v37 = vsel %vm147_vm0, %v10552_v32, 0.0  ;;  %v11280_v59 = vld [vmem:[#allocation11_spill] sm:$0xff] }
 0x860   :  { %6450 = vadd.xlane.f32.xlu1 %v6449_v37 }
 0x861   :  { %v5633_v4 = vpop.f32.mrf.mxu0 }
 0x862   :  { %v10557_v29 = vadd.f32 %v5633_v4, %v9105_v19 }
 0x863   :  { %v8397_v62 = vpop.f32.mrf.mxu0 }
 0x864   :  { %v6452_v22 = vsel %vm147_vm0, %v10557_v29, 0.0 }
 0x865   :  { %v5706_v58 = vpop.f32.mrf.mxu1  ;;  %6453 = vadd.xlane.f32.xlu0 %v6452_v22 }
 0x866   :  { %v10562_v28 = vadd.f32 %v5706_v58, %v9122_v12 }
 0x867   :  { %v8402_v10 = vpop.f32.mrf.mxu1 }
 0x868   :  { %v6455_v42 = vsel %vm147_vm0, %v10562_v28, 0.0 }
 0x869   :  { %6456 = vadd.xlane.f32.xlu1 %v6455_v42  ;;  %v5779_v57 = vpop.f32.mrf.mxu0 }
 0x86a   :  { %v10567_v3 = vadd.f32 %v5779_v57, %v9129_v30 }
 0x86b   :  { %v8407_v19 = vpop.f32.mrf.mxu0 }
 0x86c   :  { %v6458_v51 = vsel %vm147_vm0, %v10567_v3, 0.0 }
 0x86d   :  { %v5852_v5 = vpop.f32.mrf.mxu1  ;;  %6459 = vadd.xlane.f32.xlu0 %v6458_v51 }
 0x86e   :  { %v10572_v61 = vadd.f32 %v5852_v5, %v9146_v11 }
 0x86f   :  { %v8412_v12 = vpop.f32.mrf.mxu1 }
 0x870   :  { %v6461_v54 = vsel %vm147_vm0, %v10572_v61, 0.0 }
 0x871   :  { %6462 = vadd.xlane.f32.xlu1 %v6461_v54  ;;  %v5925_v49 = vpop.f32.mrf.mxu0 }
 0x872   :  { %v10577_v50 = vadd.f32 %v5925_v49, %v9153_v39 }
 0x873   :  { %v8417_v30 = vpop.f32.mrf.mxu0 }
 0x874   :  { %v6464_v47 = vsel %vm147_vm0, %v10577_v50, 0.0 }
 0x875   :  { %v5998_v9 = vpop.f32.mrf.mxu1  ;;  %6465 = vadd.xlane.f32.xlu0 %v6464_v47 }
 0x876   :  { %v10582_v33 = vadd.f32 %v5998_v9, %v11274_v46 }
 0x877   :  { %v8422_v11 = vpop.f32.mrf.mxu1 }
 0x878   :  { %v6467_v8 = vsel %vm147_vm0, %v10582_v33, 0.0 }
 0x879   :  { %6468 = vadd.xlane.f32.xlu1 %v6467_v8  ;;  %v6071_v27 = vpop.f32.mrf.mxu0 }
 0x87a   :  { %v10587_v1 = vadd.f32 %v6071_v27, %v11275_v15 }
 0x87b   :  { %v8427_v39 = vpop.f32.mrf.mxu0 }
 0x87c   :  { %v6470_v63 = vsel %vm147_vm0, %v10587_v1, 0.0 }
 0x87d   :  { %v6144_v20 = vpop.f32.mrf.mxu1  ;;  %6471 = vadd.xlane.f32.xlu0 %v6470_v63 }
 0x87e   :  { %v10592_v34 = vadd.f32 %v6144_v20, %v11276_v45 }
 0x87f   :  { %v8432_v44 = vpop.f32.mrf.mxu1 }
 0x880   :  { %v6473_v16 = vsel %vm147_vm0, %v10592_v34, 0.0 }
 0x881   :  { %6474 = vadd.xlane.f32.xlu1 %v6473_v16  ;;  %v6217_v31 = vpop.f32.mrf.mxu0 }
 0x882   :  { %v10597_v0 = vadd.f32 %v6217_v31, %v11277_v43 }
 0x883   :  { %v8437_v35 = vpop.f32.mrf.mxu0 }
 0x884   :  { %v6476_v2 = vsel %vm147_vm0, %v10597_v0, 0.0 }
 0x885   :  { %v6290_v53 = vpop.f32.mrf.mxu1  ;;  %6477 = vadd.xlane.f32.xlu0 %v6476_v2 }
 0x886   :  { %v10602_v60 = vadd.f32 %v6290_v53, %v11278_v21 }
 0x887   :  { %v8442_v41 = vpop.f32.mrf.mxu1 }
 0x888   :  { %v6479_v13 = vsel %vm147_vm0, %v10602_v60, 0.0 }
 0x889   :  { %6480 = vadd.xlane.f32.xlu1 %v6479_v13  ;;  %v6363_v48 = vpop.f32.mrf.mxu0 }
 0x88a   :  { %v10607_v26 = vadd.f32 %v6363_v48, %v11279_v24 }
 0x88b   :  { %v8447_v17 = vpop.f32.mrf.mxu0 }
 0x88c   :  { %v6482_v52 = vsel %vm147_vm0, %v10607_v26, 0.0 }
 0x88d   :  { %v6436_v23 = vpop.f32.mrf.mxu1  ;;  %6483 = vadd.xlane.f32.xlu0 %v6482_v52 }
 0x88e   :  { %v10612_v37 = vadd.f32 %v6436_v23, %v11280_v59 }
 0x88f   :  { %v8452_v4 = vpop.f32.mrf.mxu1 }
 0x890   :  { %v6485_v62 = vsel %vm147_vm0, %v10612_v37, 0.0 }
 0x891   :  { %6486 = vadd.xlane.f32.xlu1 %v6485_v62 }
 0x8da   :  { %v6442_v22 = vpop.xlane.xlu0 %6441 }
 0x8db   :  { %v6488_v58 = vmul.f32 0.0125, %v6442_v22 }
 0x8dd   :  { %v10617_v10 = vsub.f32 %v10537_v18, %v6488_v58 }
 0x8de   :  { %v6445_v42 = vpop.xlane.xlu1 %6444 }
 0x8df   :  { %v6489_v57 = vmul.f32 0.0125, %v6445_v42  ;;  %v6520_v19 = vmul.f32 %v10617_v10, %v10617_v10 }
 0x8e1   :  { %v10622_v51 = vsub.f32 %v10542_v6, %v6489_v57  ;;  %v6536_v5 = vsel %vm147_vm0, %v6520_v19, 0.0 }
 0x8e2   :  { %6537 = vadd.xlane.f32.xlu0 %v6536_v5 }
 0x8e3   :  { %v6521_v12 = vmul.f32 %v10622_v51, %v10622_v51 }
 0x8e5   :  { %v6448_v54 = vpop.xlane.xlu0 %6447  ;;  %v6539_v30 = vsel %vm147_vm0, %v6521_v12, 0.0 }
 0x8e6   :  { %v6490_v49 = vmul.f32 0.0125, %v6448_v54  ;;  %6540 = vadd.xlane.f32.xlu1 %v6539_v30 }
 0x8e8   :  { %v10629_v18 = vsub.f32 %v10547_v7, %v6490_v49 }
 0x8e9   :  { %v6451_v47 = vpop.xlane.xlu1 %6450 }
 0x8ea   :  { %v6491_v9 = vmul.f32 0.0125, %v6451_v47  ;;  %v6522_v6 = vmul.f32 %v10629_v18, %v10629_v18 }
 0x8ec   :  { %v10634_v46 = vsub.f32 %v10552_v32, %v6491_v9  ;;  %v6542_v11 = vsel %vm147_vm0, %v6522_v6, 0.0 }
 0x8ed   :  { %6543 = vadd.xlane.f32.xlu0 %v6542_v11 }
 0x8ee   :  { %v6454_v8 = vpop.xlane.xlu0 %6453  ;;  %v6523_v27 = vmul.f32 %v10634_v46, %v10634_v46 }
 0x8ef   :  { %v6492_v15 = vmul.f32 0.0125, %v6454_v8 }
 0x8f0   :  { %v6545_v39 = vsel %vm147_vm0, %v6523_v27, 0.0 }
 0x8f1   :  { %v10641_v7 = vsub.f32 %v10557_v29, %v6492_v15  ;;  %6546 = vadd.xlane.f32.xlu1 %v6545_v39 }
 0x8f2   :  { %v6457_v63 = vpop.xlane.xlu1 %6456 }
 0x8f3   :  { %v6493_v20 = vmul.f32 0.0125, %v6457_v63  ;;  %v6524_v32 = vmul.f32 %v10641_v7, %v10641_v7 }
 0x8f5   :  { %v10646_v45 = vsub.f32 %v10562_v28, %v6493_v20  ;;  %v6548_v44 = vsel %vm147_vm0, %v6524_v32, 0.0 }
 0x8f6   :  { %v6460_v16 = vpop.xlane.xlu0 %6459  ;;  %6549 = vadd.xlane.f32.xlu0 %v6548_v44 }
 0x8f7   :  { %v6494_v31 = vmul.f32 0.0125, %v6460_v16  ;;  %v6525_v43 = vmul.f32 %v10646_v45, %v10646_v45 }
 0x8f9   :  { %v10652_v29 = vsub.f32 %v10567_v3, %v6494_v31  ;;  %v6551_v35 = vsel %vm147_vm0, %v6525_v43, 0.0 }
 0x8fa   :  { %v6463_v2 = vpop.xlane.xlu1 %6462  ;;  %6552 = vadd.xlane.f32.xlu1 %v6551_v35 }
 0x8fb   :  { %v6495_v53 = vmul.f32 0.0125, %v6463_v2  ;;  %v6526_v28 = vmul.f32 %v10652_v29, %v10652_v29 }
 0x8fd   :  { %v10658_v21 = vsub.f32 %v10572_v61, %v6495_v53  ;;  %v6554_v41 = vsel %vm147_vm0, %v6526_v28, 0.0 }
 0x8fe   :  { %v6466_v13 = vpop.xlane.xlu0 %6465  ;;  %6555 = vadd.xlane.f32.xlu0 %v6554_v41 }
 0x8ff   :  { %v6496_v48 = vmul.f32 0.0125, %v6466_v13  ;;  %v6527_v3 = vmul.f32 %v10658_v21, %v10658_v21 }
 0x901   :  { %v10664_v24 = vsub.f32 %v10577_v50, %v6496_v48  ;;  %v6557_v17 = vsel %vm147_vm0, %v6527_v3, 0.0 }
 0x902   :  { %v6469_v52 = vpop.xlane.xlu1 %6468  ;;  %6558 = vadd.xlane.f32.xlu1 %v6557_v17 }
 0x903   :  { %v6497_v23 = vmul.f32 0.0125, %v6469_v52  ;;  %v6528_v61 = vmul.f32 %v10664_v24, %v10664_v24 }
 0x905   :  { %v10670_v59 = vsub.f32 %v10582_v33, %v6497_v23  ;;  %v6560_v4 = vsel %vm147_vm0, %v6528_v61, 0.0 }
 0x906   :  { %v6472_v62 = vpop.xlane.xlu0 %6471  ;;  %6561 = vadd.xlane.f32.xlu0 %v6560_v4 }
 0x907   :  { %v6498_v22 = vmul.f32 0.0125, %v6472_v62  ;;  %v6529_v50 = vmul.f32 %v10670_v59, %v10670_v59 }
 0x909   :  { %v10676_v58 = vsub.f32 %v10587_v1, %v6498_v22  ;;  %v6563_v42 = vsel %vm147_vm0, %v6529_v50, 0.0 }
 0x90a   :  { %v6475_v57 = vpop.xlane.xlu1 %6474  ;;  %6564 = vadd.xlane.f32.xlu1 %v6563_v42 }
 0x90b   :  { %v6499_v19 = vmul.f32 0.0125, %v6475_v57  ;;  %v6530_v33 = vmul.f32 %v10676_v58, %v10676_v58 }
 0x90d   :  { %v10682_v5 = vsub.f32 %v10592_v34, %v6499_v19  ;;  %v6566_v12 = vsel %vm147_vm0, %v6530_v33, 0.0 }
 0x90e   :  { %v6478_v54 = vpop.xlane.xlu0 %6477  ;;  %6567 = vadd.xlane.f32.xlu0 %v6566_v12 }
 0x90f   :  { %v6500_v49 = vmul.f32 0.0125, %v6478_v54  ;;  %v6531_v1 = vmul.f32 %v10682_v5, %v10682_v5 }
 0x911   :  { %v10688_v30 = vsub.f32 %v10597_v0, %v6500_v49  ;;  %v6569_v47 = vsel %vm147_vm0, %v6531_v1, 0.0 }
 0x912   :  { %v6481_v9 = vpop.xlane.xlu1 %6480  ;;  %6570 = vadd.xlane.f32.xlu1 %v6569_v47 }
 0x913   :  { %v6501_v6 = vmul.f32 0.0125, %v6481_v9  ;;  %v6532_v34 = vmul.f32 %v10688_v30, %v10688_v30 }
 0x915   :  { %v10694_v11 = vsub.f32 %v10602_v60, %v6501_v6  ;;  %v6572_v8 = vsel %vm147_vm0, %v6532_v34, 0.0 }
 0x916   :  { %6573 = vadd.xlane.f32.xlu0 %v6572_v8  ;;  %v6484_v27 = vpop.xlane.xlu0 %6483 }
 0x917   :  { %v6502_v15 = vmul.f32 0.0125, %v6484_v27  ;;  %v6533_v0 = vmul.f32 %v10694_v11, %v10694_v11 }
 0x919   :  { %v10700_v39 = vsub.f32 %v10607_v26, %v6502_v15  ;;  %v6575_v63 = vsel %vm147_vm0, %v6533_v0, 0.0  ;;  %v8759_v0 = vld [vmem:[%s11251_s6 + $0xb0] sm:$0xff]  }
 0x91a   :  { %6576 = vadd.xlane.f32.xlu1 %v6575_v63  ;;  %v6487_v20 = vpop.xlane.xlu1 %6486 }
 0x91b   :  { %v6503_v32 = vmul.f32 0.0125, %v6487_v20  ;;  %v6534_v60 = vmul.f32 %v10700_v39, %v10700_v39 }
 0x91d   :  { %v10706_v44 = vsub.f32 %v10612_v37, %v6503_v32  ;;  %v6578_v16 = vsel %vm147_vm0, %v6534_v60, 0.0  ;;  %v10743_v60 = vld [vmem:[%s11248_s3] ss:$0 sm:$0xff] }
 0x91e   :  { %6579 = vadd.xlane.f32.xlu0 %v6578_v16 }
 0x91f   :  { %v6535_v31 = vmul.f32 %v10706_v44, %v10706_v44 }
 0x921   :  { %v6581_v26 = vsel %vm147_vm0, %v6535_v31, 0.0 }
 0x922   :  { %6582 = vadd.xlane.f32.xlu1 %v6581_v26  ;;  %v8761_v26 = vld [vmem:[%s11251_s6 + $0xa8] sm:$0xff]  }
 0x96b   :  { %v6538_v43 = vpop.xlane.xlu0 %6537 }
 0x96c   :  { %v6584_v35 = vmul.f32 0.0125, %v6538_v43 }
 0x96e   :  { %v6600_v2 = vadd.f32 1e-05, %v6584_v35 }
 0x96f   :  { %v6541_v53 = vpop.xlane.xlu1 %6540 }
 0x970   :  { %8657 = vrsqrt.f32 %v6600_v2  ;;  %v6585_v28 = vmul.f32 0.0125, %v6541_v53 }
 0x972   :  { %v6601_v41 = vadd.f32 1e-05, %v6585_v28 }
 0x974   :  { %8659 = vrsqrt.f32 %v6601_v41 }
 0x976   :  { %v6544_v13 = vpop.xlane.xlu0 %6543 }
 0x977   :  { %v6586_v37 = vmul.f32 0.0125, %v6544_v13 }
 0x979   :  { %v6602_v48 = vadd.f32 1e-05, %v6586_v37 }
 0x97a   :  { %v6547_v3 = vpop.xlane.xlu1 %6546 }
 0x97b   :  { %8661 = vrsqrt.f32 %v6602_v48  ;;  %v6587_v17 = vmul.f32 0.0125, %v6547_v3  ;;  %v8762_v48 = vld [vmem:[%s11251_s6 + $0x38] sm:$0xff]  }
 0x97d   :  { %v6603_v52 = vadd.f32 1e-05, %v6587_v17  ;;  %v8658_v23 = vpop.eup %8657  ;;  %v8763_v17 = vld [vmem:[%s11251_s6 + $0x70] sm:$0xff]  }
 0x97e   :  { %v6632_v61 = vmul.f32 %v8658_v23, %v10617_v10 }
 0x97f   :  { %8663 = vrsqrt.f32 %v6603_v52  ;;  %v6550_v4 = vpop.xlane.xlu0 %6549 }
 0x980   :  { %v6588_v62 = vmul.f32 0.0125, %v6550_v4  ;;  %v6648_v42 = vmul.f32 %v10161_v36, %v6632_v61  ;;  %v8765_v4 = vld [vmem:[%s11251_s6 + $0x98] sm:$0xff]  }
 0x981   :  { %v8660_v22 = vpop.eup %8659 }
 0x982   :  { %v6604_v50 = vadd.f32 1e-05, %v6588_v62  ;;  %v6633_v57 = vmul.f32 %v8660_v22, %v10622_v51  ;;  %v10717_v1 = vadd.f32 %v10168_v56, %v6648_v42 }
 0x983   :  { %v6553_v19 = vpop.xlane.xlu1 %6552 }
 0x984   :  { %8665 = vrsqrt.f32 %v6604_v50  ;;  %v6589_v33 = vmul.f32 0.0125, %v6553_v19  ;;  %v6649_v12 = vmul.f32 %v10161_v36, %v6633_v57  ;;  %v8766_v57 = vld [vmem:[%s11251_s6 + $0x30] sm:$0xff]  }
 0x986   :  { %v6605_v54 = vadd.f32 1e-05, %v6589_v33  ;;  %v10720_v10 = vadd.f32 %v10168_v56, %v6649_v12  ;;  %v8767_v33 = vld [vmem:[%s11251_s6 + $0x68] sm:$0xff]  }
 0x987   :  { %v6556_v49 = vpop.xlane.xlu0 %6555 }
 0x988   :  { %v8662_v47 = vpop.eup %8661  ;;  %8667 = vrsqrt.f32 %v6605_v54  ;;  %v6590_v9 = vmul.f32 0.0125, %v6556_v49  ;;  %v6680_v51 = vpack.c.bf16 %v10720_v10, %v10717_v1  ;;  %v8768_v49 = vld [vmem:[%s11251_s6 + $0x90] sm:$0xff]  }
 0x989   :  { %v6634_v6 = vmul.f32 %v8662_v47, %v10629_v18  ;;  %v10733_v18 = vld [vmem:[%s11247_s2] ss:$0 sm:$0xff] }
 0x98a   :  { %v6606_v34 = vadd.f32 1e-05, %v6590_v9  ;;  %7745 = vmatmul.mubr.msk.bf16.vlgmr.msra.gmra.mxu0 %vm147_vm0, %v6680_v51  ;;  %8463 = vmatprep.mubr.msk.bf16.mxu1 %vm147_vm0, %v6680_v51 }
 0x98b   :  { %v6559_v8 = vpop.xlane.xlu1 %6558  ;;  %6754 = vmatprep.mubr.bf16.mxu0 %v11273_v38  ;;  %8480 = vmatpush3.bf16.msra.mxu0 %v10530_v14  ;;  %v6650_v15 = vmul.f32 %v10733_v18, %v6634_v6 }
 0x98c   :  { %v8664_v36 = vpop.eup %8663  ;;  %8669 = vrsqrt.f32 %v6606_v34  ;;  %v6591_v27 = vmul.f32 0.0125, %v6559_v8  ;;  %8481 = vmatprep.subr.bf16.mxu0 %v8759_v0  ;;  %v8769_v34 = vld [vmem:[%s11251_s6 + $0x28] sm:$0xff]  }
 0x98d   :  { %v6635_v56 = vmul.f32 %v8664_v36, %v10634_v46  ;;  %v10746_v16 = vadd.f32 %v10743_v60, %v6650_v15 }
 0x98e   :  { %v6607_v63 = vadd.f32 1e-05, %v6591_v27 }
 0x98f   :  { %v6562_v20 = vpop.xlane.xlu0 %6561  ;;  %v6651_v32 = vmul.f32 %v10733_v18, %v6635_v56  ;;  %8482 = vmatpush3.bf16.msra.mxu0 %v8759_v0  ;;  %v8771_v56 = vld [vmem:[%s11251_s6 + $0x88] sm:$0xff]  }
 0x990   :  { %8671 = vrsqrt.f32 %v6607_v63  ;;  %v6592_v14 = vmul.f32 0.0125, %v6562_v20  ;;  %8483 = vmatprep.subr.bf16.mxu0 %v8761_v26 }
 0x991   :  { %v8666_v46 = vpop.eup %8665  ;;  %v10749_v31 = vadd.f32 %v10743_v60, %v6651_v32 }
 0x992   :  { %v6636_v43 = vmul.f32 %v8666_v46, %v10641_v7  ;;  %v6608_v35 = vadd.f32 1e-05, %v6592_v14  ;;  %v8772_v14 = vld [vmem:[%s11251_s6 + $0x20] sm:$0xff]  }
 0x993   :  { %v6565_v2 = vpop.xlane.xlu1 %6564  ;;  %v6681_v53 = vpack.c.bf16 %v10749_v31, %v10746_v16  ;;  %8484 = vmatpush3.bf16.msra.mxu0 %v8761_v26 }
 0x994   :  { %8673 = vrsqrt.f32 %v6608_v35  ;;  %v6593_v28 = vmul.f32 0.0125, %v6565_v2  ;;  %v6652_v7 = vmul.f32 %v10733_v18, %v6636_v43  ;;  %v8774_v35 = vld [vmem:[%s11251_s6 + $0x80] sm:$0xff]  }
 0x995   :  { %v8668_v41 = vpop.eup %8667  ;;  %7746 = vmatmul.mubr.msk.bf16.gmra.mxu0 %vm147_vm0, %v6681_v53  ;;  %8464 = vmatmul.mubr.msk.bf16.vlgmr.msra.gmra.mxu1 %vm147_vm0, %v6681_v53 }
 0x996   :  { %v6637_v13 = vmul.f32 %v8668_v41, %v10646_v45  ;;  %v6609_v37 = vadd.f32 1e-05, %v6593_v28  ;;  %6764 = vmatprep.mubr.bf16.mxu0 %v11273_v38  ;;  %7996 = vmatpush3.bf16.msra.mxu1 %v8762_v48  ;;  %v8764_v45 = vld [vmem:[%s11251_s6 + $0xa0] sm:$0xff]   ;;  %v10777_v50 = vadd.f32 %v10743_v60, %v6652_v7 }
 0x997   :  { %v6568_v3 = vpop.xlane.xlu0 %6567  ;;  %7997 = vmatprep.subr.bf16.mxu1 %v8763_v17  ;;  %8485 = vmatprep.subr.bf16.mxu0 %v8764_v45 }
 0x998   :  { %8675 = vrsqrt.f32 %v6609_v37  ;;  %v6594_v52 = vmul.f32 0.0125, %v6568_v3  ;;  %v6653_v23 = vmul.f32 %v10733_v18, %v6637_v13  ;;  %8486 = vmatpush3.bf16.msra.mxu0 %v8764_v45  ;;  %v8775_v13 = vld [vmem:[%s11251_s6 + $0x18] sm:$0xff]  }
 0x999   :  { %v8670_v61 = vpop.eup %8669  ;;  %8487 = vmatprep.subr.bf16.mxu0 %v8765_v4 }
 0x99a   :  { %v6638_v62 = vmul.f32 %v8670_v61, %v10652_v29  ;;  %v6610_v22 = vadd.f32 1e-05, %v6594_v52  ;;  %v10780_v42 = vadd.f32 %v10743_v60, %v6653_v23  ;;  %7998 = vmatpush3.bf16.msra.mxu1 %v8766_v57  ;;  %v8777_v61 = vld [vmem:[%s11251_s6 + $0x10] sm:$0xff]  }
 0x99b   :  { %v6571_v19 = vpop.xlane.xlu1 %6570  ;;  %7999 = vmatprep.subr.bf16.mxu1 %v8767_v33 }
 0x99c   :  { %8677 = vrsqrt.f32 %v6610_v22  ;;  %v6595_v29 = vmul.f32 0.0125, %v6571_v19  ;;  %v6682_v12 = vpack.c.bf16 %v10780_v42, %v10777_v50  ;;  %8488 = vmatpush3.bf16.msra.mxu0 %v8765_v4  ;;  %v6654_v6 = vmul.f32 %v10733_v18, %v6638_v62 }
 0x99d   :  { %v8672_v54 = vpop.eup %8671  ;;  %8489 = vmatprep.subr.bf16.mxu0 %v8768_v49 }
 0x99e   :  { %v6639_v47 = vmul.f32 %v8672_v54, %v10658_v21  ;;  %v6611_v9 = vadd.f32 1e-05, %v6595_v29  ;;  %7747 = vmatmul.mubr.msk.bf16.gmra.mxu0 %vm147_vm0, %v6682_v12  ;;  %8467 = vmatprep.mubr.msk.bf16.mxu1 %vm147_vm0, %v6682_v12  ;;  %v8770_v21 = vld [vmem:[%s11251_s6 + $0x60] sm:$0xff]   ;;  %v10810_v63 = vadd.f32 %v10743_v60, %v6654_v6  ;;  %v8779_v29 = vld [vmem:[%s11251_s6 + $0x8] sm:$0xff]  }
 0x99f   :  { %v6574_v51 = vpop.xlane.xlu0 %6573  ;;  %6774 = vmatprep.mubr.bf16.mxu0 %v11273_v38  ;;  %8000 = vmatpush3.bf16.msra.mxu1 %v8769_v34  ;;  %v8781_v6 = vld [vmem:[%s11251_s6] sm:$0xff]  }
 0x9a0   :  { %8679 = vrsqrt.f32 %v6611_v9  ;;  %v6596_v8 = vmul.f32 0.0125, %v6574_v51  ;;  %v6655_v36 = vmul.f32 %v10733_v18, %v6639_v47  ;;  %8001 = vmatprep.subr.bf16.mxu1 %v8770_v21  ;;  %8490 = vmatpush3.bf16.msra.mxu0 %v8768_v49 }
 0x9a1   :  { %v8674_v27 = vpop.eup %8673  ;;  %8491 = vmatprep.subr.bf16.mxu0 %v8771_v56 }
 0x9a2   :  { %v6640_v15 = vmul.f32 %v8674_v27, %v10664_v24  ;;  %v6612_v0 = vadd.f32 1e-05, %v6596_v8  ;;  %v10813_v20 = vadd.f32 %v10743_v60, %v6655_v36  ;;  %v8773_v24 = vld [vmem:[%s11251_s6 + $0x58] sm:$0xff]  }
 0x9a3   :  { %v6577_v32 = vpop.xlane.xlu1 %6576  ;;  %8002 = vmatpush3.bf16.msra.mxu1 %v8772_v14 }
 0x9a4   :  { %8681 = vrsqrt.f32 %v6612_v0  ;;  %v6597_v46 = vmul.f32 0.0125, %v6577_v32  ;;  %v6683_v26 = vpack.c.bf16 %v10813_v20, %v10810_v63  ;;  %8003 = vmatprep.subr.bf16.mxu1 %v8773_v24  ;;  %8492 = vmatpush3.bf16.msra.mxu0 %v8771_v56  ;;  %v6656_v28 = vmul.f32 %v10733_v18, %v6640_v15 }
 0x9a5   :  { %v8676_v43 = vpop.eup %8675  ;;  %8493 = vmatprep.subr.bf16.mxu0 %v8774_v35 }
 0x9a6   :  { %v6641_v2 = vmul.f32 %v8676_v43, %v10670_v59  ;;  %v6613_v53 = vadd.f32 1e-05, %v6597_v46  ;;  %7748 = vmatmul.mubr.msk.bf16.gmra.mxu0 %vm147_vm0, %v6683_v26  ;;  %8468 = vmatmul.mubr.msk.bf16.gmra.mxu1 %vm147_vm0, %v6683_v26  ;;  %v8776_v59 = vld [vmem:[%s11251_s6 + $0x50] sm:$0xff]   ;;  %v10840_v45 = vadd.f32 %v10743_v60, %v6656_v28 }
 0x9a7   :  { %v6580_v41 = vpop.xlane.xlu0 %6579  ;;  %6784 = vmatprep.mubr.bf16.mxu0 %v11273_v38  ;;  %8004 = vmatpush3.bf16.msra.mxu1 %v8775_v13 }
 0x9a8   :  { %8683 = vrsqrt.f32 %v6613_v53  ;;  %v6598_v37 = vmul.f32 0.0125, %v6580_v41  ;;  %v6657_v7 = vmul.f32 %v10733_v18, %v6641_v2  ;;  %8005 = vmatprep.subr.bf16.mxu1 %v8776_v59  ;;  %8494 = vmatpush3.bf16.msra.mxu0 %v8774_v35 }
 0x9a9   :  { %v8678_v48 = vpop.eup %8677 }
 0x9aa   :  { %v6642_v3 = vmul.f32 %v8678_v48, %v10676_v58  ;;  %v6614_v17 = vadd.f32 1e-05, %v6598_v37  ;;  %v10843_v52 = vadd.f32 %v10743_v60, %v6657_v7  ;;  %v8778_v58 = vld [vmem:[%s11251_s6 + $0x48] sm:$0xff]  }
 0x9ab   :  { %v6583_v23 = vpop.xlane.xlu1 %6582  ;;  %8006 = vmatpush3.bf16.msra.mxu1 %v8777_v61 }
 0x9ac   :  { %8685 = vrsqrt.f32 %v6614_v17  ;;  %v6599_v4 = vmul.f32 0.0125, %v6583_v23  ;;  %v6684_v62 = vpack.c.bf16 %v10843_v52, %v10840_v45  ;;  %8007 = vmatprep.subr.bf16.mxu1 %v8778_v58  ;;  %v6658_v33 = vmul.f32 %v10733_v18, %v6642_v3 }
 0x9ad   :  { %v8680_v22 = vpop.eup %8679 }
 0x9ae   :  { %v6643_v57 = vmul.f32 %v8680_v22, %v10682_v5  ;;  %v6615_v19 = vadd.f32 1e-05, %v6599_v4  ;;  %7749 = vmatmul.mubr.msk.bf16.gmra.mxu0 %vm147_vm0, %v6684_v62  ;;  %8471 = vmatprep.mubr.msk.bf16.mxu1 %vm147_vm0, %v6684_v62  ;;  %v8780_v5 = vld [vmem:[%s11251_s6 + $0x40] sm:$0xff]   ;;  %v10867_v47 = vadd.f32 %v10743_v60, %v6658_v33 }
 0x9af   :  { %6794 = vmatprep.mubr.bf16.mxu0 %v11273_v38  ;;  %8008 = vmatpush3.bf16.msra.mxu1 %v8779_v29 }
 0x9b0   :  { %8687 = vrsqrt.f32 %v6615_v19  ;;  %v6659_v12 = vmul.f32 %v10733_v18, %v6643_v57  ;;  %8009 = vmatprep.subr.bf16.mxu1 %v8780_v5 }
 0x9b1   :  { %v8682_v54 = vpop.eup %8681 }
 0x9b2   :  { %v6644_v49 = vmul.f32 %v8682_v54, %v10688_v30  ;;  %v10870_v9 = vadd.f32 %v10743_v60, %v6659_v12 }
 0x9b3   :  { %8010 = vmatpush3.bf16.msra.mxu1 %v8781_v6 }
 0x9b4   :  { %v6685_v51 = vpack.c.bf16 %v10870_v9, %v10867_v47  ;;  %v6660_v30 = vmul.f32 %v10733_v18, %v6644_v49 }
 0x9b5   :  { %v8684_v34 = vpop.eup %8683 }
 0x9b6   :  { %v6645_v8 = vmul.f32 %v8684_v34, %v10694_v11  ;;  %7750 = vmatmul.mubr.msk.bf16.gmra.mxu0 %vm147_vm0, %v6685_v51  ;;  %8472 = vmatmul.mubr.msk.bf16.gmra.mxu1 %vm147_vm0, %v6685_v51  ;;  %v10885_v56 = vadd.f32 %v10743_v60, %v6660_v30 }
 0x9b7   :  { %6804 = vmatprep.mubr.bf16.mxu0 %v11273_v38 }
 0x9b8   :  { %v6661_v36 = vmul.f32 %v10733_v18, %v6645_v8 }
 0x9b9   :  { %v8686_v21 = vpop.eup %8685 }
 0x9ba   :  { %v6646_v27 = vmul.f32 %v8686_v21, %v10700_v39  ;;  %v10888_v15 = vadd.f32 %v10743_v60, %v6661_v36 }
 0x9bc   :  { %v6686_v11 = vpack.c.bf16 %v10888_v15, %v10885_v56  ;;  %v6662_v14 = vmul.f32 %v10733_v18, %v6646_v27 }
 0x9bd   :  { %v8688_v0 = vpop.eup %8687 }
 0x9be   :  { %v6647_v32 = vmul.f32 %v8688_v0, %v10706_v44  ;;  %7751 = vmatmul.mubr.msk.bf16.gmra.mxu0 %vm147_vm0, %v6686_v11  ;;  %8475 = vmatprep.mubr.msk.bf16.mxu1 %vm147_vm0, %v6686_v11  ;;  %v10899_v46 = vadd.f32 %v10743_v60, %v6662_v14 }
 0x9bf   :  { %6814 = vmatprep.mubr.bf16.mxu0 %v11273_v38 }
 0x9c0   :  { %v6663_v39 = vmul.f32 %v10733_v18, %v6647_v32 }
 0x9c2   :  { %v10902_v26 = vadd.f32 %v10743_v60, %v6663_v39 }
 0x9c4   :  { %v6687_v24 = vpack.c.bf16 %v10902_v26, %v10899_v46 }
 0x9c6   :  { %7752 = vmatmul.mubr.msk.bf16.gmra.mxu0 %vm147_vm0, %v6687_v24  ;;  %8476 = vmatmul.mubr.msk.bf16.gmra.mxu1 %vm147_vm0, %v6687_v24 }
 0xa4a   :  { %v6746_v44 = vpop.f32.mrf.mxu0 }
 0xa4b   :  { %v6747_v38 = vadd.f32 %v6746_v44, %v9812_v40 }
 0xa4c   :  { %v6748_v43 = vpop.f32.mrf.mxu0 }
 0xa4d   :  { %v6749_v35 = vadd.f32 %v6748_v43, %v9814_v25  ;;  %v6970_v13 = vmul.f32 0.01, %v6747_v38  ;;  %vm6922_vm13 = vcmp.ge.f32.partialorder %v6747_v38, 0.0 }
 0xa4e   :  { %v6750_v18 = vpop.f32.mrf.mxu0 }
 0xa4f   :  { %v6751_v2 = vadd.f32 %v6750_v18, %v9812_v40  ;;  %v6971_v28 = vmul.f32 0.01, %v6749_v35  ;;  %vm6923_vm2 = vcmp.ge.f32.partialorder %v6749_v35, 0.0  ;;  %v7018_v23 = vsel %vm6922_vm13, %v6747_v38, %v6970_v13 }
 0xa50   :  { %v6752_v53 = vpop.f32.mrf.mxu0 }
 0xa51   :  { %vm6925_vm1 = vcmp.ge.f32.partialorder %v6751_v2, 0.0  ;;  %v6973_v60 = vmul.f32 0.01, %v6751_v2  ;;  %v6753_v41 = vadd.f32 %v6752_v53, %v9814_v25  ;;  %v7019_v3 = vsel %vm6923_vm2, %v6749_v35, %v6971_v28 }
 0xa53   :  { %vm6926_vm12 = vcmp.ge.f32.partialorder %v6753_v41, 0.0  ;;  %v6974_v37 = vmul.f32 0.01, %v6753_v41  ;;  %v7021_v7 = vsel %vm6925_vm1, %v6751_v2, %v6973_v60 }
 0xa54   :  { %v7066_v22 = vpack.c.bf16 %v7021_v7, %v7018_v23 }
 0xa55   :  { %v6756_v59 = vpop.f32.mrf.mxu0  ;;  %v8465_v48 = vpop.f32.mrf.mxu1  ;;  %v7022_v17 = vsel %vm6926_vm12, %v6753_v41, %v6974_v37 }
 0xa56   :  { %v6757_v61 = vadd.f32 %v6756_v59, %v9812_v40  ;;  %v7067_v58 = vpack.c.bf16 %v7022_v17, %v7019_v3  ;;  %v6868_v49 = vadd.f32 %v8465_v48, %v9817_v55 }
 0xa57   :  { %v6758_v4 = vpop.f32.mrf.mxu0  ;;  %v6859_v62 = vpop.f32.mrf.mxu1 }
 0xa58   :  { %v6759_v57 = vadd.f32 %v6758_v4, %v9814_v25  ;;  %v6860_v19 = vadd.f32 %v6859_v62, %v9817_v55  ;;  %7122 = vmatprep.mubr.bf16.mxu1 %v7067_v58  ;;  %vm6928_vm14 = vcmp.ge.f32.partialorder %v6757_v61, 0.0  ;;  %v6976_v54 = vmul.f32 0.01, %v6757_v61 }
 0xa59   :  { %v6760_v33 = vpop.f32.mrf.mxu0  ;;  %v8466_v29 = vpop.f32.mrf.mxu1  ;;  %7123 = vmatmul.mubr.bf16.vlgmr.msra.gmra.mxu1 %v7066_v22  ;;  %vm6930_vm4 = vcmp.ge.f32.partialorder %v6868_v49, 0.0  ;;  %v6978_v0 = vmul.f32 0.01, %v6868_v49 }
 0xa5a   :  { %v6761_v12 = vadd.f32 %v6760_v33, %v9812_v40  ;;  %v6871_v5 = vadd.f32 %v8466_v29, %v9817_v55  ;;  %v6977_v34 = vmul.f32 0.01, %v6759_v57  ;;  %v6972_v8 = vmul.f32 0.01, %v6860_v19 }
 0xa5b   :  { %v6762_v6 = vpop.f32.mrf.mxu0  ;;  %v6862_v51 = vpop.f32.mrf.mxu1  ;;  %vm6929_vm3 = vcmp.ge.f32.partialorder %v6759_v57, 0.0  ;;  %vm6924_vm5 = vcmp.ge.f32.partialorder %v6860_v19, 0.0  ;;  %v7024_v14 = vsel %vm6928_vm14, %v6757_v61, %v6976_v54  ;;  %v7026_v13 = vsel %vm6930_vm4, %v6868_v49, %v6978_v0 }
 0xa5c   :  { %v6979_v30 = vmul.f32 0.01, %v6761_v12  ;;  %vm6931_vm15 = vcmp.ge.f32.partialorder %v6761_v12, 0.0  ;;  %v6981_v36 = vmul.f32 0.01, %v6871_v5  ;;  %v6763_v21 = vadd.f32 %v6762_v6, %v9814_v25 }
 0xa5d   :  { %v6863_v27 = vadd.f32 %v6862_v51, %v9817_v55  ;;  %vm6933_vm6 = vcmp.ge.f32.partialorder %v6871_v5, 0.0  ;;  %v7025_v35 = vsel %vm6929_vm3, %v6759_v57, %v6977_v34  ;;  %v7020_v18 = vsel %vm6924_vm5, %v6860_v19, %v6972_v8 }
 0xa5e   :  { %v6766_v11 = vpop.f32.mrf.mxu0  ;;  %vm6932_vm7 = vcmp.ge.f32.partialorder %v6763_v21, 0.0  ;;  %v6980_v32 = vmul.f32 0.01, %v6763_v21  ;;  %v7027_v39 = vsel %vm6931_vm15, %v6761_v12, %v6979_v30  ;;  %v7029_v43 = vsel %vm6933_vm6, %v6871_v5, %v6981_v36 }
 0xa5f   :  { %vm6927_vm8 = vcmp.ge.f32.partialorder %v6863_v27, 0.0  ;;  %v6975_v24 = vmul.f32 0.01, %v6863_v27  ;;  %v6767_v2 = vadd.f32 %v6766_v11, %v9812_v40  ;;  %v7069_v37 = vpack.c.bf16 %v7027_v39, %v7024_v14 }
 0xa60   :  { %v6768_v44 = vpop.f32.mrf.mxu0  ;;  %v7028_v38 = vsel %vm6932_vm7, %v6763_v21, %v6980_v32  ;;  %v7071_v48 = vpack.c.bf16 %v7029_v43, %v7026_v13 }
 0xa61   :  { %v6769_v53 = vadd.f32 %v6768_v44, %v9814_v25  ;;  %v7070_v60 = vpack.c.bf16 %v7028_v38, %v7025_v35  ;;  %v7023_v41 = vsel %vm6927_vm8, %v6863_v27, %v6975_v24  ;;  %v6982_v61 = vmul.f32 0.01, %v6767_v2 }
 0xa62   :  { %v6770_v28 = vpop.f32.mrf.mxu0  ;;  %v7068_v59 = vpack.c.bf16 %v7023_v41, %v7020_v18  ;;  %vm6934_vm10 = vcmp.ge.f32.partialorder %v6767_v2, 0.0 }
 0xa63   :  { %v6771_v7 = vadd.f32 %v6770_v28, %v9812_v40  ;;  %7130 = vmatprep.mubr.bf16.mxu1 %v7070_v60  ;;  %v6983_v4 = vmul.f32 0.01, %v6769_v53  ;;  %vm6935_vm11 = vcmp.ge.f32.partialorder %v6769_v53, 0.0  ;;  %v7030_v54 = vsel %vm6934_vm10, %v6767_v2, %v6982_v61 }
 0xa64   :  { %v6772_v3 = vpop.f32.mrf.mxu0  ;;  %8495 = vmatprep.mubr.bf16.mxu0 %v7068_v59  ;;  %7131 = vmatmul.mubr.bf16.gmra.mxu1 %v7069_v37 }
 0xa65   :  { %vm6937_vm9 = vcmp.ge.f32.partialorder %v6771_v7, 0.0  ;;  %v6985_v17 = vmul.f32 0.01, %v6771_v7  ;;  %v6773_v23 = vadd.f32 %v6772_v3, %v9814_v25  ;;  %8496 = vmatmul.mubr.bf16.vlgmr.msra.gmra.mxu0 %v7071_v48  ;;  %v7031_v51 = vsel %vm6935_vm11, %v6769_v53, %v6983_v4 }
 0xa66   :  { %v6776_v62 = vpop.f32.mrf.mxu0  ;;  %v8469_v58 = vpop.f32.mrf.mxu1 }
 0xa67   :  { %vm6938_vm1 = vcmp.ge.f32.partialorder %v6773_v23, 0.0  ;;  %v6986_v22 = vmul.f32 0.01, %v6773_v23  ;;  %v7033_v57 = vsel %vm6937_vm9, %v6771_v7, %v6985_v17  ;;  %v6884_v19 = vadd.f32 %v8469_v58, %v9817_v55 }
 0xa68   :  { %v6778_v33 = vpop.f32.mrf.mxu0  ;;  %v6875_v29 = vpop.f32.mrf.mxu1  ;;  %v7072_v8 = vpack.c.bf16 %v7033_v57, %v7030_v54  ;;  %v6777_v30 = vadd.f32 %v6776_v62, %v9812_v40 }
 0xa69   :  { %v6779_v12 = vadd.f32 %v6778_v33, %v9814_v25  ;;  %v6876_v5 = vadd.f32 %v6875_v29, %v9817_v55  ;;  %v7034_v34 = vsel %vm6938_vm1, %v6773_v23, %v6986_v22  ;;  %vm6942_vm2 = vcmp.ge.f32.partialorder %v6884_v19, 0.0 }
 0xa6a   :  { %v6780_v49 = vpop.f32.mrf.mxu0  ;;  %v8470_v6 = vpop.f32.mrf.mxu1  ;;  %v6990_v36 = vmul.f32 0.01, %v6884_v19  ;;  %v7073_v44 = vpack.c.bf16 %v7034_v34, %v7031_v51  ;;  %vm6940_vm5 = vcmp.ge.f32.partialorder %v6777_v30, 0.0  ;;  %v6988_v53 = vmul.f32 0.01, %v6777_v30 }
 0xa6b   :  { %vm6941_vm13 = vcmp.ge.f32.partialorder %v6779_v12, 0.0  ;;  %v6989_v21 = vmul.f32 0.01, %v6779_v12  ;;  %v6781_v27 = vadd.f32 %v6780_v49, %v9812_v40  ;;  %v6887_v11 = vadd.f32 %v8470_v6, %v9817_v55 }
 0xa6c   :  { %v6782_v0 = vpop.f32.mrf.mxu0  ;;  %v6878_v32 = vpop.f32.mrf.mxu1  ;;  %v6984_v14 = vmul.f32 0.01, %v6876_v5  ;;  %vm6936_vm12 = vcmp.ge.f32.partialorder %v6876_v5, 0.0  ;;  %7138 = vmatprep.mubr.bf16.mxu1 %v7073_v44  ;;  %v7038_v60 = vsel %vm6942_vm2, %v6884_v19, %v6990_v36  ;;  %v7036_v57 = vsel %vm6940_vm5, %v6777_v30, %v6988_v53 }
 0xa6d   :  { %v6783_v39 = vadd.f32 %v6782_v0, %v9814_v25  ;;  %v6879_v24 = vadd.f32 %v6878_v32, %v9817_v55  ;;  %v6991_v43 = vmul.f32 0.01, %v6781_v27  ;;  %vm6945_vm14 = vcmp.ge.f32.partialorder %v6887_v11, 0.0  ;;  %7139 = vmatmul.mubr.bf16.gmra.mxu1 %v7072_v8 }
 0xa6e   :  { %v6993_v35 = vmul.f32 0.01, %v6887_v11  ;;  %v6786_v38 = vpop.f32.mrf.mxu0  ;;  %vm6943_vm6 = vcmp.ge.f32.partialorder %v6781_v27, 0.0  ;;  %v7037_v13 = vsel %vm6941_vm13, %v6779_v12, %v6989_v21  ;;  %v7032_v3 = vsel %vm6936_vm12, %v6876_v5, %v6984_v14 }
 0xa6f   :  { %vm6944_vm15 = vcmp.ge.f32.partialorder %v6783_v39, 0.0  ;;  %v6992_v18 = vmul.f32 0.01, %v6783_v39  ;;  %vm6939_vm3 = vcmp.ge.f32.partialorder %v6879_v24, 0.0  ;;  %v6987_v2 = vmul.f32 0.01, %v6879_v24 }
 0xa70   :  { %v6788_v28 = vpop.f32.mrf.mxu0  ;;  %v7041_v41 = vsel %vm6945_vm14, %v6887_v11, %v6993_v35  ;;  %v6787_v7 = vadd.f32 %v6786_v38, %v9812_v40  ;;  %v7039_v23 = vsel %vm6943_vm6, %v6781_v27, %v6991_v43 }
 0xa71   :  { %v7040_v37 = vsel %vm6944_vm15, %v6783_v39, %v6992_v18  ;;  %v7035_v17 = vsel %vm6939_vm3, %v6879_v24, %v6987_v2  ;;  %v6789_v61 = vadd.f32 %v6788_v28, %v9814_v25  ;;  %v7077_v58 = vpack.c.bf16 %v7041_v41, %v7038_v60 }
 0xa72   :  { %v6790_v59 = vpop.f32.mrf.mxu0  ;;  %v7076_v48 = vpack.c.bf16 %v7040_v37, %v7037_v13  ;;  %v7074_v62 = vpack.c.bf16 %v7035_v17, %v7032_v3  ;;  %v7075_v29 = vpack.c.bf16 %v7039_v23, %v7036_v57  ;;  %v6994_v12 = vmul.f32 0.01, %v6787_v7 }
 0xa73   :  { %v6791_v4 = vadd.f32 %v6790_v59, %v9812_v40  ;;  %vm6946_vm7 = vcmp.ge.f32.partialorder %v6787_v7, 0.0  ;;  %v6995_v49 = vmul.f32 0.01, %v6789_v61  ;;  %vm6947_vm9 = vcmp.ge.f32.partialorder %v6789_v61, 0.0 }
 0xa74   :  { %v6792_v22 = vpop.f32.mrf.mxu0  ;;  %7146 = vmatprep.mubr.bf16.mxu1 %v7076_v48  ;;  %8499 = vmatprep.mubr.bf16.mxu0 %v7074_v62  ;;  %v7042_v27 = vsel %vm6946_vm7, %v6787_v7, %v6994_v12 }
 0xa75   :  { %vm6949_vm4 = vcmp.ge.f32.partialorder %v6791_v4, 0.0  ;;  %v6997_v19 = vmul.f32 0.01, %v6791_v4  ;;  %v6793_v33 = vadd.f32 %v6792_v22, %v9814_v25  ;;  %8500 = vmatmul.mubr.bf16.gmra.mxu0 %v7077_v58  ;;  %7147 = vmatmul.mubr.bf16.gmra.mxu1 %v7075_v29  ;;  %v7043_v44 = vsel %vm6947_vm9, %v6789_v61, %v6995_v49 }
 0xa76   :  { %v6796_v5 = vpop.f32.mrf.mxu0  ;;  %v8473_v54 = vpop.f32.mrf.mxu1 }
 0xa77   :  { %vm6950_vm8 = vcmp.ge.f32.partialorder %v6793_v33, 0.0  ;;  %v6998_v6 = vmul.f32 0.01, %v6793_v33  ;;  %v7045_v51 = vsel %vm6949_vm4, %v6791_v4, %v6997_v19  ;;  %v6900_v34 = vadd.f32 %v8473_v54, %v9817_v55 }
 0xa78   :  { %v6798_v8 = vpop.f32.mrf.mxu0  ;;  %v6891_v30 = vpop.f32.mrf.mxu1  ;;  %v7078_v14 = vpack.c.bf16 %v7045_v51, %v7042_v27  ;;  %v6797_v39 = vadd.f32 %v6796_v5, %v9812_v40 }
 0xa79   :  { %v6799_v36 = vadd.f32 %v6798_v8, %v9814_v25  ;;  %v6892_v21 = vadd.f32 %v6891_v30, %v9817_v55  ;;  %v7046_v32 = vsel %vm6950_vm8, %v6793_v33, %v6998_v6  ;;  %v7002_v24 = vmul.f32 0.01, %v6900_v34 }
 0xa7a   :  { %v6800_v11 = vpop.f32.mrf.mxu0  ;;  %v8474_v0 = vpop.f32.mrf.mxu1  ;;  %v7079_v41 = vpack.c.bf16 %v7046_v32, %v7043_v44  ;;  %vm6952_vm12 = vcmp.ge.f32.partialorder %v6797_v39, 0.0  ;;  %v7000_v3 = vmul.f32 0.01, %v6797_v39  ;;  %vm6954_vm14 = vcmp.ge.f32.partialorder %v6900_v34, 0.0 }
 0xa7b   :  { %vm6953_vm10 = vcmp.ge.f32.partialorder %v6799_v36, 0.0  ;;  %v7001_v43 = vmul.f32 0.01, %v6799_v36  ;;  %v6801_v35 = vadd.f32 %v6800_v11, %v9812_v40  ;;  %v6903_v38 = vadd.f32 %v8474_v0, %v9817_v55 }
 0xa7c   :  { %v6802_v18 = vpop.f32.mrf.mxu0  ;;  %v6894_v2 = vpop.f32.mrf.mxu1  ;;  %v6996_v53 = vmul.f32 0.01, %v6892_v21  ;;  %vm6948_vm11 = vcmp.ge.f32.partialorder %v6892_v21, 0.0  ;;  %7154 = vmatprep.mubr.bf16.mxu1 %v7079_v41  ;;  %v7050_v29 = vsel %vm6954_vm14, %v6900_v34, %v7002_v24  ;;  %v7048_v51 = vsel %vm6952_vm12, %v6797_v39, %v7000_v3 }
 0xa7d   :  { %v6803_v28 = vadd.f32 %v6802_v18, %v9814_v25  ;;  %v6895_v60 = vadd.f32 %v6894_v2, %v9817_v55  ;;  %v7003_v13 = vmul.f32 0.01, %v6801_v35  ;;  %vm6957_vm1 = vcmp.ge.f32.partialorder %v6903_v38, 0.0  ;;  %7155 = vmatmul.mubr.bf16.gmra.mxu1 %v7078_v14 }
 0xa7e   :  { %v7005_v37 = vmul.f32 0.01, %v6903_v38  ;;  %v6806_v7 = vpop.f32.mrf.mxu0  ;;  %vm6955_vm15 = vcmp.ge.f32.partialorder %v6801_v35, 0.0  ;;  %v7049_v4 = vsel %vm6953_vm10, %v6799_v36, %v7001_v43  ;;  %v7044_v19 = vsel %vm6948_vm11, %v6892_v21, %v6996_v53 }
 0xa7f   :  { %vm6956_vm2 = vcmp.ge.f32.partialorder %v6803_v28, 0.0  ;;  %v7004_v59 = vmul.f32 0.01, %v6803_v28  ;;  %vm6951_vm13 = vcmp.ge.f32.partialorder %v6895_v60, 0.0  ;;  %v6999_v48 = vmul.f32 0.01, %v6895_v60 }
 0xa80   :  { %v6808_v17 = vpop.f32.mrf.mxu0  ;;  %v7053_v23 = vsel %vm6957_vm1, %v6903_v38, %v7005_v37  ;;  %v6807_v61 = vadd.f32 %v6806_v7, %v9812_v40  ;;  %v7051_v12 = vsel %vm6955_vm15, %v6801_v35, %v7003_v13 }
 0xa81   :  { %v7052_v62 = vsel %vm6956_vm2, %v6803_v28, %v7004_v59  ;;  %v6809_v58 = vadd.f32 %v6808_v17, %v9814_v25  ;;  %v7047_v33 = vsel %vm6951_vm13, %v6895_v60, %v6999_v48  ;;  %v7083_v49 = vpack.c.bf16 %v7053_v23, %v7050_v29 }
 0xa82   :  { %v6810_v22 = vpop.f32.mrf.mxu0  ;;  %v7082_v57 = vpack.c.bf16 %v7052_v62, %v7049_v4  ;;  %v7080_v54 = vpack.c.bf16 %v7047_v33, %v7044_v19  ;;  %v7081_v36 = vpack.c.bf16 %v7051_v12, %v7048_v51  ;;  %v7006_v27 = vmul.f32 0.01, %v6807_v61 }
 0xa83   :  { %v6811_v5 = vadd.f32 %v6810_v22, %v9812_v40  ;;  %v7007_v21 = vmul.f32 0.01, %v6809_v58  ;;  %vm6958_vm5 = vcmp.ge.f32.partialorder %v6807_v61, 0.0  ;;  %vm6959_vm6 = vcmp.ge.f32.partialorder %v6809_v58, 0.0 }
 0xa84   :  { %v6812_v6 = vpop.f32.mrf.mxu0  ;;  %7162 = vmatprep.mubr.bf16.mxu1 %v7082_v57  ;;  %8503 = vmatprep.mubr.bf16.mxu0 %v7080_v54  ;;  %v7054_v35 = vsel %vm6958_vm5, %v6807_v61, %v7006_v27 }
 0xa85   :  { %vm6961_vm3 = vcmp.ge.f32.partialorder %v6811_v5, 0.0  ;;  %v7009_v8 = vmul.f32 0.01, %v6811_v5  ;;  %v6813_v30 = vadd.f32 %v6812_v6, %v9814_v25  ;;  %8504 = vmatmul.mubr.bf16.gmra.mxu0 %v7083_v49  ;;  %7163 = vmatmul.mubr.bf16.gmra.mxu1 %v7081_v36  ;;  %v7055_v2 = vsel %vm6959_vm6, %v6809_v58, %v7007_v21 }
 0xa86   :  { %v6816_v11 = vpop.f32.mrf.mxu0  ;;  %v8477_v34 = vpop.f32.mrf.mxu1 }
 0xa87   :  { %vm6962_vm4 = vcmp.ge.f32.partialorder %v6813_v30, 0.0  ;;  %v7010_v0 = vmul.f32 0.01, %v6813_v30  ;;  %v7057_v32 = vsel %vm6961_vm3, %v6811_v5, %v7009_v8  ;;  %v6916_v14 = vadd.f32 %v8477_v34, %v9817_v55 }
 0xa88   :  { %v6818_v39 = vpop.f32.mrf.mxu0  ;;  %v6907_v24 = vpop.f32.mrf.mxu1  ;;  %v7084_v28 = vpack.c.bf16 %v7057_v32, %v7054_v35  ;;  %v6817_v60 = vadd.f32 %v6816_v11, %v9812_v40 }
 0xa89   :  { %v6819_v44 = vadd.f32 %v6818_v39, %v9814_v25  ;;  %v6908_v43 = vadd.f32 %v6907_v24, %v9817_v55  ;;  %v7058_v53 = vsel %vm6962_vm4, %v6813_v30, %v7010_v0  ;;  %vm6966_vm7 = vcmp.ge.f32.partialorder %v6916_v14, 0.0 }
 0xa8a   :  { %v6820_v38 = vpop.f32.mrf.mxu0  ;;  %v8478_v18 = vpop.f32.mrf.mxu1  ;;  %v7014_v41 = vmul.f32 0.01, %v6916_v14  ;;  %v7085_v61 = vpack.c.bf16 %v7058_v53, %v7055_v2  ;;  %vm6964_vm13 = vcmp.ge.f32.partialorder %v6817_v60, 0.0 }
 0xa8b   :  { %vm6965_vm8 = vcmp.ge.f32.partialorder %v6819_v44, 0.0  ;;  %v7013_v13 = vmul.f32 0.01, %v6819_v44  ;;  %v6821_v37 = vadd.f32 %v6820_v38, %v9812_v40  ;;  %v6919_v7 = vadd.f32 %v8478_v18, %v9817_v55 }
 0xa8c   :  { %v6822_v59 = vpop.f32.mrf.mxu0  ;;  %v6910_v48 = vpop.f32.mrf.mxu1  ;;  %v7008_v3 = vmul.f32 0.01, %v6908_v43  ;;  %vm6960_vm9 = vcmp.ge.f32.partialorder %v6908_v43, 0.0  ;;  %7170 = vmatprep.mubr.bf16.mxu1 %v7085_v61  ;;  %v7012_v40 = vmul.f32 0.01, %v6817_v60 }
 0xa8d   :  { %v6823_v17 = vadd.f32 %v6822_v59, %v9814_v25  ;;  %v6911_v23 = vadd.f32 %v6910_v48, %v9817_v55  ;;  %v7015_v4 = vmul.f32 0.01, %v6821_v37  ;;  %vm6969_vm10 = vcmp.ge.f32.partialorder %v6919_v7, 0.0  ;;  %7171 = vmatmul.mubr.bf16.gmra.mxu1 %v7084_v28 }
 0xa8e   :  { %v7017_v62 = vmul.f32 0.01, %v6919_v7  ;;  %vm6967_vm2 = vcmp.ge.f32.partialorder %v6821_v37, 0.0  ;;  %v7061_v19 = vsel %vm6965_vm8, %v6819_v44, %v7013_v13  ;;  %v7056_v25 = vsel %vm6960_vm9, %v6908_v43, %v7008_v3 }
 0xa8f   :  { %vm6968_vm11 = vcmp.ge.f32.partialorder %v6823_v17, 0.0  ;;  %v7016_v58 = vmul.f32 0.01, %v6823_v17  ;;  %vm6963_vm1 = vcmp.ge.f32.partialorder %v6911_v23, 0.0  ;;  %v7011_v22 = vmul.f32 0.01, %v6911_v23 }
 0xa90   :  { %v7065_v57 = vsel %vm6969_vm10, %v6919_v7, %v7017_v62  ;;  %v7062_v55 = vsel %vm6966_vm7, %v6916_v14, %v7014_v41  ;;  %v7063_v54 = vsel %vm6967_vm2, %v6821_v37, %v7015_v4  ;;  %v7060_v6 = vsel %vm6964_vm13, %v6817_v60, %v7012_v40  ;;  %v10972_v14 = vld [vmem:[%s11252_s7] ss:$0 sm:$0xff] }
 0xa91   :  { %v7064_v33 = vsel %vm6968_vm11, %v6823_v17, %v7016_v58  ;;  %v7059_v29 = vsel %vm6963_vm1, %v6911_v23, %v7011_v22  ;;  %v7089_v49 = vpack.c.bf16 %v7065_v57, %v7062_v55  ;;  %v7087_v51 = vpack.c.bf16 %v7063_v54, %v7060_v6 }
 0xa92   :  { %v7088_v12 = vpack.c.bf16 %v7064_v33, %v7061_v19  ;;  %v7086_v5 = vpack.c.bf16 %v7059_v29, %v7056_v25 }
 0xa94   :  { %7178 = vmatprep.mubr.bf16.mxu1 %v7088_v12  ;;  %8507 = vmatprep.mubr.bf16.mxu0 %v7086_v5 }
 0xa95   :  { %8508 = vmatmul.mubr.bf16.gmra.mxu0 %v7089_v49  ;;  %7179 = vmatmul.mubr.bf16.gmra.mxu1 %v7087_v51 }
 0xb19   :  { %v8011_v8 = vpop.f32.mrf.mxu1 }
 0xb1b   :  { %v8012_v30 = vpop.f32.mrf.mxu1 }
 0xb1c   :  { %v8013_v21 = vadd.f32 %v8012_v30, %v8011_v8 }
 0xb1d   :  { %v8014_v36 = vpop.f32.mrf.mxu1 }
 0xb1e   :  { %v7125_v39 = vadd.f32 %v10972_v14, %v8013_v21 }
 0xb1f   :  { %v8015_v27 = vpop.f32.mrf.mxu1 }
 0xb20   :  { %v8016_v0 = vadd.f32 %v8015_v27, %v8014_v36 }
 0xb22   :  { %v7128_v28 = vadd.f32 %v10972_v14, %v8016_v0 }
 0xb24   :  { %v8017_v11 = vpop.f32.mrf.mxu1 }
 0xb25   :  { %v8497_v34 = vpop.f32.mrf.mxu0 }
 0xb26   :  { %v8018_v32 = vpop.f32.mrf.mxu1 }
 0xb27   :  { %v8019_v24 = vadd.f32 %v8018_v32, %v8017_v11  ;;  %v7221_v44 = vpop.f32.mrf.mxu0 }
 0xb28   :  { %v7222_v43 = vadd.f32 %v7221_v44, %v7125_v39  ;;  %v8020_v35 = vpop.f32.mrf.mxu1 }
 0xb29   :  { %v7133_v38 = vadd.f32 %v10972_v14, %v8019_v24  ;;  %v8498_v18 = vpop.f32.mrf.mxu0 }
 0xb2a   :  { %v10977_v2 = vadd.f32 %v7222_v43, %v10717_v1  ;;  %v8021_v53 = vpop.f32.mrf.mxu1 }
 0xb2b   :  { %v7230_v60 = vadd.f32 %v8497_v34, %v7133_v38  ;;  %v8022_v41 = vadd.f32 %v8021_v53, %v8020_v35  ;;  %v7224_v13 = vpop.f32.mrf.mxu0 }
 0xb2c   :  { %v7225_v37 = vadd.f32 %v7224_v13, %v7128_v28  ;;  %v7300_v7 = vsel %vm147_vm0, %v10977_v2, 0.0 }
 0xb2d   :  { %v7136_v59 = vadd.f32 %v10972_v14, %v8022_v41  ;;  %7301 = vadd.xlane.f32.xlu0 %v7300_v7  ;;  %v10984_v48 = vadd.f32 %v7230_v60, %v10746_v16  ;;  %v8023_v17 = vpop.f32.mrf.mxu1 }
 0xb2e   :  { %v10987_v3 = vadd.f32 %v7225_v37, %v10720_v10 }
 0xb2f   :  { %v7233_v1 = vadd.f32 %v8498_v18, %v7136_v59  ;;  %v7306_v23 = vsel %vm147_vm0, %v10984_v48, 0.0  ;;  %v8024_v4 = vpop.f32.mrf.mxu1 }
 0xb30   :  { %v7303_v61 = vsel %vm147_vm0, %v10987_v3, 0.0  ;;  %v8025_v58 = vadd.f32 %v8024_v4, %v8023_v17 }
 0xb31   :  { %7304 = vadd.xlane.f32.xlu1 %v7303_v61  ;;  %7307 = vadd.xlane.f32.xlu0 %v7306_v23  ;;  %v10994_v62 = vadd.f32 %v7233_v1, %v10749_v31  ;;  %v8026_v16 = vpop.f32.mrf.mxu1 }
 0xb32   :  { %v7141_v57 = vadd.f32 %v10972_v14, %v8025_v58 }
 0xb33   :  { %v7309_v10 = vsel %vm147_vm0, %v10994_v62, 0.0  ;;  %v8027_v22 = vpop.f32.mrf.mxu1 }
 0xb34   :  { %v8028_v6 = vadd.f32 %v8027_v22, %v8026_v16 }
 0xb35   :  { %v8501_v40 = vpop.f32.mrf.mxu0  ;;  %7310 = vadd.xlane.f32.xlu0 %v7309_v10  ;;  %v8029_v19 = vpop.f32.mrf.mxu1 }
 0xb36   :  { %v7144_v21 = vadd.f32 %v10972_v14, %v8028_v6 }
 0xb37   :  { %v7237_v33 = vpop.f32.mrf.mxu0  ;;  %v8030_v29 = vpop.f32.mrf.mxu1 }
 0xb38   :  { %v7238_v25 = vadd.f32 %v7237_v33, %v7141_v57  ;;  %v8031_v30 = vadd.f32 %v8030_v29, %v8029_v19 }
 0xb39   :  { %v8032_v12 = vpop.f32.mrf.mxu1  ;;  %v8502_v54 = vpop.f32.mrf.mxu0 }
 0xb3a   :  { %v11000_v55 = vadd.f32 %v7238_v25, %v10777_v50  ;;  %v7149_v32 = vadd.f32 %v10972_v14, %v8031_v30 }
 0xb3b   :  { %v8033_v5 = vpop.f32.mrf.mxu1  ;;  %v7240_v36 = vpop.f32.mrf.mxu0 }
 0xb3c   :  { %v7312_v31 = vsel %vm147_vm0, %v11000_v55, 0.0  ;;  %v7241_v39 = vadd.f32 %v7240_v36, %v7144_v21  ;;  %v8034_v43 = vadd.f32 %v8033_v5, %v8032_v12  ;;  %v7246_v41 = vadd.f32 %v8501_v40, %v7149_v32 }
 0xb3d   :  { %7313 = vadd.xlane.f32.xlu0 %v7312_v31  ;;  %v8035_v49 = vpop.f32.mrf.mxu1 }
 0xb3e   :  { %v11012_v13 = vadd.f32 %v7241_v39, %v10780_v42  ;;  %v7152_v59 = vadd.f32 %v10972_v14, %v8034_v43  ;;  %v11024_v10 = vadd.f32 %v7246_v41, %v10810_v63 }
 0xb3f   :  { %v8036_v51 = vpop.f32.mrf.mxu1 }
 0xb40   :  { %v8037_v8 = vadd.f32 %v8036_v51, %v8035_v49  ;;  %v7315_v42 = vsel %vm147_vm0, %v11012_v13, 0.0  ;;  %v7249_v22 = vadd.f32 %v8502_v54, %v7152_v59  ;;  %v7318_v31 = vsel %vm147_vm0, %v11024_v10, 0.0 }
 0xb41   :  { %v8038_v27 = vpop.f32.mrf.mxu1 }
 0xb42   :  { %v7157_v0 = vadd.f32 %v10972_v14, %v8037_v8  ;;  %v11040_v54 = vadd.f32 %v7249_v22, %v10813_v20 }
 0xb43   :  { %v8039_v11 = vpop.f32.mrf.mxu1 }
 0xb44   :  { %v8040_v50 = vadd.f32 %v8039_v11, %v8038_v27 }
 0xb45   :  { %v8505_v34 = vpop.f32.mrf.mxu0  ;;  %v8041_v24 = vpop.f32.mrf.mxu1 }
 0xb46   :  { %v7160_v60 = vadd.f32 %v10972_v14, %v8040_v50 }
 0xb47   :  { %v7253_v44 = vpop.f32.mrf.mxu0  ;;  %v8042_v38 = vpop.f32.mrf.mxu1 }
 0xb48   :  { %v7254_v35 = vadd.f32 %v7253_v44, %v7157_v0  ;;  %v8043_v53 = vadd.f32 %v8042_v38, %v8041_v24 }
 0xb49   :  { %v8506_v18 = vpop.f32.mrf.mxu0  ;;  %v8044_v37 = vpop.f32.mrf.mxu1 }
 0xb4a   :  { %v11008_v28 = vadd.f32 %v7254_v35, %v10840_v45  ;;  %v7165_v1 = vadd.f32 %v10972_v14, %v8043_v53 }
 0xb4b   :  { %v7256_v7 = vpop.f32.mrf.mxu0  ;;  %v8045_v61 = vpop.f32.mrf.mxu1 }
 0xb4c   :  { %v7257_v17 = vadd.f32 %v7256_v7, %v7160_v60  ;;  %v7324_v23 = vsel %vm147_vm0, %v11008_v28, 0.0  ;;  %v7262_v45 = vadd.f32 %v8505_v34, %v7165_v1  ;;  %v8046_v4 = vadd.f32 %v8045_v61, %v8044_v37 }
 0xb4d   :  { %7325 = vadd.xlane.f32.xlu0 %v7324_v23  ;;  %v8047_v16 = vpop.f32.mrf.mxu1 }
 0xb4e   :  { %v11019_v58 = vadd.f32 %v7257_v17, %v10843_v52  ;;  %v7168_v40 = vadd.f32 %v10972_v14, %v8046_v4  ;;  %v11030_v19 = vadd.f32 %v7262_v45, %v10867_v47 }
 0xb4f   :  { %v8048_v33 = vpop.f32.mrf.mxu1 }
 0xb50   :  { %v7327_v57 = vsel %vm147_vm0, %v11019_v58, 0.0  ;;  %v7265_v52 = vadd.f32 %v8506_v18, %v7168_v40  ;;  %v8049_v25 = vadd.f32 %v8048_v33, %v8047_v16  ;;  %v7330_v63 = vsel %vm147_vm0, %v11030_v19, 0.0 }
 0xb51   :  { %7328 = vadd.xlane.f32.xlu1 %v7327_v57  ;;  %7316 = vadd.xlane.f32.xlu0 %v7315_v42  ;;  %v8050_v29 = vpop.f32.mrf.mxu1 }
 0xb52   :  { %v11037_v5 = vadd.f32 %v7265_v52, %v10870_v9  ;;  %v7173_v49 = vadd.f32 %v10972_v14, %v8049_v25  ;;  %v7321_v9 = vsel %vm147_vm0, %v11040_v54, 0.0 }
 0xb53   :  { %v8051_v47 = vpop.f32.mrf.mxu1 }
 0xb54   :  { %v8052_v6 = vadd.f32 %v8051_v47, %v8050_v29  ;;  %v7333_v27 = vsel %vm147_vm0, %v11037_v5, 0.0 }
 0xb55   :  { %v8509_v12 = vpop.f32.mrf.mxu0  ;;  %7331 = vadd.xlane.f32.xlu1 %v7330_v63  ;;  %7319 = vadd.xlane.f32.xlu0 %v7318_v31  ;;  %v8053_v8 = vpop.f32.mrf.mxu1 }
 0xb56   :  { %v7176_v11 = vadd.f32 %v10972_v14, %v8052_v6 }
 0xb57   :  { %v7269_v51 = vpop.f32.mrf.mxu0  ;;  %v8054_v21 = vpop.f32.mrf.mxu1 }
 0xb58   :  { %v7270_v30 = vadd.f32 %v7269_v51, %v7173_v49  ;;  %v8055_v34 = vadd.f32 %v8054_v21, %v8053_v8 }
 0xb59   :  { %v8510_v36 = vpop.f32.mrf.mxu0  ;;  %7334 = vadd.xlane.f32.xlu1 %v7333_v27  ;;  %7322 = vadd.xlane.f32.xlu0 %v7321_v9  ;;  %v8056_v0 = vpop.f32.mrf.mxu1 }
 0xb5a   :  { %v11048_v20 = vadd.f32 %v7270_v30, %v10885_v56  ;;  %v7181_v24 = vadd.f32 %v10972_v14, %v8055_v34 }
 0xb5b   :  { %v7272_v50 = vpop.f32.mrf.mxu0  ;;  %v8057_v44 = vpop.f32.mrf.mxu1 }
 0xb5c   :  { %v7273_v32 = vadd.f32 %v7272_v50, %v7176_v11  ;;  %v7336_v39 = vsel %vm147_vm0, %v11048_v20, 0.0  ;;  %v7278_v56 = vadd.f32 %v8509_v12, %v7181_v24  ;;  %v8058_v35 = vadd.f32 %v8057_v44, %v8056_v0 }
 0xb5d   :  { %7337 = vadd.xlane.f32.xlu1 %v7336_v39 }
 0xb5e   :  { %v11055_v43 = vadd.f32 %v7273_v32, %v10888_v15  ;;  %v7184_v18 = vadd.f32 %v10972_v14, %v8058_v35  ;;  %v11061_v53 = vadd.f32 %v7278_v56, %v10899_v46 }
 0xb60   :  { %v7339_v38 = vsel %vm147_vm0, %v11055_v43, 0.0  ;;  %v7281_v60 = vadd.f32 %v8510_v36, %v7184_v18  ;;  %v7342_v41 = vsel %vm147_vm0, %v11061_v53, 0.0 }
 0xb61   :  { %7340 = vadd.xlane.f32.xlu1 %v7339_v38 }
 0xb62   :  { %v11066_v37 = vadd.f32 %v7281_v60, %v10902_v26 }
 0xb64   :  { %v7345_v15 = vsel %vm147_vm0, %v11066_v37, 0.0 }
 0xb65   :  { %7343 = vadd.xlane.f32.xlu1 %v7342_v41 }
 0xb69   :  { %7346 = vadd.xlane.f32.xlu1 %v7345_v15 }
 0xbb6   :  { %v7302_v7 = vpop.xlane.xlu0 %7301 }
 0xbb7   :  { %v7348_v59 = vmul.f32 0.0125, %v7302_v7 }
 0xbb9   :  { %v11071_v14 = vsub.f32 %v10977_v2, %v7348_v59 }
 0xbba   :  { %v7305_v46 = vpop.xlane.xlu1 %7304  ;;  %v7308_v1 = vpop.xlane.xlu0 %7307 }
 0xbbb   :  { %v7349_v17 = vmul.f32 0.0125, %v7305_v46  ;;  %v7350_v23 = vmul.f32 0.0125, %v7308_v1  ;;  %v7380_v61 = vmul.f32 %v11071_v14, %v11071_v14 }
 0xbbd   :  { %v11076_v26 = vsub.f32 %v10987_v3, %v7349_v17  ;;  %v11079_v45 = vsub.f32 %v10984_v48, %v7350_v23  ;;  %v7396_v4 = vsel %vm147_vm0, %v7380_v61, 0.0 }
 0xbbe   :  { %7397 = vadd.xlane.f32.xlu0 %v7396_v4  ;;  %v7311_v16 = vpop.xlane.xlu0 %7310 }
 0xbbf   :  { %v7351_v42 = vmul.f32 0.0125, %v7311_v16  ;;  %v7381_v2 = vmul.f32 %v11076_v26, %v11076_v26  ;;  %v7382_v22 = vmul.f32 %v11079_v45, %v11079_v45 }
 0xbc1   :  { %v11087_v40 = vsub.f32 %v10994_v62, %v7351_v42  ;;  %v7399_v3 = vsel %vm147_vm0, %v7381_v2, 0.0  ;;  %v7402_v57 = vsel %vm147_vm0, %v7382_v22, 0.0 }
 0xbc2   :  { %7400 = vadd.xlane.f32.xlu1 %v7399_v3  ;;  %7403 = vadd.xlane.f32.xlu0 %v7402_v57 }
 0xbc3   :  { %v7383_v48 = vmul.f32 %v11087_v40, %v11087_v40 }
 0xbc5   :  { %v7405_v33 = vsel %vm147_vm0, %v7383_v48, 0.0 }
 0xbc6   :  { %7406 = vadd.xlane.f32.xlu0 %v7405_v33  ;;  %v7314_v52 = vpop.xlane.xlu0 %7313 }
 0xbc7   :  { %v7352_v25 = vmul.f32 0.0125, %v7314_v52 }
 0xbc9   :  { %v11095_v29 = vsub.f32 %v11000_v55, %v7352_v25 }
 0xbcb   :  { %v7384_v62 = vmul.f32 %v11095_v29, %v11095_v29 }
 0xbcd   :  { %v7408_v12 = vsel %vm147_vm0, %v7384_v62, 0.0 }
 0xbce   :  { %7409 = vadd.xlane.f32.xlu0 %v7408_v12 }
 0xbd6   :  { %v7326_v63 = vpop.xlane.xlu0 %7325 }
 0xbd7   :  { %v7356_v31 = vmul.f32 0.0125, %v7326_v63 }
 0xbd9   :  { %v11101_v47 = vsub.f32 %v11008_v28, %v7356_v31 }
 0xbda   :  { %v7329_v49 = vpop.xlane.xlu1 %7328  ;;  %v7317_v6 = vpop.xlane.xlu0 %7316 }
 0xbdb   :  { %v7357_v51 = vmul.f32 0.0125, %v7329_v49  ;;  %v7353_v8 = vmul.f32 0.0125, %v7317_v6  ;;  %v7388_v30 = vmul.f32 %v11101_v47, %v11101_v47 }
 0xbdd   :  { %v11106_v55 = vsub.f32 %v11019_v58, %v7357_v51  ;;  %v11109_v36 = vsub.f32 %v11012_v13, %v7353_v8  ;;  %v7420_v27 = vsel %vm147_vm0, %v7388_v30, 0.0 }
 0xbde   :  { %v7332_v9 = vpop.xlane.xlu1 %7331  ;;  %7421 = vadd.xlane.f32.xlu0 %v7420_v27  ;;  %v7320_v21 = vpop.xlane.xlu0 %7319 }
 0xbdf   :  { %v7358_v28 = vmul.f32 0.0125, %v7332_v9  ;;  %v7354_v11 = vmul.f32 0.0125, %v7320_v21  ;;  %v7389_v34 = vmul.f32 %v11106_v55, %v11106_v55  ;;  %v7385_v50 = vmul.f32 %v11109_v36, %v11109_v36 }
 0xbe1   :  { %v11117_v0 = vsub.f32 %v11030_v19, %v7358_v28  ;;  %v11120_v58 = vsub.f32 %v11024_v10, %v7354_v11  ;;  %v7423_v13 = vsel %vm147_vm0, %v7389_v34, 0.0  ;;  %v7411_v32 = vsel %vm147_vm0, %v7385_v50, 0.0 }
 0xbe2   :  { %7424 = vadd.xlane.f32.xlu1 %v7423_v13  ;;  %v7335_v39 = vpop.xlane.xlu1 %7334  ;;  %7412 = vadd.xlane.f32.xlu0 %v7411_v32  ;;  %v7323_v24 = vpop.xlane.xlu0 %7322 }
 0xbe3   :  { %v7359_v44 = vmul.f32 0.0125, %v7335_v39  ;;  %v7355_v56 = vmul.f32 0.0125, %v7323_v24  ;;  %v7390_v35 = vmul.f32 %v11117_v0, %v11117_v0  ;;  %v7386_v19 = vmul.f32 %v11120_v58, %v11120_v58 }
 0xbe5   :  { %v11129_v38 = vsub.f32 %v11037_v5, %v7359_v44  ;;  %v11132_v10 = vsub.f32 %v11040_v54, %v7355_v56  ;;  %v7426_v18 = vsel %vm147_vm0, %v7390_v35, 0.0  ;;  %v7414_v60 = vsel %vm147_vm0, %v7386_v19, 0.0 }
 0xbe6   :  { %7427 = vadd.xlane.f32.xlu1 %v7426_v18  ;;  %v7338_v41 = vpop.xlane.xlu1 %7337  ;;  %7415 = vadd.xlane.f32.xlu0 %v7414_v60 }
 0xbe7   :  { %v7360_v15 = vmul.f32 0.0125, %v7338_v41  ;;  %v7391_v7 = vmul.f32 %v11129_v38, %v11129_v38  ;;  %v7387_v59 = vmul.f32 %v11132_v10, %v11132_v10 }
 0xbe9   :  { %v11141_v5 = vsub.f32 %v11048_v20, %v7360_v15  ;;  %v7429_v54 = vsel %vm147_vm0, %v7391_v7, 0.0  ;;  %v7417_v46 = vsel %vm147_vm0, %v7387_v59, 0.0 }
 0xbea   :  { %7430 = vadd.xlane.f32.xlu1 %v7429_v54  ;;  %v7341_v1 = vpop.xlane.xlu1 %7340  ;;  %7418 = vadd.xlane.f32.xlu0 %v7417_v46 }
 0xbeb   :  { %v7361_v17 = vmul.f32 0.0125, %v7341_v1  ;;  %v7392_v23 = vmul.f32 %v11141_v5, %v11141_v5 }
 0xbed   :  { %v11148_v61 = vsub.f32 %v11055_v43, %v7361_v17  ;;  %v7432_v4 = vsel %vm147_vm0, %v7392_v23, 0.0  ;;  %v11171_v17 = vld [vmem:[%s11247_s2] ss:$0 sm:$0xff] }
 0xbee   :  { %7433 = vadd.xlane.f32.xlu1 %v7432_v4  ;;  %v7344_v16 = vpop.xlane.xlu1 %7343 }
 0xbef   :  { %v7362_v20 = vmul.f32 0.0125, %v7344_v16  ;;  %v7393_v42 = vmul.f32 %v11148_v61, %v11148_v61 }
 0xbf1   :  { %v11154_v2 = vsub.f32 %v11061_v53, %v7362_v20  ;;  %v7435_v22 = vsel %vm147_vm0, %v7393_v42, 0.0 }
 0xbf2   :  { %7436 = vadd.xlane.f32.xlu1 %v7435_v22  ;;  %v7347_v3 = vpop.xlane.xlu1 %7346 }
 0xbf3   :  { %v7363_v57 = vmul.f32 0.0125, %v7347_v3  ;;  %v7394_v43 = vmul.f32 %v11154_v2, %v11154_v2 }
 0xbf5   :  { %v11160_v48 = vsub.f32 %v11066_v37, %v7363_v57  ;;  %v7438_v33 = vsel %vm147_vm0, %v7394_v43, 0.0 }
 0xbf6   :  { %7439 = vadd.xlane.f32.xlu1 %v7438_v33  ;;  %v11179_v33 = vld [vmem:[%s11248_s3] ss:$0 sm:$0xff]  ;;  %s8810_s3 = smov [#allocation2]  }
 0xbf7   :  { %v7395_v52 = vmul.f32 %v11160_v48, %v11160_v48  ;;  %s7580_s17 = sshll.u32 %s8810_s3, 4  ;;  %s7581_s17 = int_to_ptr.vmem [resolvable:$true] %s7580_s17 }
 0xbf8   :  { %s8785_s4 = scalar_lea.vmem %s7581_s17, 256  ;;  %p8790_p1 = scmp.lt.s32.totalorder %s7581_s17, %s7581_s17 }
 0xbf9   :  { %v7441_v53 = vsel %vm147_vm0, %v7395_v52, 0.0  ;;  %p8786_p0 = scmp.ne.s32.totalorder %s7581_s17, %s8785_s4  ;;  %p8791_p2 = scmp.lt.s32.totalorder %s8785_s4, %s8785_s4 }
 0xbfa   :  { %7442 = vadd.xlane.f32.xlu1 %v7441_v53 }
 0xbfb   :  { %p8792_p3 = por %p8791_p2, %p8790_p1 }
 0xbfd   :  { %p8793_p4 = pnand %p8792_p3, %p8786_p0 }
 0xc47   :  { %v7398_v25 = vpop.xlane.xlu0 %7397 }
 0xc48   :  { %v7444_v31 = vmul.f32 0.0125, %v7398_v25 }
 0xc4a   :  { %v7460_v51 = vadd.f32 1e-05, %v7444_v31 }
 0xc4b   :  { %v7401_v62 = vpop.xlane.xlu1 %7400  ;;  %v7404_v12 = vpop.xlane.xlu0 %7403 }
 0xc4c   :  { %v7445_v63 = vmul.f32 0.0125, %v7401_v62  ;;  %v7446_v8 = vmul.f32 0.0125, %v7404_v12 }
 0xc4e   :  { %v7461_v6 = vadd.f32 1e-05, %v7445_v63  ;;  %v7462_v27 = vadd.f32 1e-05, %v7446_v8 }
 0xc4f   :  { %v7407_v49 = vpop.xlane.xlu0 %7406 }
 0xc50   :  { %8689 = vrsqrt.f32 %v7461_v6  ;;  %v7447_v30 = vmul.f32 0.0125, %v7407_v49 }
 0xc51   :  { %8691 = vrsqrt.f32 %v7460_v51 }
 0xc52   :  { %v7463_v21 = vadd.f32 1e-05, %v7447_v30  ;;  %8693 = vrsqrt.f32 %v7462_v27 }
 0xc54   :  { %8695 = vrsqrt.f32 %v7463_v21 }
 0xc57   :  { %v7410_v37 = vpop.xlane.xlu0 %7409 }
 0xc58   :  { %v7448_v9 = vmul.f32 0.0125, %v7410_v37 }
 0xc5a   :  { %v7464_v28 = vadd.f32 1e-05, %v7448_v9 }
 0xc5c   :  { %8697 = vrsqrt.f32 %v7464_v28 }
 0xc5d   :  { %v8690_v32 = vpop.eup %8689 }
 0xc5e   :  { %v8692_v44 = vpop.eup %8691  ;;  %v7493_v19 = vmul.f32 %v8690_v32, %v11076_v26 }
 0xc5f   :  { %v7492_v59 = vmul.f32 %v8692_v44, %v11071_v14  ;;  %v8694_v54 = vpop.eup %8693 }
 0xc60   :  { %v7509_v23 = vmul.f32 %v11171_v17, %v7493_v19  ;;  %v7494_v22 = vmul.f32 %v8694_v54, %v11079_v45 }
 0xc61   :  { %v8696_v16 = vpop.eup %8695  ;;  %v7508_v14 = vmul.f32 %v11171_v17, %v7492_v59 }
 0xc62   :  { %v7525_v52 = vadd.f32 %v11179_v33, %v7509_v23  ;;  %v7495_v53 = vmul.f32 %v8696_v16, %v11087_v40  ;;  %v7510_v45 = vmul.f32 %v11171_v17, %v7494_v22 }
 0xc63   :  { %v7524_v12 = vadd.f32 %v11179_v33, %v7508_v14 }
 0xc64   :  { %v7541_v49 = vsel %vm147_vm0, %v7525_v52, 0.0  ;;  %v7511_v6 = vmul.f32 %v11171_v17, %v7495_v53  ;;  %v7526_v37 = vadd.f32 %v11179_v33, %v7510_v45 }
 0xc65   :  { %v7540_v40 = vsel %vm147_vm0, %v7524_v12, 0.0 }
 0xc66   :  { %v7542_v9 = vadd.f32 %v7541_v49, %v7540_v40 }
 0xc67   :  { %v7422_v11 = vpop.xlane.xlu0 %7421 }
 0xc68   :  { %v7452_v34 = vmul.f32 0.0125, %v7422_v11 }
 0xc69   :  { %v8698_v3 = vpop.eup %8697 }
 0xc6a   :  { %v7468_v18 = vadd.f32 1e-05, %v7452_v34  ;;  %v7496_v63 = vmul.f32 %v8698_v3, %v11095_v29  ;;  %v7527_v29 = vadd.f32 %v11179_v33, %v7511_v6 }
 0xc6b   :  { %v7425_v50 = vpop.xlane.xlu1 %7424  ;;  %v7413_v13 = vpop.xlane.xlu0 %7412 }
 0xc6c   :  { %v7453_v39 = vmul.f32 0.0125, %v7425_v50  ;;  %v7449_v24 = vmul.f32 0.0125, %v7413_v13  ;;  %v7512_v30 = vmul.f32 %v11171_v17, %v7496_v63 }
 0xc6e   :  { %v7469_v56 = vadd.f32 1e-05, %v7453_v39  ;;  %v7465_v35 = vadd.f32 1e-05, %v7449_v24  ;;  %v7543_v39 = vsel %vm147_vm0, %v7526_v37, 0.0  ;;  %v7528_v24 = vadd.f32 %v11179_v33, %v7512_v30 }
 0xc6f   :  { %v7428_v60 = vpop.xlane.xlu1 %7427  ;;  %v7416_v41 = vpop.xlane.xlu0 %7415 }
 0xc70   :  { %v7454_v15 = vmul.f32 0.0125, %v7428_v60  ;;  %v7450_v7 = vmul.f32 0.0125, %v7416_v41  ;;  %8699 = vrsqrt.f32 %v7465_v35 }
 0xc71   :  { %8701 = vrsqrt.f32 %v7469_v56 }
 0xc72   :  { %v7470_v46 = vadd.f32 1e-05, %v7454_v15  ;;  %v7466_v1 = vadd.f32 1e-05, %v7450_v7  ;;  %8703 = vrsqrt.f32 %v7468_v18  ;;  %v7544_v18 = vadd.f32 %v7543_v39, %v7542_v9 }
 0xc73   :  { %v7431_v26 = vpop.xlane.xlu1 %7430  ;;  %v7419_v4 = vpop.xlane.xlu0 %7418  ;;  %v7545_v7 = vsel %vm147_vm0, %v7527_v29, 0.0 }
 0xc74   :  { %8705 = vrsqrt.f32 %v7470_v46  ;;  %v7455_v20 = vmul.f32 0.0125, %v7431_v26  ;;  %v7451_v42 = vmul.f32 0.0125, %v7419_v4  ;;  %v7546_v4 = vadd.f32 %v7545_v7, %v7544_v18 }
 0xc75   :  { %8707 = vrsqrt.f32 %v7466_v1 }
 0xc76   :  { %v7471_v57 = vadd.f32 1e-05, %v7455_v20  ;;  %v7467_v43 = vadd.f32 1e-05, %v7451_v42 }
 0xc77   :  { %v7434_v25 = vpop.xlane.xlu1 %7433 }
 0xc78   :  { %8709 = vrsqrt.f32 %v7471_v57  ;;  %v7456_v62 = vmul.f32 0.0125, %v7434_v25 }
 0xc79   :  { %8711 = vrsqrt.f32 %v7467_v43 }
 0xc7a   :  { %v7472_v31 = vadd.f32 1e-05, %v7456_v62 }
 0xc7b   :  { %v7437_v51 = vpop.xlane.xlu1 %7436 }
 0xc7c   :  { %8713 = vrsqrt.f32 %v7472_v31  ;;  %v7457_v8 = vmul.f32 0.0125, %v7437_v51 }
 0xc7d   :  { %v8700_v27 = vpop.eup %8699 }
 0xc7e   :  { %v7473_v21 = vadd.f32 1e-05, %v7457_v8  ;;  %v8702_v28 = vpop.eup %8701  ;;  %v7497_v11 = vmul.f32 %v8700_v27, %v11109_v36 }
 0xc7f   :  { %v7440_v34 = vpop.xlane.xlu1 %7439  ;;  %v8704_v50 = vpop.eup %8703  ;;  %v7501_v35 = vmul.f32 %v8702_v28, %v11106_v55  ;;  %v7547_v55 = vsel %vm147_vm0, %v7528_v24, 0.0 }
 0xc80   :  { %8715 = vrsqrt.f32 %v7473_v21  ;;  %v7458_v13 = vmul.f32 0.0125, %v7440_v34  ;;  %v7513_v44 = vmul.f32 %v11171_v17, %v7497_v11  ;;  %v7500_v60 = vmul.f32 %v8704_v50, %v11101_v47 }
 0xc81   :  { %v8706_v32 = vpop.eup %8705  ;;  %v7517_v26 = vmul.f32 %v11171_v17, %v7501_v35  ;;  %v7548_v22 = vadd.f32 %v7547_v55, %v7546_v4 }
 0xc82   :  { %v8708_v56 = vpop.eup %8707  ;;  %v7474_v19 = vadd.f32 1e-05, %v7458_v13  ;;  %v7529_v15 = vadd.f32 %v11179_v33, %v7513_v44  ;;  %v7502_v59 = vmul.f32 %v8706_v32, %v11117_v0  ;;  %v7516_v16 = vmul.f32 %v11171_v17, %v7500_v60 }
 0xc83   :  { %v7498_v36 = vmul.f32 %v8708_v56, %v11120_v58  ;;  %v7443_v41 = vpop.xlane.xlu1 %7442 }
 0xc84   :  { %8717 = vrsqrt.f32 %v7474_v19  ;;  %v7459_v54 = vmul.f32 0.0125, %v7443_v41  ;;  %v7549_v42 = vsel %vm147_vm0, %v7529_v15, 0.0  ;;  %v7518_v14 = vmul.f32 %v11171_v17, %v7502_v59 }
 0xc85   :  { %v8710_v46 = vpop.eup %8709  ;;  %v7514_v1 = vmul.f32 %v11171_v17, %v7498_v36  ;;  %v7532_v25 = vadd.f32 %v11179_v33, %v7516_v16 }
 0xc86   :  { %v8712_v23 = vpop.eup %8711  ;;  %v7503_v47 = vmul.f32 %v8710_v46, %v11129_v38  ;;  %v7475_v58 = vadd.f32 1e-05, %v7459_v54  ;;  %v7533_v38 = vadd.f32 %v11179_v33, %v7517_v26  ;;  %v7534_v12 = vadd.f32 %v11179_v33, %v7518_v14 }
 0xc87   :  { %v7499_v20 = vmul.f32 %v8712_v23, %v11132_v10  ;;  %v7530_v0 = vadd.f32 %v11179_v33, %v7514_v1  ;;  %v7550_v10 = vadd.f32 %v7549_v42, %v7548_v22  ;;  %v7557_v40 = vsel %vm147_vm0, %v7532_v25, 0.0 }
 0xc88   :  { %8719 = vrsqrt.f32 %v7475_v58  ;;  %v7519_v52 = vmul.f32 %v11171_v17, %v7503_v47  ;;  %v7558_v6 = vsel %vm147_vm0, %v7533_v38, 0.0  ;;  %v7560_v37 = vsel %vm147_vm0, %v7534_v12, 0.0 }
 0xc89   :  { %v8714_v3 = vpop.eup %8713  ;;  %v7515_v57 = vmul.f32 %v11171_v17, %v7499_v20  ;;  %v7551_v43 = vsel %vm147_vm0, %v7530_v0, 0.0  ;;  %v7559_v28 = vadd.f32 %v7558_v6, %v7557_v40 }
 0xc8a   :  { %v7504_v53 = vmul.f32 %v8714_v3, %v11141_v5  ;;  %v7552_v63 = vadd.f32 %v7551_v43, %v7550_v10  ;;  %v7535_v51 = vadd.f32 %v11179_v33, %v7519_v52 }
 0xc8b   :  { %v7531_v62 = vadd.f32 %v11179_v33, %v7515_v57  ;;  %v7561_v34 = vadd.f32 %v7560_v37, %v7559_v28 }
 0xc8c   :  { %v7520_v45 = vmul.f32 %v11171_v17, %v7504_v53 }
 0xc8d   :  { %v8716_v31 = vpop.eup %8715  ;;  %v7553_v49 = vsel %vm147_vm0, %v7531_v62, 0.0 }
 0xc8e   :  { %v7505_v8 = vmul.f32 %v8716_v31, %v11148_v61  ;;  %v7554_v5 = vadd.f32 %v7553_v49, %v7552_v63  ;;  %v7536_v30 = vadd.f32 %v11179_v33, %v7520_v45  ;;  %v7562_v61 = vsel %vm147_vm0, %v7535_v51, 0.0 }
 0xc8f   :  { %v7563_v39 = vadd.f32 %v7562_v61, %v7561_v34 }
 0xc90   :  { %v7521_v27 = vmul.f32 %v11171_v17, %v7505_v8  ;;  %v7555_v9 = vmul.f32 0.125, %v7554_v5  ;;  %v7564_v13 = vsel %vm147_vm0, %v7536_v30, 0.0 }
 0xc91   :  { %v8718_v21 = vpop.eup %8717 }
 0xc92   :  { %v7506_v29 = vmul.f32 %v8718_v21, %v11154_v2  ;;  %v7537_v11 = vadd.f32 %v11179_v33, %v7521_v27  ;;  %7556 = vst.msk [vmem:[#allocation2] sm:$0xff] %vm147_vm0, %v7555_v9  ;;  %v7565_v2 = vadd.f32 %v7564_v13, %v7563_v39 }
 0xc94   :  { %v7522_v50 = vmul.f32 %v11171_v17, %v7506_v29  ;;  %v7566_v56 = vsel %vm147_vm0, %v7537_v11, 0.0 }
 0xc95   :  { %v8720_v32 = vpop.eup %8719  ;;  %v7567_v18 = vadd.f32 %v7566_v56, %v7565_v2 }
 0xc96   :  { %v7507_v24 = vmul.f32 %v8720_v32, %v11160_v48  ;;  %v7538_v44 = vadd.f32 %v11179_v33, %v7522_v50 }
 0xc98   :  { %v7523_v35 = vmul.f32 %v11171_v17, %v7507_v24  ;;  %v7568_v19 = vsel %vm147_vm0, %v7538_v44, 0.0 }
 0xc99   :  { %v7569_v36 = vadd.f32 %v7568_v19, %v7567_v18 }
 0xc9a   :  { %v7539_v60 = vadd.f32 %v11179_v33, %v7523_v35 }
 0xc9c   :  { %v7570_v41 = vsel %vm147_vm0, %v7539_v60, 0.0 }
 0xc9d   :  { %v7571_v15 = vadd.f32 %v7570_v41, %v7569_v36 }
 0xc9f   :  { %v7572_v7 = vmul.f32 0.125, %v7571_v15 }
 0xca1   :  { %7574 = vst.msk [vmem:[#allocation2 + $0x8] sm:$0xff] %vm147_vm0, %v7572_v7 }
 0xca2   :  { %8796 = shalt.err (!%p8793_p4)
}
 0xca3   :  { %s8811_s18 = smov 128   ;;  %s8812_s5 = smov 8  }
 0xca4   :  { %7586 = dma.vmem_to_hbm [thread:$0]  %s7581_s17, 256, %s11253_s8, [#allocation3], %s8811_s18, %s8811_s18, %s8812_s5  }
 0xca5   :  { %8805 = dma.done.wait [#allocation3], 256  }
 0xca6   :  { %8806 = vsyncadd [#allocation3], 4294967040 }
 0xca7   :  { %7590 = vsyncpa [#allocation3], 1 }

</bundles_post_ra>
